<compile_context>
chip_gen: v7x
topology: tpu7x:2x2x1
jax: 0.10.0
libtpu: 0.0.40
codegen_flags: <defaults>
</compile_context>

<pallas_src>
import math

import jax
import jax.numpy as jnp
from jax.experimental import pallas as pl
from jax.experimental.pallas import tpu as pltpu

# ---------------- configuration (matches the module defaults) ----------------
D = 8
W = 256
INPUT_CH = 3                       # input_ch (positions)
INPUT_CH_FEAT = 128 + 3            # input_ch_feat + 3  -> 131
POSE_FREQS = 10
SPATIAL_FREQ = 1.0 / 256.0
NUM_VIEWS = 4
SKIP = 4                           # opt.skips = [4]
POSE_OUT = INPUT_CH * (1 + 2 * POSE_FREQS)   # 63 (identity + sin/cos per freq)

K0_RAW = POSE_OUT + INPUT_CH_FEAT  # 194  (layer-0 fused input width)
K0_PAD = 256                       # zero-padded to one full MXU contraction
EMBU_PAD = 128                     # unique-point embedding padded 63 -> 128


# ---------------- glue: positional encoding (plain JAX) ----------------------
def pose_embed(x):
    # TODO(synk): the PositionalEncoding class is not given in the reference; we
    # assume identity + sin/cos at `num_freqs` geometrically spaced frequencies
    # in [min_freq, max_freq] = [spatial_freq*0.1, spatial_freq*10].
    min_f = SPATIAL_FREQ * 0.1
    max_f = SPATIAL_FREQ * 10.0
    t = jnp.linspace(0.0, 1.0, POSE_FREQS).astype(jnp.float32)
    freqs = min_f * (max_f / min_f) ** t                      # [F]
    xf = x[..., None, :] * freqs[:, None] * (2.0 * jnp.pi)    # [..., F, C]
    emb = jnp.concatenate([jnp.sin(xf), jnp.cos(xf)], axis=-1)
    emb = emb.reshape(x.shape[:-1] + (2 * POSE_FREQS * INPUT_CH,))
    return jnp.concatenate([x, emb], axis=-1)                 # [..., POSE_OUT]


# ---------------- the Pallas kernel: full MLP hot path ------------------------
def nerf_mlp_kernel(x0_ref, embu_ref,
                    w0, b0, w1, b1, w2, b2, w3, b3, w4, b4,
                    w5a, w5b, b5, w6, b6, w7, b7, wao, bao,
                    wr0a, wr0b, br0, wr1, br1, wr2, br2, wr3, br3,
                    rgb_ref, alpha_ref):
    f32 = jnp.float32
    bf16 = jnp.bfloat16

    def dot(a, w_ref):
        # bf16 MXU inputs, f32 accumulation.
        return jnp.dot(a.astype(bf16), w_ref[...], preferred_element_type=f32)

    relu = lambda v: jnp.maximum(v, 0.0)
    tm = rgb_ref.shape[0]                     # points per tile

    # alpha MLP layers 0..4 over all (view, point) rows of this tile.
    # Rows are view-major inside the tile: row = v * tm + n.
    h = relu(dot(x0_ref[...], w0) + b0[...])
    for w_ref, b_ref in ((w1, b1), (w2, b2), (w3, b3), (w4, b4)):
        h = relu(dot(h, w_ref) + b_ref[...])

    # mean over views: sum of NUM_VIEWS contiguous [tm, W] row blocks.
    h_mean = h[0:tm, :]
    for v in range(1, NUM_VIEWS):
        h_mean = h_mean + h[v * tm:(v + 1) * tm, :]
    h_mean = h_mean * (1.0 / NUM_VIEWS)       # [tm, W]

    embu = embu_ref[...]                      # [tm, EMBU_PAD] (bf16, zero-padded)

    # skip at layer 5: cat([pose_embed(unique_pts), unique_smpl(0), h_mean])
    # implemented as a split matmul (avoids an in-kernel lane concat).
    g = relu(dot(embu, w5a) + dot(h_mean, w5b) + b5[...])
    g = relu(dot(g, w6) + b6[...])
    g = relu(dot(g, w7) + b7[...])
    alpha = dot(g, wao) + bao[...]            # [tm, 1]

    # rgb branch: input = cat([pose_embed(unique_pts), h_mean]) as split matmul
    r = relu(dot(embu, wr0a) + dot(h_mean, wr0b) + br0[...])
    r = relu(dot(r, wr1) + br1[...])
    r = relu(dot(r, wr2) + br2[...])
    rgb = dot(r, wr3) + br3[...]              # [tm, 3]

    rgb_ref[...] = rgb.astype(rgb_ref.dtype)
    alpha_ref[...] = alpha.astype(alpha_ref.dtype)


# ---------------- wrapper ------------------------------------------------------
def _prep_params(params):
    """Split / zero-pad / bf16-cast the torch-layout params for the kernel."""
    bf16 = jnp.bfloat16
    f32 = jnp.float32
    b2 = lambda b: jnp.asarray(b, f32).reshape(1, -1)

    a = params["alpha"]
    w0, b0 = a[0]                                            # [194, 256]
    w0p = jnp.pad(w0, ((0, K0_PAD - w0.shape[0]), (0, 0))).astype(bf16)
    out = [w0p, b2(b0)]
    for w_, b_ in a[1:5]:
        out += [w_.astype(bf16), b2(b_)]
    w5, b5 = a[5]                                            # [63+256, 256]
    w5a = jnp.pad(w5[:POSE_OUT], ((0, EMBU_PAD - POSE_OUT), (0, 0))).astype(bf16)
    w5b = w5[POSE_OUT:].astype(bf16)
    out += [w5a, w5b, b2(b5)]
    for w_, b_ in a[6:8]:
        out += [w_.astype(bf16), b2(b_)]
    wao, bao = params["alpha_out"]
    out += [wao.astype(bf16), b2(bao)]
    wr0, br0 = params["rgb"][0]                              # [63+256, 64]
    wr0a = jnp.pad(wr0[:POSE_OUT], ((0, EMBU_PAD - POSE_OUT), (0, 0))).astype(bf16)
    wr0b = wr0[POSE_OUT:].astype(bf16)
    out += [wr0a, wr0b, b2(br0)]
    for w_, b_ in params["rgb"][1:]:
        out += [w_.astype(bf16), b2(b_)]
    return out


def nerf_forward(x, params, tm=64):
    # x: [N, num_views, INPUT_CH + INPUT_CH_FEAT]   (torch.split semantics)
    N, V, _ = x.shape
    assert V == NUM_VIEWS
    x = x.astype(jnp.float32)

    input_pts = x[..., :INPUT_CH]                 # [N, V, 3]
    input_feats = x[..., INPUT_CH:]               # [N, V, 131]

    num_tiles = pl.cdiv(N, tm)
    n_pad = num_tiles * tm
    rows = tm * NUM_VIEWS

    # fused layer-0 input: [emb(63) | feats(131)] zero-padded to 256 lanes
    emb_pts = pose_embed(input_pts)                                   # [N, V, 63]
    x0 = jnp.concatenate([emb_pts, input_feats], axis=-1)             # [N, V, 194]
    x0 = jnp.pad(x0, ((0, n_pad - N), (0, 0), (0, K0_PAD - K0_RAW)))  # [n_pad,V,256]
    # view-major row order inside each tile so the kernel's view-mean is a sum
    # of contiguous static slices.
    x0 = x0.reshape(num_tiles, tm, NUM_VIEWS, K0_PAD)
    x0 = x0.transpose(0, 2, 1, 3).reshape(num_tiles * rows, K0_PAD)
    x0 = x0.astype(jnp.bfloat16)

    # unique-point embedding, zero-padded 63 -> 128 lanes
    embu = pose_embed(input_pts[:, 0])                                # [N, 63]
    embu = jnp.pad(embu, ((0, n_pad - N), (0, EMBU_PAD - POSE_OUT)))
    embu = embu.astype(jnp.bfloat16)

    kparams = _prep_params(params)

    in_specs = [
        pl.BlockSpec((rows, K0_PAD), lambda i: (i, 0)),
        pl.BlockSpec((tm, EMBU_PAD), lambda i: (i, 0)),
    ] + [pl.BlockSpec(p.shape, lambda i: (0, 0)) for p in kparams]  # VMEM-resident
    out_specs = (
        pl.BlockSpec((tm, 3), lambda i: (i, 0)),
        pl.BlockSpec((tm, 1), lambda i: (i, 0)),
    )
    out_shape = (
        jax.ShapeDtypeStruct((n_pad, 3), jnp.float32),
        jax.ShapeDtypeStruct((n_pad, 1), jnp.float32),
    )

    rgb, alpha = pl.pallas_call(
        nerf_mlp_kernel,
        out_shape=out_shape,
        grid_spec=pltpu.PrefetchScalarGridSpec(
            num_scalar_prefetch=0,
            grid=(num_tiles,),
            in_specs=in_specs,
            out_specs=out_specs,
        ),
        compiler_params=pltpu.CompilerParams(
            dimension_semantics=("parallel",)),
    )(x0, embu, *kparams)

    return jnp.concatenate([rgb[:N], alpha[:N]], axis=-1)    # [N, 4]


# ---------------- deterministic parameter init (torch.nn.Linear-like) ---------
def init_params(key):
    def linear(k, fan_in, fan_out):
        kw, kb = jax.random.split(k)
        lim = 1.0 / math.sqrt(fan_in)
        w = jax.random.uniform(kw, (fan_in, fan_out), jnp.float32, -lim, lim)
        b = jax.random.uniform(kb, (fan_out,), jnp.float32, -lim, lim)
        return w, b

    keys = jax.random.split(key, 13)
    params = {"alpha": [], "rgb": []}
    # alpha layer 0: Linear(pose_out + 0 + input_ch_feat, W)
    params["alpha"].append(linear(keys[0], POSE_OUT + INPUT_CH_FEAT, W))
    # alpha layers 1..4: Linear(W, W)
    for i in range(1, 5):
        params["alpha"].append(linear(keys[i], W, W))
    # alpha layer 5 (skip): Linear(pose_out + 0 + W, W)
    params["alpha"].append(linear(keys[5], POSE_OUT + W, W))
    # alpha layers 6, 7: Linear(W, W)
    params["alpha"].append(linear(keys[6], W, W))
    params["alpha"].append(linear(keys[7], W, W))
    # alpha_out_linear: Linear(W, 1)
    params["alpha_out"] = linear(keys[8], W, 1)
    # rgb layers
    params["rgb"].append(linear(keys[9], POSE_OUT + W, W // 4))
    params["rgb"].append(linear(keys[10], W // 4, W // 8))
    params["rgb"].append(linear(keys[11], W // 8, W // 16))
    params["rgb"].append(linear(keys[12], W // 16, 3))
    return params


# ---------------- pure-JAX f32 reference (for the sanity check) ---------------
def nerf_forward_ref(x, params):
    N, V, _ = x.shape
    pts = x[..., :INPUT_CH]
    feats = x[..., INPUT_CH:].reshape(-1, INPUT_CH_FEAT)
    emb = pose_embed(pts.reshape(-1, INPUT_CH))
    emb_u = pose_embed(pts[:, 0])
    relu = lambda v: jnp.maximum(v, 0.0)

    w0, b0 = params["alpha"][0]
    h = relu(jnp.concatenate([emb, feats], axis=-1) @ w0 + b0)
    for w_, b_ in params["alpha"][1:5]:
        h = relu(h @ w_ + b_)
    h_mean = jnp.mean(h.reshape(N, V, W), axis=1)

    g = jnp.concatenate([emb_u, h_mean], axis=-1)
    for w_, b_ in params["alpha"][5:8]:
        g = relu(g @ w_ + b_)
    wao, bao = params["alpha_out"]
    alpha = g @ wao + bao

    r = jnp.concatenate([emb_u, h_mean], axis=-1)
    rgb_layers = params["rgb"]
    for idx, (w_, b_) in enumerate(rgb_layers):
        r = r @ w_ + b_
        if idx < len(rgb_layers) - 1:
            r = relu(r)
    return jnp.concatenate([r, alpha], axis=-1)


if __name__ == "__main__":
    key = jax.random.PRNGKey(0)
    kx, kp = jax.random.split(key)
    N = 200  # unique points; padded to 256 -> 4 grid tiles of TM=64 points each
    x = jax.random.normal(kx, (N, NUM_VIEWS, INPUT_CH + INPUT_CH_FEAT), jnp.float32)
    params = init_params(kp)

    out = nerf_forward(x, params, tm=64)
    out = jax.block_until_ready(out)
    assert out.shape == (N, 4) and out.dtype == jnp.float32

    ref = jax.block_until_ready(nerf_forward_ref(x, params))
    # bf16 MXU inputs with f32 accumulation: tolerance derived for the bf16 path.
    err = float(jnp.max(jnp.abs(out - ref)))
    tol = 2e-2 + 2e-2 * float(jnp.max(jnp.abs(ref)))
    assert err < tol, f"mismatch vs pure-JAX reference: err={err} tol={tol}"

    print("KERNEL_OK")
</pallas_src>

<mosaic_0001>
module attributes {stable_mosaic.version = 11 : i64} {
  func.func @nerf_mlp_kernel(%arg0: i32, %arg1: memref<256x256xbf16, #tpu.memory_space<vmem>>, %arg2: memref<64x128xbf16, #tpu.memory_space<vmem>>, %arg3: memref<256x256xbf16, #tpu.memory_space<vmem>>, %arg4: memref<1x256xf32, #tpu.memory_space<vmem>>, %arg5: memref<256x256xbf16, #tpu.memory_space<vmem>>, %arg6: memref<1x256xf32, #tpu.memory_space<vmem>>, %arg7: memref<256x256xbf16, #tpu.memory_space<vmem>>, %arg8: memref<1x256xf32, #tpu.memory_space<vmem>>, %arg9: memref<256x256xbf16, #tpu.memory_space<vmem>>, %arg10: memref<1x256xf32, #tpu.memory_space<vmem>>, %arg11: memref<256x256xbf16, #tpu.memory_space<vmem>>, %arg12: memref<1x256xf32, #tpu.memory_space<vmem>>, %arg13: memref<128x256xbf16, #tpu.memory_space<vmem>>, %arg14: memref<256x256xbf16, #tpu.memory_space<vmem>>, %arg15: memref<1x256xf32, #tpu.memory_space<vmem>>, %arg16: memref<256x256xbf16, #tpu.memory_space<vmem>>, %arg17: memref<1x256xf32, #tpu.memory_space<vmem>>, %arg18: memref<256x256xbf16, #tpu.memory_space<vmem>>, %arg19: memref<1x256xf32, #tpu.memory_space<vmem>>, %arg20: memref<256x1xbf16, #tpu.memory_space<vmem>>, %arg21: memref<1x1xf32, #tpu.memory_space<vmem>>, %arg22: memref<128x64xbf16, #tpu.memory_space<vmem>>, %arg23: memref<256x64xbf16, #tpu.memory_space<vmem>>, %arg24: memref<1x64xf32, #tpu.memory_space<vmem>>, %arg25: memref<64x32xbf16, #tpu.memory_space<vmem>>, %arg26: memref<1x32xf32, #tpu.memory_space<vmem>>, %arg27: memref<32x16xbf16, #tpu.memory_space<vmem>>, %arg28: memref<1x16xf32, #tpu.memory_space<vmem>>, %arg29: memref<16x3xbf16, #tpu.memory_space<vmem>>, %arg30: memref<1x3xf32, #tpu.memory_space<vmem>>, %arg31: memref<64x3xf32, #tpu.memory_space<vmem>>, %arg32: memref<64x1xf32, #tpu.memory_space<vmem>>) attributes {dimension_semantics = [#tpu.dimension_semantics<parallel>], iteration_bounds = array<i64: 4>, scalar_prefetch = 0 : i64, scratch_operands = 0 : i64, tpu.core_type = #tpu.core_type<tc>, window_params = [{transform_indices = @transform_0, window_bounds = array<i64: 256, 256>}, {transform_indices = @transform_1, window_bounds = array<i64: 64, 128>}, {pipeline_mode = #tpu.pipeline_mode<synchronous>, transform_indices = @transform_2, window_bounds = array<i64: 256, 256>}, {pipeline_mode = #tpu.pipeline_mode<synchronous>, transform_indices = @transform_3, window_bounds = array<i64: 1, 256>}, {pipeline_mode = #tpu.pipeline_mode<synchronous>, transform_indices = @transform_4, window_bounds = array<i64: 256, 256>}, {pipeline_mode = #tpu.pipeline_mode<synchronous>, transform_indices = @transform_5, window_bounds = array<i64: 1, 256>}, {pipeline_mode = #tpu.pipeline_mode<synchronous>, transform_indices = @transform_6, window_bounds = array<i64: 256, 256>}, {pipeline_mode = #tpu.pipeline_mode<synchronous>, transform_indices = @transform_7, window_bounds = array<i64: 1, 256>}, {pipeline_mode = #tpu.pipeline_mode<synchronous>, transform_indices = @transform_8, window_bounds = array<i64: 256, 256>}, {pipeline_mode = #tpu.pipeline_mode<synchronous>, transform_indices = @transform_9, window_bounds = array<i64: 1, 256>}, {pipeline_mode = #tpu.pipeline_mode<synchronous>, transform_indices = @transform_10, window_bounds = array<i64: 256, 256>}, {pipeline_mode = #tpu.pipeline_mode<synchronous>, transform_indices = @transform_11, window_bounds = array<i64: 1, 256>}, {pipeline_mode = #tpu.pipeline_mode<synchronous>, transform_indices = @transform_12, window_bounds = array<i64: 128, 256>}, {pipeline_mode = #tpu.pipeline_mode<synchronous>, transform_indices = @transform_13, window_bounds = array<i64: 256, 256>}, {pipeline_mode = #tpu.pipeline_mode<synchronous>, transform_indices = @transform_14, window_bounds = array<i64: 1, 256>}, {pipeline_mode = #tpu.pipeline_mode<synchronous>, transform_indices = @transform_15, window_bounds = array<i64: 256, 256>}, {pipeline_mode = #tpu.pipeline_mode<synchronous>, transform_indices = @transform_16, window_bounds = array<i64: 1, 256>}, {pipeline_mode = #tpu.pipeline_mode<synchronous>, transform_indices = @transform_17, window_bounds = array<i64: 256, 256>}, {pipeline_mode = #tpu.pipeline_mode<synchronous>, transform_indices = @transform_18, window_bounds = array<i64: 1, 256>}, {pipeline_mode = #tpu.pipeline_mode<synchronous>, transform_indices = @transform_19, window_bounds = array<i64: 256, 1>}, {pipeline_mode = #tpu.pipeline_mode<synchronous>, transform_indices = @transform_20, window_bounds = array<i64: 1, 1>}, {pipeline_mode = #tpu.pipeline_mode<synchronous>, transform_indices = @transform_21, window_bounds = array<i64: 128, 64>}, {pipeline_mode = #tpu.pipeline_mode<synchronous>, transform_indices = @transform_22, window_bounds = array<i64: 256, 64>}, {pipeline_mode = #tpu.pipeline_mode<synchronous>, transform_indices = @transform_23, window_bounds = array<i64: 1, 64>}, {pipeline_mode = #tpu.pipeline_mode<synchronous>, transform_indices = @transform_24, window_bounds = array<i64: 64, 32>}, {pipeline_mode = #tpu.pipeline_mode<synchronous>, transform_indices = @transform_25, window_bounds = array<i64: 1, 32>}, {pipeline_mode = #tpu.pipeline_mode<synchronous>, transform_indices = @transform_26, window_bounds = array<i64: 32, 16>}, {pipeline_mode = #tpu.pipeline_mode<synchronous>, transform_indices = @transform_27, window_bounds = array<i64: 1, 16>}, {pipeline_mode = #tpu.pipeline_mode<synchronous>, transform_indices = @transform_28, window_bounds = array<i64: 16, 3>}, {pipeline_mode = #tpu.pipeline_mode<synchronous>, transform_indices = @transform_29, window_bounds = array<i64: 1, 3>}, {transform_indices = @transform_30, window_bounds = array<i64: 64, 3>}, {transform_indices = @transform_31, window_bounds = array<i64: 64, 1>}]} {
    %c0 = arith.constant 0 : index
    %c0_0 = arith.constant 0 : index
    %0 = vector.load %arg1[%c0, %c0_0] : memref<256x256xbf16, #tpu.memory_space<vmem>>, vector<256x256xbf16>
    %c0_1 = arith.constant 0 : index
    %c0_2 = arith.constant 0 : index
    %1 = vector.load %arg3[%c0_1, %c0_2] : memref<256x256xbf16, #tpu.memory_space<vmem>>, vector<256x256xbf16>
    %cst = arith.constant dense<0.000000e+00> : vector<256x256xf32>
    %2 = tpu.matmul %0, %1, %cst {dimension_numbers = #tpu.dot_dimension_numbers<[1], [0], [0], [1], [0, 0, 1, 1], [], []>} : vector<256x256xbf16>, vector<256x256xbf16>, vector<256x256xf32> -> vector<256x256xf32>
    %c0_3 = arith.constant 0 : index
    %c0_4 = arith.constant 0 : index
    %3 = vector.load %arg4[%c0_3, %c0_4] : memref<1x256xf32, #tpu.memory_space<vmem>>, vector<1x256xf32>
    %4 = vector.broadcast %3 : vector<1x256xf32> to vector<256x256xf32>
    %5 = arith.addf %2, %4 : vector<256x256xf32>
    %cst_5 = arith.constant 0.000000e+00 : f32
    %6 = vector.broadcast %cst_5 : f32 to vector<256x256xf32>
    %7 = arith.maximumf %5, %6 : vector<256x256xf32>
    %8 = arith.truncf %7 : vector<256x256xf32> to vector<256x256xbf16>
    %c0_6 = arith.constant 0 : index
    %c0_7 = arith.constant 0 : index
    %9 = vector.load %arg5[%c0_6, %c0_7] : memref<256x256xbf16, #tpu.memory_space<vmem>>, vector<256x256xbf16>
    %cst_8 = arith.constant dense<0.000000e+00> : vector<256x256xf32>
    %10 = tpu.matmul %8, %9, %cst_8 {dimension_numbers = #tpu.dot_dimension_numbers<[1], [0], [0], [1], [0, 0, 1, 1], [], []>} : vector<256x256xbf16>, vector<256x256xbf16>, vector<256x256xf32> -> vector<256x256xf32>
    %c0_9 = arith.constant 0 : index
    %c0_10 = arith.constant 0 : index
    %11 = vector.load %arg6[%c0_9, %c0_10] : memref<1x256xf32, #tpu.memory_space<vmem>>, vector<1x256xf32>
    %12 = vector.broadcast %11 : vector<1x256xf32> to vector<256x256xf32>
    %13 = arith.addf %10, %12 : vector<256x256xf32>
    %cst_11 = arith.constant 0.000000e+00 : f32
    %14 = vector.broadcast %cst_11 : f32 to vector<256x256xf32>
    %15 = arith.maximumf %13, %14 : vector<256x256xf32>
    %16 = arith.truncf %15 : vector<256x256xf32> to vector<256x256xbf16>
    %c0_12 = arith.constant 0 : index
    %c0_13 = arith.constant 0 : index
    %17 = vector.load %arg7[%c0_12, %c0_13] : memref<256x256xbf16, #tpu.memory_space<vmem>>, vector<256x256xbf16>
    %cst_14 = arith.constant dense<0.000000e+00> : vector<256x256xf32>
    %18 = tpu.matmul %16, %17, %cst_14 {dimension_numbers = #tpu.dot_dimension_numbers<[1], [0], [0], [1], [0, 0, 1, 1], [], []>} : vector<256x256xbf16>, vector<256x256xbf16>, vector<256x256xf32> -> vector<256x256xf32>
    %c0_15 = arith.constant 0 : index
    %c0_16 = arith.constant 0 : index
    %19 = vector.load %arg8[%c0_15, %c0_16] : memref<1x256xf32, #tpu.memory_space<vmem>>, vector<1x256xf32>
    %20 = vector.broadcast %19 : vector<1x256xf32> to vector<256x256xf32>
    %21 = arith.addf %18, %20 : vector<256x256xf32>
    %cst_17 = arith.constant 0.000000e+00 : f32
    %22 = vector.broadcast %cst_17 : f32 to vector<256x256xf32>
    %23 = arith.maximumf %21, %22 : vector<256x256xf32>
    %24 = arith.truncf %23 : vector<256x256xf32> to vector<256x256xbf16>
    %c0_18 = arith.constant 0 : index
    %c0_19 = arith.constant 0 : index
    %25 = vector.load %arg9[%c0_18, %c0_19] : memref<256x256xbf16, #tpu.memory_space<vmem>>, vector<256x256xbf16>
    %cst_20 = arith.constant dense<0.000000e+00> : vector<256x256xf32>
    %26 = tpu.matmul %24, %25, %cst_20 {dimension_numbers = #tpu.dot_dimension_numbers<[1], [0], [0], [1], [0, 0, 1, 1], [], []>} : vector<256x256xbf16>, vector<256x256xbf16>, vector<256x256xf32> -> vector<256x256xf32>
    %c0_21 = arith.constant 0 : index
    %c0_22 = arith.constant 0 : index
    %27 = vector.load %arg10[%c0_21, %c0_22] : memref<1x256xf32, #tpu.memory_space<vmem>>, vector<1x256xf32>
    %28 = vector.broadcast %27 : vector<1x256xf32> to vector<256x256xf32>
    %29 = arith.addf %26, %28 : vector<256x256xf32>
    %cst_23 = arith.constant 0.000000e+00 : f32
    %30 = vector.broadcast %cst_23 : f32 to vector<256x256xf32>
    %31 = arith.maximumf %29, %30 : vector<256x256xf32>
    %32 = arith.truncf %31 : vector<256x256xf32> to vector<256x256xbf16>
    %c0_24 = arith.constant 0 : index
    %c0_25 = arith.constant 0 : index
    %33 = vector.load %arg11[%c0_24, %c0_25] : memref<256x256xbf16, #tpu.memory_space<vmem>>, vector<256x256xbf16>
    %cst_26 = arith.constant dense<0.000000e+00> : vector<256x256xf32>
    %34 = tpu.matmul %32, %33, %cst_26 {dimension_numbers = #tpu.dot_dimension_numbers<[1], [0], [0], [1], [0, 0, 1, 1], [], []>} : vector<256x256xbf16>, vector<256x256xbf16>, vector<256x256xf32> -> vector<256x256xf32>
    %c0_27 = arith.constant 0 : index
    %c0_28 = arith.constant 0 : index
    %35 = vector.load %arg12[%c0_27, %c0_28] : memref<1x256xf32, #tpu.memory_space<vmem>>, vector<1x256xf32>
    %36 = vector.broadcast %35 : vector<1x256xf32> to vector<256x256xf32>
    %37 = arith.addf %34, %36 : vector<256x256xf32>
    %cst_29 = arith.constant 0.000000e+00 : f32
    %38 = vector.broadcast %cst_29 : f32 to vector<256x256xf32>
    %39 = arith.maximumf %37, %38 : vector<256x256xf32>
    %40 = vector.extract_strided_slice %39 {offsets = [0, 0], sizes = [64, 256], strides = [1, 1]} : vector<256x256xf32> to vector<64x256xf32>
    %41 = vector.extract_strided_slice %39 {offsets = [64, 0], sizes = [64, 256], strides = [1, 1]} : vector<256x256xf32> to vector<64x256xf32>
    %42 = arith.addf %40, %41 : vector<64x256xf32>
    %43 = vector.extract_strided_slice %39 {offsets = [128, 0], sizes = [64, 256], strides = [1, 1]} : vector<256x256xf32> to vector<64x256xf32>
    %44 = arith.addf %42, %43 : vector<64x256xf32>
    %45 = vector.extract_strided_slice %39 {offsets = [192, 0], sizes = [64, 256], strides = [1, 1]} : vector<256x256xf32> to vector<64x256xf32>
    %46 = arith.addf %44, %45 : vector<64x256xf32>
    %cst_30 = arith.constant 2.500000e-01 : f32
    %47 = vector.broadcast %cst_30 : f32 to vector<64x256xf32>
    %48 = arith.mulf %46, %47 : vector<64x256xf32>
    %c0_31 = arith.constant 0 : index
    %c0_32 = arith.constant 0 : index
    %49 = vector.load %arg2[%c0_31, %c0_32] : memref<64x128xbf16, #tpu.memory_space<vmem>>, vector<64x128xbf16>
    %c0_33 = arith.constant 0 : index
    %c0_34 = arith.constant 0 : index
    %50 = vector.load %arg13[%c0_33, %c0_34] : memref<128x256xbf16, #tpu.memory_space<vmem>>, vector<128x256xbf16>
    %cst_35 = arith.constant dense<0.000000e+00> : vector<64x256xf32>
    %51 = tpu.matmul %49, %50, %cst_35 {dimension_numbers = #tpu.dot_dimension_numbers<[1], [0], [0], [1], [0, 0, 1, 1], [], []>} : vector<64x128xbf16>, vector<128x256xbf16>, vector<64x256xf32> -> vector<64x256xf32>
    %52 = arith.truncf %48 : vector<64x256xf32> to vector<64x256xbf16>
    %c0_36 = arith.constant 0 : index
    %c0_37 = arith.constant 0 : index
    %53 = vector.load %arg14[%c0_36, %c0_37] : memref<256x256xbf16, #tpu.memory_space<vmem>>, vector<256x256xbf16>
    %cst_38 = arith.constant dense<0.000000e+00> : vector<64x256xf32>
    %54 = tpu.matmul %52, %53, %cst_38 {dimension_numbers = #tpu.dot_dimension_numbers<[1], [0], [0], [1], [0, 0, 1, 1], [], []>} : vector<64x256xbf16>, vector<256x256xbf16>, vector<64x256xf32> -> vector<64x256xf32>
    %55 = arith.addf %51, %54 : vector<64x256xf32>
    %c0_39 = arith.constant 0 : index
    %c0_40 = arith.constant 0 : index
    %56 = vector.load %arg15[%c0_39, %c0_40] : memref<1x256xf32, #tpu.memory_space<vmem>>, vector<1x256xf32>
    %57 = vector.broadcast %56 : vector<1x256xf32> to vector<64x256xf32>
    %58 = arith.addf %55, %57 : vector<64x256xf32>
    %cst_41 = arith.constant 0.000000e+00 : f32
    %59 = vector.broadcast %cst_41 : f32 to vector<64x256xf32>
    %60 = arith.maximumf %58, %59 : vector<64x256xf32>
    %61 = arith.truncf %60 : vector<64x256xf32> to vector<64x256xbf16>
    %c0_42 = arith.constant 0 : index
    %c0_43 = arith.constant 0 : index
    %62 = vector.load %arg16[%c0_42, %c0_43] : memref<256x256xbf16, #tpu.memory_space<vmem>>, vector<256x256xbf16>
    %cst_44 = arith.constant dense<0.000000e+00> : vector<64x256xf32>
    %63 = tpu.matmul %61, %62, %cst_44 {dimension_numbers = #tpu.dot_dimension_numbers<[1], [0], [0], [1], [0, 0, 1, 1], [], []>} : vector<64x256xbf16>, vector<256x256xbf16>, vector<64x256xf32> -> vector<64x256xf32>
    %c0_45 = arith.constant 0 : index
    %c0_46 = arith.constant 0 : index
    %64 = vector.load %arg17[%c0_45, %c0_46] : memref<1x256xf32, #tpu.memory_space<vmem>>, vector<1x256xf32>
    %65 = vector.broadcast %64 : vector<1x256xf32> to vector<64x256xf32>
    %66 = arith.addf %63, %65 : vector<64x256xf32>
    %cst_47 = arith.constant 0.000000e+00 : f32
    %67 = vector.broadcast %cst_47 : f32 to vector<64x256xf32>
    %68 = arith.maximumf %66, %67 : vector<64x256xf32>
    %69 = arith.truncf %68 : vector<64x256xf32> to vector<64x256xbf16>
    %c0_48 = arith.constant 0 : index
    %c0_49 = arith.constant 0 : index
    %70 = vector.load %arg18[%c0_48, %c0_49] : memref<256x256xbf16, #tpu.memory_space<vmem>>, vector<256x256xbf16>
    %cst_50 = arith.constant dense<0.000000e+00> : vector<64x256xf32>
    %71 = tpu.matmul %69, %70, %cst_50 {dimension_numbers = #tpu.dot_dimension_numbers<[1], [0], [0], [1], [0, 0, 1, 1], [], []>} : vector<64x256xbf16>, vector<256x256xbf16>, vector<64x256xf32> -> vector<64x256xf32>
    %c0_51 = arith.constant 0 : index
    %c0_52 = arith.constant 0 : index
    %72 = vector.load %arg19[%c0_51, %c0_52] : memref<1x256xf32, #tpu.memory_space<vmem>>, vector<1x256xf32>
    %73 = vector.broadcast %72 : vector<1x256xf32> to vector<64x256xf32>
    %74 = arith.addf %71, %73 : vector<64x256xf32>
    %cst_53 = arith.constant 0.000000e+00 : f32
    %75 = vector.broadcast %cst_53 : f32 to vector<64x256xf32>
    %76 = arith.maximumf %74, %75 : vector<64x256xf32>
    %77 = arith.truncf %76 : vector<64x256xf32> to vector<64x256xbf16>
    %c0_54 = arith.constant 0 : index
    %c0_55 = arith.constant 0 : index
    %78 = vector.load %arg20[%c0_54, %c0_55] : memref<256x1xbf16, #tpu.memory_space<vmem>>, vector<256x1xbf16>
    %cst_56 = arith.constant dense<0.000000e+00> : vector<64x1xf32>
    %79 = tpu.matmul %77, %78, %cst_56 {dimension_numbers = #tpu.dot_dimension_numbers<[1], [0], [0], [1], [0, 0, 1, 1], [], []>} : vector<64x256xbf16>, vector<256x1xbf16>, vector<64x1xf32> -> vector<64x1xf32>
    %c0_57 = arith.constant 0 : index
    %c0_58 = arith.constant 0 : index
    %80 = vector.load %arg21[%c0_57, %c0_58] : memref<1x1xf32, #tpu.memory_space<vmem>>, vector<1x1xf32>
    %81 = vector.broadcast %80 : vector<1x1xf32> to vector<64x1xf32>
    %82 = arith.addf %79, %81 : vector<64x1xf32>
    %c0_59 = arith.constant 0 : index
    %c0_60 = arith.constant 0 : index
    %83 = vector.load %arg22[%c0_59, %c0_60] : memref<128x64xbf16, #tpu.memory_space<vmem>>, vector<128x64xbf16>
    %cst_61 = arith.constant dense<0.000000e+00> : vector<64x64xf32>
    %84 = tpu.matmul %49, %83, %cst_61 {dimension_numbers = #tpu.dot_dimension_numbers<[1], [0], [0], [1], [0, 0, 1, 1], [], []>} : vector<64x128xbf16>, vector<128x64xbf16>, vector<64x64xf32> -> vector<64x64xf32>
    %85 = arith.truncf %48 : vector<64x256xf32> to vector<64x256xbf16>
    %c0_62 = arith.constant 0 : index
    %c0_63 = arith.constant 0 : index
    %86 = vector.load %arg23[%c0_62, %c0_63] : memref<256x64xbf16, #tpu.memory_space<vmem>>, vector<256x64xbf16>
    %cst_64 = arith.constant dense<0.000000e+00> : vector<64x64xf32>
    %87 = tpu.matmul %85, %86, %cst_64 {dimension_numbers = #tpu.dot_dimension_numbers<[1], [0], [0], [1], [0, 0, 1, 1], [], []>} : vector<64x256xbf16>, vector<256x64xbf16>, vector<64x64xf32> -> vector<64x64xf32>
    %88 = arith.addf %84, %87 : vector<64x64xf32>
    %c0_65 = arith.constant 0 : index
    %c0_66 = arith.constant 0 : index
    %89 = vector.load %arg24[%c0_65, %c0_66] : memref<1x64xf32, #tpu.memory_space<vmem>>, vector<1x64xf32>
    %90 = vector.broadcast %89 : vector<1x64xf32> to vector<64x64xf32>
    %91 = arith.addf %88, %90 : vector<64x64xf32>
    %cst_67 = arith.constant 0.000000e+00 : f32
    %92 = vector.broadcast %cst_67 : f32 to vector<64x64xf32>
    %93 = arith.maximumf %91, %92 : vector<64x64xf32>
    %94 = arith.truncf %93 : vector<64x64xf32> to vector<64x64xbf16>
    %c0_68 = arith.constant 0 : index
    %c0_69 = arith.constant 0 : index
    %95 = vector.load %arg25[%c0_68, %c0_69] : memref<64x32xbf16, #tpu.memory_space<vmem>>, vector<64x32xbf16>
    %cst_70 = arith.constant dense<0.000000e+00> : vector<64x32xf32>
    %96 = tpu.matmul %94, %95, %cst_70 {dimension_numbers = #tpu.dot_dimension_numbers<[1], [0], [0], [1], [0, 0, 1, 1], [], []>} : vector<64x64xbf16>, vector<64x32xbf16>, vector<64x32xf32> -> vector<64x32xf32>
    %c0_71 = arith.constant 0 : index
    %c0_72 = arith.constant 0 : index
    %97 = vector.load %arg26[%c0_71, %c0_72] : memref<1x32xf32, #tpu.memory_space<vmem>>, vector<1x32xf32>
    %98 = vector.broadcast %97 : vector<1x32xf32> to vector<64x32xf32>
    %99 = arith.addf %96, %98 : vector<64x32xf32>
    %cst_73 = arith.constant 0.000000e+00 : f32
    %100 = vector.broadcast %cst_73 : f32 to vector<64x32xf32>
    %101 = arith.maximumf %99, %100 : vector<64x32xf32>
    %102 = arith.truncf %101 : vector<64x32xf32> to vector<64x32xbf16>
    %c0_74 = arith.constant 0 : index
    %c0_75 = arith.constant 0 : index
    %103 = vector.load %arg27[%c0_74, %c0_75] : memref<32x16xbf16, #tpu.memory_space<vmem>>, vector<32x16xbf16>
    %cst_76 = arith.constant dense<0.000000e+00> : vector<64x16xf32>
    %104 = tpu.matmul %102, %103, %cst_76 {dimension_numbers = #tpu.dot_dimension_numbers<[1], [0], [0], [1], [0, 0, 1, 1], [], []>} : vector<64x32xbf16>, vector<32x16xbf16>, vector<64x16xf32> -> vector<64x16xf32>
    %c0_77 = arith.constant 0 : index
    %c0_78 = arith.constant 0 : index
    %105 = vector.load %arg28[%c0_77, %c0_78] : memref<1x16xf32, #tpu.memory_space<vmem>>, vector<1x16xf32>
    %106 = vector.broadcast %105 : vector<1x16xf32> to vector<64x16xf32>
    %107 = arith.addf %104, %106 : vector<64x16xf32>
    %cst_79 = arith.constant 0.000000e+00 : f32
    %108 = vector.broadcast %cst_79 : f32 to vector<64x16xf32>
    %109 = arith.maximumf %107, %108 : vector<64x16xf32>
    %110 = arith.truncf %109 : vector<64x16xf32> to vector<64x16xbf16>
    %c0_80 = arith.constant 0 : index
    %c0_81 = arith.constant 0 : index
    %111 = vector.load %arg29[%c0_80, %c0_81] : memref<16x3xbf16, #tpu.memory_space<vmem>>, vector<16x3xbf16>
    %cst_82 = arith.constant dense<0.000000e+00> : vector<64x3xf32>
    %112 = tpu.matmul %110, %111, %cst_82 {dimension_numbers = #tpu.dot_dimension_numbers<[1], [0], [0], [1], [0, 0, 1, 1], [], []>} : vector<64x16xbf16>, vector<16x3xbf16>, vector<64x3xf32> -> vector<64x3xf32>
    %c0_83 = arith.constant 0 : index
    %c0_84 = arith.constant 0 : index
    %113 = vector.load %arg30[%c0_83, %c0_84] : memref<1x3xf32, #tpu.memory_space<vmem>>, vector<1x3xf32>
    %114 = vector.broadcast %113 : vector<1x3xf32> to vector<64x3xf32>
    %115 = arith.addf %112, %114 : vector<64x3xf32>
    %c0_85 = arith.constant 0 : index
    %c0_86 = arith.constant 0 : index
    %116 = vector.load %arg31[%c0_85, %c0_86] : memref<64x3xf32, #tpu.memory_space<vmem>>, vector<64x3xf32>
    tpu.vector_store %arg31[%c0_85, %c0_86], %115 {strides = array<i32>} : memref<64x3xf32, #tpu.memory_space<vmem>>, vector<64x3xf32>,
    %c0_87 = arith.constant 0 : index
    %c0_88 = arith.constant 0 : index
    %117 = vector.load %arg32[%c0_87, %c0_88] : memref<64x1xf32, #tpu.memory_space<vmem>>, vector<64x1xf32>
    tpu.vector_store %arg32[%c0_87, %c0_88], %82 {strides = array<i32>} : memref<64x1xf32, #tpu.memory_space<vmem>>, vector<64x1xf32>,
    return
  }
  func.func @transform_0(%arg0: i32) -> (i32, i32) {
    %c0_i32 = arith.constant 0 : i32
    %c0_i32_0 = arith.constant 0 : i32
    return %arg0, %c0_i32 : i32, i32
  }
  func.func @transform_1(%arg0: i32) -> (i32, i32) {
    %c0_i32 = arith.constant 0 : i32
    %c0_i32_0 = arith.constant 0 : i32
    return %arg0, %c0_i32 : i32, i32
  }
  func.func @transform_2(%arg0: i32) -> (i32, i32) {
    %c0_i32 = arith.constant 0 : i32
    %c0_i32_0 = arith.constant 0 : i32
    %c0_i32_1 = arith.constant 0 : i32
    return %c0_i32, %c0_i32_0 : i32, i32
  }
  func.func @transform_3(%arg0: i32) -> (i32, i32) {
    %c0_i32 = arith.constant 0 : i32
    %c0_i32_0 = arith.constant 0 : i32
    %c0_i32_1 = arith.constant 0 : i32
    return %c0_i32, %c0_i32_0 : i32, i32
  }
  func.func @transform_4(%arg0: i32) -> (i32, i32) {
    %c0_i32 = arith.constant 0 : i32
    %c0_i32_0 = arith.constant 0 : i32
    %c0_i32_1 = arith.constant 0 : i32
    return %c0_i32, %c0_i32_0 : i32, i32
  }
  func.func @transform_5(%arg0: i32) -> (i32, i32) {
    %c0_i32 = arith.constant 0 : i32
    %c0_i32_0 = arith.constant 0 : i32
    %c0_i32_1 = arith.constant 0 : i32
    return %c0_i32, %c0_i32_0 : i32, i32
  }
  func.func @transform_6(%arg0: i32) -> (i32, i32) {
    %c0_i32 = arith.constant 0 : i32
    %c0_i32_0 = arith.constant 0 : i32
    %c0_i32_1 = arith.constant 0 : i32
    return %c0_i32, %c0_i32_0 : i32, i32
  }
  func.func @transform_7(%arg0: i32) -> (i32, i32) {
    %c0_i32 = arith.constant 0 : i32
    %c0_i32_0 = arith.constant 0 : i32
    %c0_i32_1 = arith.constant 0 : i32
    return %c0_i32, %c0_i32_0 : i32, i32
  }
  func.func @transform_8(%arg0: i32) -> (i32, i32) {
    %c0_i32 = arith.constant 0 : i32
    %c0_i32_0 = arith.constant 0 : i32
    %c0_i32_1 = arith.constant 0 : i32
    return %c0_i32, %c0_i32_0 : i32, i32
  }
  func.func @transform_9(%arg0: i32) -> (i32, i32) {
    %c0_i32 = arith.constant 0 : i32
    %c0_i32_0 = arith.constant 0 : i32
    %c0_i32_1 = arith.constant 0 : i32
    return %c0_i32, %c0_i32_0 : i32, i32
  }
  func.func @transform_10(%arg0: i32) -> (i32, i32) {
    %c0_i32 = arith.constant 0 : i32
    %c0_i32_0 = arith.constant 0 : i32
    %c0_i32_1 = arith.constant 0 : i32
    return %c0_i32, %c0_i32_0 : i32, i32
  }
  func.func @transform_11(%arg0: i32) -> (i32, i32) {
    %c0_i32 = arith.constant 0 : i32
    %c0_i32_0 = arith.constant 0 : i32
    %c0_i32_1 = arith.constant 0 : i32
    return %c0_i32, %c0_i32_0 : i32, i32
  }
  func.func @transform_12(%arg0: i32) -> (i32, i32) {
    %c0_i32 = arith.constant 0 : i32
    %c0_i32_0 = arith.constant 0 : i32
    %c0_i32_1 = arith.constant 0 : i32
    return %c0_i32, %c0_i32_0 : i32, i32
  }
  func.func @transform_13(%arg0: i32) -> (i32, i32) {
    %c0_i32 = arith.constant 0 : i32
    %c0_i32_0 = arith.constant 0 : i32
    %c0_i32_1 = arith.constant 0 : i32
    return %c0_i32, %c0_i32_0 : i32, i32
  }
  func.func @transform_14(%arg0: i32) -> (i32, i32) {
    %c0_i32 = arith.constant 0 : i32
    %c0_i32_0 = arith.constant 0 : i32
    %c0_i32_1 = arith.constant 0 : i32
    return %c0_i32, %c0_i32_0 : i32, i32
  }
  func.func @transform_15(%arg0: i32) -> (i32, i32) {
    %c0_i32 = arith.constant 0 : i32
    %c0_i32_0 = arith.constant 0 : i32
    %c0_i32_1 = arith.constant 0 : i32
    return %c0_i32, %c0_i32_0 : i32, i32
  }
  func.func @transform_16(%arg0: i32) -> (i32, i32) {
    %c0_i32 = arith.constant 0 : i32
    %c0_i32_0 = arith.constant 0 : i32
    %c0_i32_1 = arith.constant 0 : i32
    return %c0_i32, %c0_i32_0 : i32, i32
  }
  func.func @transform_17(%arg0: i32) -> (i32, i32) {
    %c0_i32 = arith.constant 0 : i32
    %c0_i32_0 = arith.constant 0 : i32
    %c0_i32_1 = arith.constant 0 : i32
    return %c0_i32, %c0_i32_0 : i32, i32
  }
  func.func @transform_18(%arg0: i32) -> (i32, i32) {
    %c0_i32 = arith.constant 0 : i32
    %c0_i32_0 = arith.constant 0 : i32
    %c0_i32_1 = arith.constant 0 : i32
    return %c0_i32, %c0_i32_0 : i32, i32
  }
  func.func @transform_19(%arg0: i32) -> (i32, i32) {
    %c0_i32 = arith.constant 0 : i32
    %c0_i32_0 = arith.constant 0 : i32
    %c0_i32_1 = arith.constant 0 : i32
    return %c0_i32, %c0_i32_0 : i32, i32
  }
  func.func @transform_20(%arg0: i32) -> (i32, i32) {
    %c0_i32 = arith.constant 0 : i32
    %c0_i32_0 = arith.constant 0 : i32
    %c0_i32_1 = arith.constant 0 : i32
    return %c0_i32, %c0_i32_0 : i32, i32
  }
  func.func @transform_21(%arg0: i32) -> (i32, i32) {
    %c0_i32 = arith.constant 0 : i32
    %c0_i32_0 = arith.constant 0 : i32
    %c0_i32_1 = arith.constant 0 : i32
    return %c0_i32, %c0_i32_0 : i32, i32
  }
  func.func @transform_22(%arg0: i32) -> (i32, i32) {
    %c0_i32 = arith.constant 0 : i32
    %c0_i32_0 = arith.constant 0 : i32
    %c0_i32_1 = arith.constant 0 : i32
    return %c0_i32, %c0_i32_0 : i32, i32
  }
  func.func @transform_23(%arg0: i32) -> (i32, i32) {
    %c0_i32 = arith.constant 0 : i32
    %c0_i32_0 = arith.constant 0 : i32
    %c0_i32_1 = arith.constant 0 : i32
    return %c0_i32, %c0_i32_0 : i32, i32
  }
  func.func @transform_24(%arg0: i32) -> (i32, i32) {
    %c0_i32 = arith.constant 0 : i32
    %c0_i32_0 = arith.constant 0 : i32
    %c0_i32_1 = arith.constant 0 : i32
    return %c0_i32, %c0_i32_0 : i32, i32
  }
  func.func @transform_25(%arg0: i32) -> (i32, i32) {
    %c0_i32 = arith.constant 0 : i32
    %c0_i32_0 = arith.constant 0 : i32
    %c0_i32_1 = arith.constant 0 : i32
    return %c0_i32, %c0_i32_0 : i32, i32
  }
  func.func @transform_26(%arg0: i32) -> (i32, i32) {
    %c0_i32 = arith.constant 0 : i32
    %c0_i32_0 = arith.constant 0 : i32
    %c0_i32_1 = arith.constant 0 : i32
    return %c0_i32, %c0_i32_0 : i32, i32
  }
  func.func @transform_27(%arg0: i32) -> (i32, i32) {
    %c0_i32 = arith.constant 0 : i32
    %c0_i32_0 = arith.constant 0 : i32
    %c0_i32_1 = arith.constant 0 : i32
    return %c0_i32, %c0_i32_0 : i32, i32
  }
  func.func @transform_28(%arg0: i32) -> (i32, i32) {
    %c0_i32 = arith.constant 0 : i32
    %c0_i32_0 = arith.constant 0 : i32
    %c0_i32_1 = arith.constant 0 : i32
    return %c0_i32, %c0_i32_0 : i32, i32
  }
  func.func @transform_29(%arg0: i32) -> (i32, i32) {
    %c0_i32 = arith.constant 0 : i32
    %c0_i32_0 = arith.constant 0 : i32
    %c0_i32_1 = arith.constant 0 : i32
    return %c0_i32, %c0_i32_0 : i32, i32
  }
  func.func @transform_30(%arg0: i32) -> (i32, i32) {
    %c0_i32 = arith.constant 0 : i32
    %c0_i32_0 = arith.constant 0 : i32
    return %arg0, %c0_i32 : i32, i32
  }
  func.func @transform_31(%arg0: i32) -> (i32, i32) {
    %c0_i32 = arith.constant 0 : i32
    %c0_i32_0 = arith.constant 0 : i32
    return %arg0, %c0_i32 : i32, i32
  }
}

</mosaic_0001>

<bundles_post_ra>
// kernel: tpu_custom_call.1
= control target key start
LH: loop header
LB: loop body
LE: loop exit
PB: predicated region body
PF: predicated region fallthrough
CT: control target
= control target key end

     0   :  { %s8100_s6 = smov 1   ;;  %s8101_s10 = smov 2   ;;  %s9469_s0 = inlined_call_operand.smem [shape: u32[32], index: -1, kind: input, shape index: {}] }
   0x1   :  { %s8160_s5 = sld [smem:[%s9469_s0]]   ;;  %s8102_s14 = smov 3  }
   0x2   :  { %s8165_s9 = sld [smem:[%s9469_s0 + %s8100_s6]]   ;;  %s8103_s18 = smov 4  }
   0x3   :  { %s8170_s13 = sld [smem:[%s9469_s0 + %s8101_s10]]   ;;  %s8104_s22 = smov 5  }
   0x4   :  { %s8175_s17 = sld [smem:[%s9469_s0 + %s8102_s14]]   ;;  %s8105_s26 = smov 6  }
   0x5   :  { %s8180_s21 = sld [smem:[%s9469_s0 + %s8103_s18]]   ;;  %s8106_s30 = smov 7  }
   0x6   :  { %s8185_s25 = sld [smem:[%s9469_s0 + %s8104_s22]]   ;;  %s8107_s4 = smov 8  }
   0x7   :  { %9495 = sst [smem:[#allocation38_spill]] %s8160_s5  ;;  %s8108_s10 = smov 9  }
   0x8   :  { %9496 = sst [smem:[#allocation39_spill]] %s8165_s9  ;;  %s8109_s15 = smov 10  }
   0x9   :  { %9497 = sst [smem:[#allocation40_spill]] %s8170_s13  ;;  %s8110_s20 = smov 11  }
   0xa   :  { %9498 = sst [smem:[#allocation41_spill]] %s8175_s17  ;;  %s8112_s1 = smov 13  }
   0xb   :  { %9499 = sst [smem:[#allocation42_spill]] %s8180_s21  ;;  %s8113_s7 = smov 14  }
   0xc   :  { %9500 = sst [smem:[#allocation43_spill]] %s8185_s25  ;;  %s8115_s22 = smov 16  }
   0xd   :  { %s8190_s29 = sld [smem:[%s9469_s0 + %s8105_s26]]   ;;  %s8111_s26 = smov 12  }
   0xe   :  { %s8195_s3 = sld [smem:[%s9469_s0 + %s8106_s30]]   ;;  %s8116_s28 = smov 17  }
   0xf   :  { %s8200_s8 = sld [smem:[%s9469_s0 + %s8107_s4]]   ;;  %s8122_s16 = smov 23  }
  0x10   :  { %s8205_s14 = sld [smem:[%s9469_s0 + %s8108_s10]]   ;;  %s8121_s10 = smov 22  }
  0x11   :  { %s8210_s19 = sld [smem:[%s9469_s0 + %s8109_s15]]   ;;  %s8114_s15 = smov 15  }
  0x12   :  { %s8215_s24 = sld [smem:[%s9469_s0 + %s8110_s20]]   ;;  %s8123_s23 = smov 24  }
  0x13   :  { %9501 = sst [smem:[#allocation44_spill]] %s8190_s29 }
  0x14   :  { %9502 = sst [smem:[#allocation45_spill]] %s8195_s3 }
  0x15   :  { %9503 = sst [smem:[#allocation46_spill]] %s8200_s8 }
  0x16   :  { %9504 = sst [smem:[#allocation47_spill]] %s8205_s14 }
  0x17   :  { %9505 = sst [smem:[#allocation48_spill]] %s8210_s19 }
  0x18   :  { %s8220_s30 = sld [smem:[%s9469_s0 + %s8111_s26]]  }
  0x19   :  { %s8225_s6 = sld [smem:[%s9469_s0 + %s8112_s1]]   ;;  %s8120_s1 = smov 21  }
  0x1a   :  { %s8230_s12 = sld [smem:[%s9469_s0 + %s8113_s7]]   ;;  %s8117_s7 = smov 18  }
  0x1b   :  { %s8235_s20 = sld [smem:[%s9469_s0 + %s8114_s15]]   ;;  %s8118_s15 = smov 19  }
  0x1c   :  { %s8240_s27 = sld [smem:[%s9469_s0 + %s8115_s22]]   ;;  %s8119_s22 = smov 20  }
  0x1d   :  { %s8245_s4 = sld [smem:[%s9469_s0 + %s8116_s28]]   ;;  %s8128_s28 = smov 29  }
  0x1e   :  { %s8250_s17 = sld [smem:[%s9469_s0 + %s8117_s7]]  }
  0x1f   :  { %9506 = sst [smem:[#allocation49_spill]] %s8225_s6 }
  0x20   :  { %9507 = sst [smem:[#allocation50_spill]] %s8230_s12 }
  0x21   :  { %s8255_s21 = sld [smem:[%s9469_s0 + %s8118_s15]]  }
  0x22   :  { %s6224_s13 = sld [smem:[%s9469_s0 + %s8119_s22]]  }
  0x23   :  { %9508 = sst [smem:[#allocation51_spill]] %s8245_s4 }
  0x24   :  { %9509 = sst [smem:[#allocation52_spill]] %s8250_s17 }
  0x25   :  { %s8263_s9 = sld [smem:[%s9469_s0 + %s8120_s1]]   ;;  %s8124_s1 = smov 25  }
  0x26   :  { %s8268_s5 = sld [smem:[%s9469_s0 + %s8121_s10]]   ;;  %s8125_s10 = smov 26  }
  0x27   :  { %9510 = sst [smem:[#allocation53_spill]] %s8255_s21 }
  0x28   :  { %s8273_s21 = sld [smem:[%s9469_s0 + %s8122_s16]]   ;;  %v69_v0 = vstv %s6224_s13  ;;  %s8126_s16 = smov 27  }
  0x29   :  { %s8278_s17 = sld [smem:[%s9469_s0 + %s8123_s23]]   ;;  %70 = vst [vmem:[#allocation2] sm:$0x1] %v69_v0  ;;  %s8127_s23 = smov 28  }
  0x2a   :  { %s8293_s22 = sld [smem:[%s9469_s0 + %s8126_s16]]   ;;  %s8129_s13 = smov 30  }
  0x2b   :  { %9511 = sst [smem:[#allocation54_spill]] %s8263_s9  ;;  %s8130_s16 = smov 31  }
  0x2c   :  { %9512 = sst [smem:[#allocation55_spill]] %s8268_s5 }
  0x2d   :  { %s8283_s9 = sld [smem:[%s9469_s0 + %s8124_s1]]  }
  0x2e   :  { %9513 = sst [smem:[#allocation56_spill]] %s8273_s21 }
  0x2f   :  { %s8288_s5 = sld [smem:[%s9469_s0 + %s8125_s10]]  }
  0x30   :  { %9516 = sst [smem:[#allocation59_spill]] %s8293_s22 }
  0x31   :  { %s8298_s1 = sld [smem:[%s9469_s0 + %s8127_s23]]  }
  0x32   :  { %s8303_s10 = sld [smem:[%s9469_s0 + %s8128_s28]]  }
  0x33   :  { %9514 = sst [smem:[#allocation57_spill]] %s8283_s9 }
  0x34   :  { %s8308_s15 = sld [smem:[%s9469_s0 + %s8129_s13]]  }
  0x35   :  { %9515 = sst [smem:[#allocation58_spill]] %s8288_s5 }
  0x36   :  { %s8313_s5 = sld [smem:[%s9469_s0 + %s8130_s16]]  }
  0x38   :  { %9517 = sst [smem:[#allocation60_spill]] %s8303_s10 }
  0x3a   :  { %9518 = sst [smem:[#allocation61_spill]] %s8308_s15 }
  0x3b   :  { %71 = vsyncpa [#allocation4], 0 }
  0x3c   :  { %73 = vsyncpa [#allocation4 + $0x1], 0 }
  0x3d   :  { %74 = vsyncpa [#allocation6], 0 }
  0x3e   :  { %76 = vsyncpa [#allocation6 + $0x1], 0 }
  0x3f   :  { %77 = vsyncpa [#allocation9], 0 }
  0x40   :  { %78 = vsyncpa [#allocation12], 0 }
  0x41   :  { %79 = vsyncpa [#allocation15], 0 }
  0x42   :  { %80 = vsyncpa [#allocation18], 0 }
  0x43   :  { %81 = vsyncpa [#allocation21], 0 }
  0x44   :  { %82 = vsyncpa [#allocation24], 0 }
  0x45   :  { %83 = vsyncpa [#allocation27], 0  ;;  %s8315_s9 = smov 0   ;;  %s8317_s21 = smov 0  }
  0x46   :  { %s8319_s23 = smov 0   ;;  %s8321_s22 = smov 0  }
  0x47 LB: > { %s9519_s19 = sld [smem:[#allocation48_spill]]  ;;  %s9520_s14 = sld [smem:[#allocation47_spill]]  ;;  %s8086_s9 = sphi %s8315_s9, %s9572_s9   ;;  %s8098_s22 = sphi %s8321_s22, %s9575_s22   ;;  %s8094_s23 = sphi %s8319_s23, %s9574_s23   ;;  %s8090_s21 = sphi %s8317_s21, %s9573_s21  }
  0x48   : > { %s9521_s12 = sld [smem:[#allocation50_spill]]  ;;  %s9522_s8 = sld [smem:[#allocation46_spill]] }
  0x49   : > { %s9523_s6 = sld [smem:[#allocation49_spill]]  ;;  %s9524_s4 = sld [smem:[#allocation51_spill]] }
  0x4a   : > { %s9525_s3 = sld [smem:[#allocation45_spill]]  ;;  %s9526_s29 = sld [smem:[#allocation44_spill]] }
  0x4b   : > { %s9527_s25 = sld [smem:[#allocation43_spill]]  ;;  %s8131_s0 = smov [#allocation7]  }
  0x4c   : > { %s808_s26 = sshll.u32 %s8131_s0, 4  ;;  %s8336_s28 = sadd.s32 4294967295, %s8098_s22   ;;  %s809_s26 = int_to_ptr.vmem [resolvable:$true] %s808_s26 }
  0x4d   : > { %p6238_p0 = scmp.ge.s32.totalorder %s8098_s22, 1  ;;  %p9479_p1 = scmp.eq.s32.totalorder %s8336_s28, 0 }
  0x4e   : > { %p786_p2 = scmp.lt.s32.totalorder %s8098_s22, 5  ;;  %s8132_s13 = smov [#allocation8]  }
  0x4f   : > { %s818_s7 = sshll.u32 %s8132_s13, 4  ;;  %s8133_s16 = smov [#allocation11]   ;;  %s8347_s7 = int_to_ptr.vmem [resolvable:$true] %s818_s7 }
  0x50   : > { %p8341_p3 = pnand %p6238_p0, %p786_p2  ;;  %s842_s18 = sshll.u32 %s8133_s16, 4  ;;  %s8355_s18 = int_to_ptr.vmem [resolvable:$true] %s842_s18 }
  0x51   : > { %s7576_s0 = scalar_lea.hbm %s9527_s25, 32 }
  0x52   : > { %s9528_s2 = scalar_select %p8341_p3, 1, 0 }
  0x53   : > { %p6908_p4 = pneg %p8341_p3  ;;  %p7577_p6 = scmp.ne.s32.totalorder %s9527_s25, %s7576_s0 }
  0x54   : > { %p7583_p10 = scmp.lt.u32.totalorder %s7576_s0, %s9527_s25 }
  0x55   : > { %p8351_p5 = pnand %p6908_p4, %p9479_p1 }
  0x57   : > { %p8361_p7 = pneg %p8351_p5 }
  0x59   : > { %p7579_p8 = pnand %p8361_p7, %p7577_p6 }
  0x5b   : > { %p7580_p9 = pneg %p7579_p8 }
  0x5d   : > { %p7585_p11 = pnand %p7583_p10, %p7580_p9 }
  0x5f   : > { %7588 = shalt.err (!%p7585_p11)
}
  0x60   : > { %s7589_s13 = scalar_lea.vmem %s809_s26, 32  ;;  %p7597_p2 = scmp.lt.s32.totalorder %s809_s26, %s809_s26 }
  0x61   : > { %p7590_p12 = scmp.ne.s32.totalorder %s809_s26, %s7589_s13  ;;  %p7598_p4 = scmp.lt.s32.totalorder %s7589_s13, %s7589_s13 }
  0x63   : > { %p7592_p13 = pnand %p7590_p12, %p8361_p7  ;;  %p7599_p1 = por %p7598_p4, %p7597_p2 }
  0x65   : > { %p7593_p0 = pneg %p7592_p13 }
  0x67   : > { %p7600_p3 = pnand %p7599_p1, %p7593_p0 }
  0x69   : > { %7603 = shalt.err (!%p7600_p3)
}
  0x6a   : > { %6911 = dma.hbm_to_vmem [thread:$0]  (!%p8351_p5), %s9527_s25, 32, %s809_s26, [#allocation6]  }
  0x6b   : > { %s7604_s16 = scalar_lea.hbm %s9526_s29, 4096 }
  0x6c   : > { %p7605_p6 = scmp.ne.s32.totalorder %s9526_s29, %s7604_s16  ;;  %p7611_p10 = scmp.lt.u32.totalorder %s7604_s16, %s9526_s29 }
  0x6e   : > { %p7607_p8 = pnand %p7605_p6, %p8361_p7 }
  0x70   : > { %p7608_p9 = pneg %p7607_p8 }
  0x72   : > { %p7613_p11 = pnand %p7611_p10, %p7608_p9 }
  0x74   : > { %7616 = shalt.err (!%p7613_p11)
}
  0x75   : > { %s7617_s0 = scalar_lea.vmem %s8347_s7, 4096  ;;  %p7625_p13 = scmp.lt.s32.totalorder %s8347_s7, %s8347_s7 }
  0x76   : > { %p7618_p1 = scmp.ne.s32.totalorder %s8347_s7, %s7617_s0  ;;  %p7626_p0 = scmp.lt.s32.totalorder %s7617_s0, %s7617_s0 }
  0x78   : > { %p7620_p3 = pnand %p7618_p1, %p8361_p7  ;;  %p7627_p2 = por %p7626_p0, %p7625_p13 }
  0x7a   : > { %p7621_p12 = pneg %p7620_p3 }
  0x7c   : > { %p7628_p4 = pnand %p7627_p2, %p7621_p12 }
  0x7e   : > { %7631 = shalt.err (!%p7628_p4)
}
  0x7f   : > { %s9483_s26 = smov 128   ;;  %s9484_s13 = smov 8  }
  0x80   : > { %6914 = dma.hbm_to_vmem [thread:$0]  (!%p8351_p5), %s9526_s29, 4096, %s8347_s7, [#allocation9], %s9483_s26, %s9483_s26, %s9484_s13  }
  0x81   : > { %s7632_s16 = scalar_lea.hbm %s9522_s8, 4096 }
  0x82   : > { %p7633_p6 = scmp.ne.s32.totalorder %s9522_s8, %s7632_s16  ;;  %p7639_p10 = scmp.lt.u32.totalorder %s7632_s16, %s9522_s8 }
  0x84   : > { %p7635_p8 = pnand %p7633_p6, %p8361_p7 }
  0x86   : > { %p7636_p9 = pneg %p7635_p8 }
  0x88   : > { %p7641_p11 = pnand %p7639_p10, %p7636_p9 }
  0x8a   : > { %7644 = shalt.err (!%p7641_p11)
}
  0x8b   : > { %s7645_s0 = scalar_lea.vmem %s8355_s18, 4096  ;;  %p7653_p13 = scmp.lt.s32.totalorder %s8355_s18, %s8355_s18 }
  0x8c   : > { %p7646_p1 = scmp.ne.s32.totalorder %s8355_s18, %s7645_s0  ;;  %p7654_p0 = scmp.lt.s32.totalorder %s7645_s0, %s7645_s0 }
  0x8e   : > { %p7648_p3 = pnand %p7646_p1, %p8361_p7  ;;  %p7655_p2 = por %p7654_p0, %p7653_p13 }
  0x90   : > { %p7649_p12 = pneg %p7648_p3 }
  0x92   : > { %p7656_p4 = pnand %p7655_p2, %p7649_p12 }
  0x94   : > { %7659 = shalt.err (!%p7656_p4)
}
  0x95   : > { %6920 = dma.hbm_to_vmem [thread:$0]  (!%p8351_p5), %s9522_s8, 4096, %s8355_s18, [#allocation12], %s9483_s26, %s9483_s26, %s9484_s13  }
  0x96   : > { %s8136_s7 = smov [#allocation14]   ;;  %s8137_s25 = smov [#allocation17]  }
  0x97   : > { %s866_s16 = sshll.u32 %s8136_s7, 4  ;;  %s890_s0 = sshll.u32 %s8137_s25, 4  ;;  %s867_s16 = int_to_ptr.vmem [resolvable:$true] %s866_s16  ;;  %s891_s0 = int_to_ptr.vmem [resolvable:$true] %s890_s0 }
  0x98   : > { %s7660_s29 = scalar_lea.hbm %s9519_s19, 4096 }
  0x99   : > { %p7661_p6 = scmp.ne.s32.totalorder %s9519_s19, %s7660_s29  ;;  %p7667_p10 = scmp.lt.u32.totalorder %s7660_s29, %s9519_s19 }
  0x9b   : > { %p7663_p8 = pnand %p7661_p6, %p8361_p7 }
  0x9d   : > { %p7664_p9 = pneg %p7663_p8 }
  0x9f   : > { %p7669_p11 = pnand %p7667_p10, %p7664_p9 }
  0xa1   : > { %7672 = shalt.err (!%p7669_p11)
}
  0xa2   : > { %s7673_s10 = scalar_lea.vmem %s867_s16, 4096  ;;  %p7681_p13 = scmp.lt.s32.totalorder %s867_s16, %s867_s16 }
  0xa3   : > { %p7674_p1 = scmp.ne.s32.totalorder %s867_s16, %s7673_s10  ;;  %p7682_p0 = scmp.lt.s32.totalorder %s7673_s10, %s7673_s10 }
  0xa5   : > { %p7676_p3 = pnand %p7674_p1, %p8361_p7  ;;  %p7683_p2 = por %p7682_p0, %p7681_p13 }
  0xa7   : > { %p7677_p12 = pneg %p7676_p3 }
  0xa9   : > { %p7684_p4 = pnand %p7683_p2, %p7677_p12 }
  0xab   : > { %7687 = shalt.err (!%p7684_p4)
}
  0xac   : > { %6926 = dma.hbm_to_vmem [thread:$0]  (!%p8351_p5), %s9519_s19, 4096, %s867_s16, [#allocation15], %s9483_s26, %s9483_s26, %s9484_s13  }
  0xad   : > { %s7688_s25 = scalar_lea.hbm %s8220_s30, 2048 }
  0xae   : > { %p7689_p6 = scmp.ne.s32.totalorder %s8220_s30, %s7688_s25  ;;  %p7695_p10 = scmp.lt.u32.totalorder %s7688_s25, %s8220_s30 }
  0xb0   : > { %p7691_p8 = pnand %p7689_p6, %p8361_p7 }
  0xb2   : > { %p7692_p9 = pneg %p7691_p8 }
  0xb4   : > { %p7697_p11 = pnand %p7695_p10, %p7692_p9 }
  0xb6   : > { %7700 = shalt.err (!%p7697_p11)
}
  0xb7   : > { %s7701_s29 = scalar_lea.vmem %s891_s0, 2048  ;;  %p7709_p13 = scmp.lt.s32.totalorder %s891_s0, %s891_s0 }
  0xb8   : > { %p7702_p1 = scmp.ne.s32.totalorder %s891_s0, %s7701_s29  ;;  %p7710_p0 = scmp.lt.s32.totalorder %s7701_s29, %s7701_s29 }
  0xba   : > { %p7704_p3 = pnand %p7702_p1, %p8361_p7  ;;  %p7711_p2 = por %p7710_p0, %p7709_p13 }
  0xbc   : > { %p7705_p12 = pneg %p7704_p3 }
  0xbe   : > { %p7712_p4 = pnand %p7711_p2, %p7705_p12 }
  0xc0   : > { %7715 = shalt.err (!%p7712_p4)
}
  0xc1   : > { %6932 = dma.hbm_to_vmem [thread:$0]  (!%p8351_p5), %s8220_s30, 2048, %s891_s0, [#allocation18], %s9483_s26, %s9483_s26, %s9484_s13  }
  0xc2   : > { %s8138_s10 = smov [#allocation20]   ;;  %s8139_s7 = smov [#allocation23]  }
  0xc3   : > { %s917_s18 = sshll.u32 %s8138_s10, 4  ;;  %s941_s16 = sshll.u32 %s8139_s7, 4  ;;  %s918_s18 = int_to_ptr.vmem [resolvable:$true] %s917_s18  ;;  %s942_s16 = int_to_ptr.vmem [resolvable:$true] %s941_s16 }
  0xc4   : > { %s7716_s25 = scalar_lea.hbm %s9521_s12, 32 }
  0xc5   : > { %p7717_p6 = scmp.ne.s32.totalorder %s9521_s12, %s7716_s25  ;;  %p7723_p10 = scmp.lt.u32.totalorder %s7716_s25, %s9521_s12 }
  0xc7   : > { %p7719_p8 = pnand %p7717_p6, %p8361_p7 }
  0xc9   : > { %p7720_p9 = pneg %p7719_p8 }
  0xcb   : > { %p7725_p11 = pnand %p7723_p10, %p7720_p9 }
  0xcd   : > { %7728 = shalt.err (!%p7725_p11)
}
  0xce   : > { %s7729_s29 = scalar_lea.vmem %s918_s18, 32  ;;  %p7737_p13 = scmp.lt.s32.totalorder %s918_s18, %s918_s18 }
  0xcf   : > { %p7730_p1 = scmp.ne.s32.totalorder %s918_s18, %s7729_s29  ;;  %p7738_p0 = scmp.lt.s32.totalorder %s7729_s29, %s7729_s29 }
  0xd1   : > { %p7732_p3 = pnand %p7730_p1, %p8361_p7  ;;  %p7739_p2 = por %p7738_p0, %p7737_p13 }
  0xd3   : > { %p7733_p12 = pneg %p7732_p3 }
  0xd5   : > { %p7740_p4 = pnand %p7739_p2, %p7733_p12 }
  0xd7   : > { %7743 = shalt.err (!%p7740_p4)
}
  0xd8   : > { %6938 = dma.hbm_to_vmem [thread:$0]  (!%p8351_p5), %s9521_s12, 32, %s918_s18, [#allocation21]  }
  0xd9   : > { %s7744_s0 = scalar_lea.hbm %s8240_s27, 32 }
  0xda   : > { %p7745_p6 = scmp.ne.s32.totalorder %s8240_s27, %s7744_s0  ;;  %p7751_p10 = scmp.lt.u32.totalorder %s7744_s0, %s8240_s27 }
  0xdc   : > { %p7747_p8 = pnand %p7745_p6, %p8361_p7 }
  0xde   : > { %p7748_p9 = pneg %p7747_p8 }
  0xe0   : > { %p7753_p11 = pnand %p7751_p10, %p7748_p9 }
  0xe2   : > { %7756 = shalt.err (!%p7753_p11)
}
  0xe3   : > { %s7757_s10 = scalar_lea.vmem %s942_s16, 32  ;;  %p7765_p13 = scmp.lt.s32.totalorder %s942_s16, %s942_s16 }
  0xe4   : > { %p7758_p1 = scmp.ne.s32.totalorder %s942_s16, %s7757_s10  ;;  %p7766_p0 = scmp.lt.s32.totalorder %s7757_s10, %s7757_s10 }
  0xe6   : > { %p7760_p3 = pnand %p7758_p1, %p8361_p7  ;;  %p7767_p2 = por %p7766_p0, %p7765_p13 }
  0xe8   : > { %p7761_p12 = pneg %p7760_p3 }
  0xea   : > { %p7768_p4 = pnand %p7767_p2, %p7761_p12 }
  0xec   : > { %7771 = shalt.err (!%p7768_p4)
}
  0xed   : > { %6944 = dma.hbm_to_vmem [thread:$0]  (!%p8351_p5), %s8240_s27, 32, %s942_s16, [#allocation24]  }
  0xee   : > { %s8140_s18 = smov [#allocation10]   ;;  %s8141_s25 = smov [#allocation13]  }
  0xef   : > { %s832_s7 = sshll.u32 %s8140_s18, 4  ;;  %s856_s29 = sshll.u32 %s8141_s25, 4  ;;  %s833_s7 = int_to_ptr.vmem [resolvable:$true] %s832_s7  ;;  %s857_s29 = int_to_ptr.vmem [resolvable:$true] %s856_s29 }
  0xf0   : > { %s7772_s0 = scalar_lea.hbm %s9525_s3, 32 }
  0xf1   : > { %p7773_p6 = scmp.ne.s32.totalorder %s9525_s3, %s7772_s0  ;;  %p7779_p10 = scmp.lt.u32.totalorder %s7772_s0, %s9525_s3 }
  0xf3   : > { %p7775_p8 = pnand %p7773_p6, %p8361_p7 }
  0xf5   : > { %p7776_p9 = pneg %p7775_p8 }
  0xf7   : > { %p7781_p11 = pnand %p7779_p10, %p7776_p9 }
  0xf9   : > { %7784 = shalt.err (!%p7781_p11)
}
  0xfa   : > { %s7785_s10 = scalar_lea.vmem %s833_s7, 32  ;;  %p7793_p13 = scmp.lt.s32.totalorder %s833_s7, %s833_s7 }
  0xfb   : > { %p7786_p1 = scmp.ne.s32.totalorder %s833_s7, %s7785_s10  ;;  %p7794_p0 = scmp.lt.s32.totalorder %s7785_s10, %s7785_s10 }
  0xfd   : > { %p7788_p3 = pnand %p7786_p1, %p8361_p7  ;;  %p7795_p2 = por %p7794_p0, %p7793_p13 }
  0xff   : > { %p7789_p12 = pneg %p7788_p3 }
 0x101   : > { %p7796_p4 = pnand %p7795_p2, %p7789_p12 }
 0x103   : > { %7799 = shalt.err (!%p7796_p4)
}
 0x104   : > { %6917 = dma.hbm_to_vmem [thread:$0]  (!%p8351_p5), %s9525_s3, 32, %s833_s7, [#allocation9]  }
 0x105   : > { %s7800_s16 = scalar_lea.hbm %s9520_s14, 32 }
 0x106   : > { %p7801_p6 = scmp.ne.s32.totalorder %s9520_s14, %s7800_s16  ;;  %p7807_p10 = scmp.lt.u32.totalorder %s7800_s16, %s9520_s14 }
 0x108   : > { %p7803_p8 = pnand %p7801_p6, %p8361_p7 }
 0x10a   : > { %p7804_p9 = pneg %p7803_p8 }
 0x10c   : > { %p7809_p11 = pnand %p7807_p10, %p7804_p9 }
 0x10e   : > { %7812 = shalt.err (!%p7809_p11)
}
 0x10f   : > { %s7813_s18 = scalar_lea.vmem %s857_s29, 32  ;;  %p7821_p13 = scmp.lt.s32.totalorder %s857_s29, %s857_s29 }
 0x110   : > { %p7814_p1 = scmp.ne.s32.totalorder %s857_s29, %s7813_s18  ;;  %p7822_p0 = scmp.lt.s32.totalorder %s7813_s18, %s7813_s18 }
 0x112   : > { %p7816_p3 = pnand %p7814_p1, %p8361_p7  ;;  %p7823_p2 = por %p7822_p0, %p7821_p13 }
 0x114   : > { %p7817_p12 = pneg %p7816_p3 }
 0x116   : > { %p7824_p4 = pnand %p7823_p2, %p7817_p12 }
 0x118   : > { %7827 = shalt.err (!%p7824_p4)
}
 0x119   : > { %6923 = dma.hbm_to_vmem [thread:$0]  (!%p8351_p5), %s9520_s14, 32, %s857_s29, [#allocation12]  }
 0x11a   : > { %s8142_s7 = smov [#allocation16]   ;;  %s8143_s0 = smov [#allocation19]  }
 0x11b   : > { %s880_s25 = sshll.u32 %s8142_s7, 4  ;;  %s903_s10 = sshll.u32 %s8143_s0, 4  ;;  %s881_s25 = int_to_ptr.vmem [resolvable:$true] %s880_s25  ;;  %s904_s10 = int_to_ptr.vmem [resolvable:$true] %s903_s10 }
 0x11c   : > { %s7828_s16 = scalar_lea.hbm %s8215_s24, 32 }
 0x11d   : > { %p7829_p6 = scmp.ne.s32.totalorder %s8215_s24, %s7828_s16  ;;  %p7835_p10 = scmp.lt.u32.totalorder %s7828_s16, %s8215_s24 }
 0x11f   : > { %p7831_p8 = pnand %p7829_p6, %p8361_p7 }
 0x121   : > { %p7832_p9 = pneg %p7831_p8 }
 0x123   : > { %p7837_p11 = pnand %p7835_p10, %p7832_p9 }
 0x125   : > { %7840 = shalt.err (!%p7837_p11)
}
 0x126   : > { %s7841_s18 = scalar_lea.vmem %s881_s25, 32  ;;  %p7849_p13 = scmp.lt.s32.totalorder %s881_s25, %s881_s25 }
 0x127   : > { %p7842_p1 = scmp.ne.s32.totalorder %s881_s25, %s7841_s18  ;;  %p7850_p0 = scmp.lt.s32.totalorder %s7841_s18, %s7841_s18 }
 0x129   : > { %p7844_p3 = pnand %p7842_p1, %p8361_p7  ;;  %p7851_p2 = por %p7850_p0, %p7849_p13 }
 0x12b   : > { %p7845_p12 = pneg %p7844_p3 }
 0x12d   : > { %p7852_p4 = pnand %p7851_p2, %p7845_p12 }
 0x12f   : > { %7855 = shalt.err (!%p7852_p4)
}
 0x130   : > { %6929 = dma.hbm_to_vmem [thread:$0]  (!%p8351_p5), %s8215_s24, 32, %s881_s25, [#allocation15]  }
 0x131   : > { %s7856_s29 = scalar_lea.hbm %s9523_s6, 4096 }
 0x132   : > { %p7857_p6 = scmp.ne.s32.totalorder %s9523_s6, %s7856_s29  ;;  %p7863_p10 = scmp.lt.u32.totalorder %s7856_s29, %s9523_s6 }
 0x134   : > { %p7859_p8 = pnand %p7857_p6, %p8361_p7 }
 0x136   : > { %p7860_p9 = pneg %p7859_p8 }
 0x138   : > { %p7865_p11 = pnand %p7863_p10, %p7860_p9 }
 0x13a   : > { %7868 = shalt.err (!%p7865_p11)
}
 0x13b   : > { %s7869_s7 = scalar_lea.vmem %s904_s10, 4096  ;;  %p7877_p13 = scmp.lt.s32.totalorder %s904_s10, %s904_s10 }
 0x13c   : > { %p7870_p1 = scmp.ne.s32.totalorder %s904_s10, %s7869_s7  ;;  %p7878_p0 = scmp.lt.s32.totalorder %s7869_s7, %s7869_s7 }
 0x13e   : > { %p7872_p3 = pnand %p7870_p1, %p8361_p7  ;;  %p7879_p2 = por %p7878_p0, %p7877_p13 }
 0x140   : > { %p7873_p12 = pneg %p7872_p3 }
 0x142   : > { %p7880_p4 = pnand %p7879_p2, %p7873_p12 }
 0x144   : > { %7883 = shalt.err (!%p7880_p4)
}
 0x145   : > { %6935 = dma.hbm_to_vmem [thread:$0]  (!%p8351_p5), %s9523_s6, 4096, %s904_s10, [#allocation18], %s9483_s26, %s9483_s26, %s9484_s13  }
 0x146   : > { %s8144_s25 = smov [#allocation22]   ;;  %s8145_s16 = smov [#allocation25]  }
 0x147   : > { %s927_s0 = sshll.u32 %s8144_s25, 4  ;;  %s951_s18 = sshll.u32 %s8145_s16, 4  ;;  %s928_s0 = int_to_ptr.vmem [resolvable:$true] %s927_s0  ;;  %s952_s18 = int_to_ptr.vmem [resolvable:$true] %s951_s18 }
 0x148   : > { %s7884_s29 = scalar_lea.hbm %s8235_s20, 4096 }
 0x149   : > { %p7885_p6 = scmp.ne.s32.totalorder %s8235_s20, %s7884_s29  ;;  %p7891_p10 = scmp.lt.u32.totalorder %s7884_s29, %s8235_s20 }
 0x14b   : > { %p7887_p8 = pnand %p7885_p6, %p8361_p7 }
 0x14d   : > { %p7888_p9 = pneg %p7887_p8 }
 0x14f   : > { %p7893_p11 = pnand %p7891_p10, %p7888_p9 }
 0x151   : > { %7896 = shalt.err (!%p7893_p11)
}
 0x152   : > { %s7897_s7 = scalar_lea.vmem %s928_s0, 4096  ;;  %p7905_p13 = scmp.lt.s32.totalorder %s928_s0, %s928_s0 }
 0x153   : > { %p7898_p1 = scmp.ne.s32.totalorder %s928_s0, %s7897_s7  ;;  %p7906_p0 = scmp.lt.s32.totalorder %s7897_s7, %s7897_s7 }
 0x155   : > { %p7900_p3 = pnand %p7898_p1, %p8361_p7  ;;  %p7907_p2 = por %p7906_p0, %p7905_p13 }
 0x157   : > { %p7901_p12 = pneg %p7900_p3 }
 0x159   : > { %p7908_p4 = pnand %p7907_p2, %p7901_p12 }
 0x15b   : > { %7911 = shalt.err (!%p7908_p4)
}
 0x15c   : > { %6941 = dma.hbm_to_vmem [thread:$0]  (!%p8351_p5), %s8235_s20, 4096, %s928_s0, [#allocation21], %s9483_s26, %s9483_s26, %s9484_s13  }
 0x15d   : > { %s7912_s10 = scalar_lea.hbm %s9524_s4, 4096 }
 0x15e   : > { %p7913_p6 = scmp.ne.s32.totalorder %s9524_s4, %s7912_s10  ;;  %p7919_p10 = scmp.lt.u32.totalorder %s7912_s10, %s9524_s4 }
 0x160   : > { %p7915_p8 = pnand %p7913_p6, %p8361_p7 }
 0x162   : > { %p7916_p9 = pneg %p7915_p8 }
 0x164   : > { %p7921_p11 = pnand %p7919_p10, %p7916_p9 }
 0x166   : > { %7924 = shalt.err (!%p7921_p11)
}
 0x167   : > { %s7925_s25 = scalar_lea.vmem %s952_s18, 4096  ;;  %p7933_p13 = scmp.lt.s32.totalorder %s952_s18, %s952_s18 }
 0x168   : > { %p7926_p1 = scmp.ne.s32.totalorder %s952_s18, %s7925_s25  ;;  %p7934_p0 = scmp.lt.s32.totalorder %s7925_s25, %s7925_s25 }
 0x16a   : > { %p7928_p3 = pnand %p7926_p1, %p8361_p7  ;;  %p7935_p2 = por %p7934_p0, %p7933_p13 }
 0x16c   : > { %p7929_p12 = pneg %p7928_p3 }
 0x16e   : > { %p7936_p4 = pnand %p7935_p2, %p7929_p12 }
 0x170   : > { %7939 = shalt.err (!%p7936_p4)
}
 0x171   : > { %s9531_s0 = sld [smem:[#allocation52_spill]]  ;;  %s8146_s16 = smov [#allocation26]  }
 0x172   : > { %6947 = dma.hbm_to_vmem [thread:$0]  (!%p8351_p5), %s9524_s4, 4096, %s952_s18, [#allocation24], %s9483_s26, %s9483_s26, %s9484_s13  }
 0x173   : > { %s965_s29 = sshll.u32 %s8146_s16, 4  ;;  %s966_s29 = int_to_ptr.vmem [resolvable:$true] %s965_s29 }
 0x177   : > { %s7940_s7 = scalar_lea.hbm %s9531_s0, 32 }
 0x178   : > { %p7941_p6 = scmp.ne.s32.totalorder %s9531_s0, %s7940_s7  ;;  %p7947_p10 = scmp.lt.u32.totalorder %s7940_s7, %s9531_s0 }
 0x17a   : > { %p7943_p8 = pnand %p7941_p6, %p8361_p7 }
 0x17c   : > { %p7944_p9 = pneg %p7943_p8 }
 0x17e   : > { %p7949_p11 = pnand %p7947_p10, %p7944_p9 }
 0x180   : > { %7952 = shalt.err (!%p7949_p11)
}
 0x181   : > { %s7953_s10 = scalar_lea.vmem %s966_s29, 32  ;;  %p7961_p13 = scmp.lt.s32.totalorder %s966_s29, %s966_s29 }
 0x182   : > { %p7954_p1 = scmp.ne.s32.totalorder %s966_s29, %s7953_s10  ;;  %p7962_p0 = scmp.lt.s32.totalorder %s7953_s10, %s7953_s10 }
 0x184   : > { %p7956_p3 = pnand %p7954_p1, %p8361_p7  ;;  %p7963_p2 = por %p7962_p0, %p7961_p13 }
 0x186   : > { %p7957_p12 = pneg %p7956_p3 }
 0x188   : > { %p7964_p4 = pnand %p7963_p2, %p7957_p12 }
 0x18a   : > { %7967 = shalt.err (!%p7964_p4)
}
 0x18b   : > { %s9532_s15 = sld [smem:[#allocation38_spill]]  ;;  %s8535_s18 = sadd.s32 1, %s8098_s22  }
 0x18c   : > { %6950 = dma.hbm_to_vmem [thread:$0]  (!%p8351_p5), %s9531_s0, 32, %s966_s29, [#allocation27]  }
 0x18d   : > { %s96_s11 = sadd.s32 1, %s8094_s23  ;;  %s93_s25 = ssub.s32 %s8098_s22, %s8535_s18 }
 0x18e   : > { %p103_p7 = scmp.ne.s32.totalorder %s8094_s23, %s8090_s21  ;;  %p94_p6 = scmp.eq.s32.totalorder %s93_s25, 0 }
 0x18f   : > { %p104_p8 = scmp.eq.s32.totalorder %s8098_s22, 0  ;;  %p109_p9 = scmp.ne.s32.totalorder %s8090_s21, %s8086_s9 }
 0x190   : > { %p6972_p10 = scmp.lt.s32.totalorder %s8098_s22, 4  ;;  %p9533_p1 = scmp.eq.s32.totalorder %s8336_s28, 0 }
 0x191   : > { %s8547_s16 = scalar_select %p94_p6, %s8094_s23, %s96_s11  }
 0x192   : > { %p105_p11 = por %p104_p8, %p103_p7  ;;  %p8551_p3 = por %p9533_p1, %p109_p9 }
 0x193   : > { %s8556_s29 = sand.u32 1, %s8094_s23   ;;  %s6657_s10 = sshll.u32 %s8098_s22, 12 }
 0x194   : > { %s9534_s7 = scalar_select %p8551_p3, 1, 0 }
 0x195   : > { %s6254_s26 = sshll.u32 %s8556_s29, 8  ;;  %s8561_s25 = scalar_lea.hbm %s9532_s15, %s6657_s10 }
 0x196   : > { %s1013_s9 = scalar_lea.vmem [#allocation3], %s6254_s26  ;;  %p8563_p5 = pnand %p6972_p10, %p105_p11 }
 0x197   : > { %s1021_s11 = sshll.u32 %s1013_s9, 4  ;;  %s7968_s4 = scalar_lea.hbm %s8561_s25, 4096  ;;  %s8567_s11 = int_to_ptr.vmem [resolvable:$true] %s1021_s11 }
 0x198   : > { %p7969_p12 = scmp.ne.s32.totalorder %s8561_s25, %s7968_s4  ;;  %p7970_p13 = pneg %p8563_p5 }
 0x199   : > { %s7973_s26 = scalar_lea.hbm %s9532_s15, 16384  ;;  %p7974_p4 = scmp.lt.u32.totalorder %s8561_s25, %s9532_s15 }
 0x19a   : > { %p7971_p0 = pnand %p7970_p13, %p7969_p12  ;;  %p7975_p7 = scmp.lt.u32.totalorder %s7973_s26, %s7968_s4 }
 0x19b   : > { %p7977_p8 = scmp.lt.u32.totalorder %s7968_s4, %s8561_s25 }
 0x19c   : > { %p7972_p2 = pneg %p7971_p0  ;;  %p7976_p6 = por %p7975_p7, %p7974_p4 }
 0x19e   : > { %p7978_p9 = por %p7977_p8, %p7976_p6 }
 0x1a0   : > { %p7979_p10 = pnand %p7978_p9, %p7972_p2 }
 0x1a2   : > { %7982 = shalt.err (!%p7979_p10)
}
 0x1a3   : > { %s7983_s10 = scalar_lea.vmem %s8567_s11, 4096  ;;  %s8147_s9 = smov [#allocation3]  }
 0x1a4   : > { %p7984_p11 = scmp.ne.s32.totalorder %s8567_s11, %s7983_s10  ;;  %s7988_s0 = sshll.u32 %s8147_s9, 4  ;;  %s7989_s0 = int_to_ptr.vmem [resolvable:$false] %s7988_s0 }
 0x1a5   : > { %s7990_s3 = scalar_lea.vmem %s7989_s0, 8192  ;;  %p7991_p12 = scmp.lt.s32.totalorder %s8567_s11, %s7989_s0 }
 0x1a6   : > { %p7986_p1 = pnand %p7984_p11, %p7970_p13  ;;  %p7992_p0 = scmp.lt.s32.totalorder %s7990_s3, %s7983_s10 }
 0x1a8   : > { %p7987_p3 = pneg %p7986_p1  ;;  %p7993_p4 = por %p7992_p0, %p7991_p12 }
 0x1aa   : > { %p7994_p7 = pnand %p7993_p4, %p7987_p3 }
 0x1ac   : > { %7997 = shalt.err (!%p7994_p7)
}
 0x1ad   : > { %s9536_s4 = smov 8   ;;  %s9537_s26 = smov 128  }
 0x1ae   : > { %s9538_s6 = scalar_lea.sflag [#allocation4], %s8556_s29  ;;  %s9539_s8 = sld [smem:[#allocation39_spill]] }
 0x1af   : > { %6954 = dma.hbm_to_vmem [thread:$0]  (!%p8563_p5), %s8561_s25, 4096, %s8567_s11, %s9538_s6, %s9537_s26, %s9537_s26, %s9536_s4  }
 0x1b0   : > { %s6258_s3 = sshll.u32 %s8556_s29, 5  ;;  %s6658_s0 = sshll.u32 %s8098_s22, 9 }
 0x1b1   : > { %s1035_s9 = scalar_lea.vmem [#allocation5], %s6258_s3  ;;  %s9540_s14 = sand.u32 1, %s8098_s22  }
 0x1b2   : > { %s1042_s12 = sshll.u32 %s1035_s9, 4  ;;  %s8606_s15 = scalar_lea.sflag [#allocation6], %s9540_s14  ;;  %s8602_s12 = int_to_ptr.vmem [resolvable:$true] %s1042_s12 }
 0x1b4   : > { %s8600_s10 = scalar_lea.hbm %s9539_s8, %s6658_s0  ;;  %s8003_s6 = scalar_lea.hbm %s9539_s8, 2048 }
 0x1b5   : > { %s7998_s19 = scalar_lea.hbm %s8600_s10, 512  ;;  %p8004_p8 = scmp.lt.u32.totalorder %s8600_s10, %s9539_s8 }
 0x1b6   : > { %p7999_p3 = scmp.ne.s32.totalorder %s8600_s10, %s7998_s19  ;;  %p8005_p9 = scmp.lt.u32.totalorder %s8003_s6, %s7998_s19 }
 0x1b7   : > { %p8007_p11 = scmp.lt.u32.totalorder %s7998_s19, %s8600_s10 }
 0x1b8   : > { %p8001_p2 = pnand %p7999_p3, %p7970_p13  ;;  %p8006_p10 = por %p8005_p9, %p8004_p8 }
 0x1ba   : > { %p8002_p6 = pneg %p8001_p2  ;;  %p8008_p1 = por %p8007_p11, %p8006_p10 }
 0x1bc   : > { %p8009_p12 = pnand %p8008_p1, %p8002_p6 }
 0x1be   : > { %8012 = shalt.err (!%p8009_p12)
}
 0x1bf   : > { %s8013_s14 = scalar_lea.vmem %s8602_s12, 512  ;;  %s8148_s22 = smov [#allocation5]  }
 0x1c0   : > { %p8014_p0 = scmp.ne.s32.totalorder %s8602_s12, %s8013_s14  ;;  %s8018_s29 = sshll.u32 %s8148_s22, 4  ;;  %s8019_s29 = int_to_ptr.vmem [resolvable:$false] %s8018_s29 }
 0x1c1   : > { %s8020_s25 = scalar_lea.vmem %s8019_s29, 1024  ;;  %p8021_p3 = scmp.lt.s32.totalorder %s8602_s12, %s8019_s29 }
 0x1c2   : > { %p8016_p4 = pnand %p8014_p0, %p7970_p13  ;;  %p8022_p2 = scmp.lt.s32.totalorder %s8020_s25, %s8013_s14 }
 0x1c4   : > { %p8017_p7 = pneg %p8016_p4  ;;  %p8023_p8 = por %p8022_p2, %p8021_p3 }
 0x1c6   : > { %p8024_p9 = pnand %p8023_p8, %p8017_p7 }
 0x1c8   : > { %8027 = shalt.err (!%p8024_p9)
}
 0x1c9   : > { %s8149_s19 = smov 64   ;;  %s8150_s11 = smov 4  }
 0x1ca   : > { %6957 = dma.hbm_to_vmem [thread:$0]  (!%p8563_p5), %s8600_s10, 512, %s8602_s12, %s8606_s15, %s8149_s19, %s8149_s19, %s8150_s11  }
 0x1cb   : > { %p9541_p13 = scmp.ne.s32.totalorder %s9528_s2, 0 }
 0x1cc   : > { %s1056_s4 = sand.u32 (!%p9541_p13), 1, %s8090_s21   ;;  %p9542_p6 = scmp.ne.s32.totalorder (!%p9541_p13), %s9534_s7, 0 }
 0x1cd   : > { %1054 = sbr.rel (%p9541_p13) target bundleno = 3402 (0xd4a), region = 140  ;;  %s6262_s26 = sshll.u32 (!%p9541_p13), %s1056_s4, 8 }
 0x1ce   : > { %s1057_s3 = scalar_lea.sflag (!%p9541_p13), [#allocation4], %s1056_s4  ;;  %s8631_s0 = scalar_lea.vmem (!%p9541_p13), [#allocation3], %s6262_s26 }
 0x1d4   : > { %8045 = dma.done.wait (%p9542_p6), %s1057_s3, 4096  }
 0x1d5   : > { %8047 = vsyncadd (%p9542_p6), %s1057_s3, 4294963200  ;;  %s1065_s9 = sand.u32 1, %s8336_s28   ;;  %s6263_s13 = sshll.u32 %s1056_s4, 5 }
 0x1d6   : > { %s1066_s12 = scalar_lea.sflag [#allocation6], %s1065_s9  ;;  %s8638_s15 = scalar_lea.vmem [#allocation5], %s6263_s13 }
 0x1d7   : > { %8049 = dma.done.wait (%p9542_p6), %s1066_s12, 512  }
 0x1d8   : > { %8051 = vsyncadd (%p9542_p6), %s1066_s12, 4294966784  ;;  %p9543_p5 = scmp.eq.s32.totalorder %s8336_s28, 0 }
 0x1da   : > { %8053 = dma.done.wait (%p9543_p5), [#allocation6], 32   ;;  %p9544_p10 = pmov %p9543_p5 }
 0x1db   : > { %p9545_p11 = pmov %p9543_p5 }
 0x1dc   : > { %8055 = vsyncadd (%p9544_p10), [#allocation6], 4294967264 }
 0x1dd   : > { %8057 = dma.done.wait (%p9545_p11), [#allocation9], 4128   ;;  %p9546_p1 = pmov %p9543_p5 }
 0x1df   : > { %8059 = vsyncadd (%p9546_p1), [#allocation9], 4294963168  ;;  %p9547_p12 = pmov %p9546_p1 }
 0x1e0   : > { %p9548_p0 = pmov %p9546_p1 }
 0x1e1   : > { %8061 = dma.done.wait (%p9547_p12), [#allocation12], 4128  }
 0x1e2   : > { %8063 = vsyncadd (%p9548_p0), [#allocation12], 4294963168  ;;  %p9549_p4 = pmov %p9548_p0 }
 0x1e3   : > { %p9550_p7 = pmov %p9548_p0 }
 0x1e4   : > { %8065 = dma.done.wait (%p9549_p4), [#allocation15], 4128  }
 0x1e5   : > { %8067 = vsyncadd (%p9550_p7), [#allocation15], 4294963168  ;;  %p9551_p3 = pmov %p9548_p0 }
 0x1e6   : > { %p9552_p2 = pmov %p9548_p0 }
 0x1e7   : > { %8069 = dma.done.wait (%p9551_p3), [#allocation18], 6144  }
 0x1e8   : > { %8071 = vsyncadd (%p9552_p2), [#allocation18], 4294961152  ;;  %p9553_p8 = pmov %p9548_p0 }
 0x1e9   : > { %p9554_p9 = pmov %p9548_p0 }
 0x1ea   : > { %8073 = dma.done.wait (%p9553_p8), [#allocation21], 4128  }
 0x1eb   : > { %8075 = vsyncadd (%p9554_p9), [#allocation21], 4294963168  ;;  %p9555_p13 = pmov %p9548_p0 }
 0x1ec   : > { %p9556_p6 = pmov %p9548_p0 }
 0x1ed   : > { %8077 = dma.done.wait (%p9555_p13), [#allocation24], 4128  }
 0x1ee   : > { %8079 = vsyncadd (%p9556_p6), [#allocation24], 4294963168  ;;  %p9557_p5 = pmov %p9548_p0 }
 0x1ef   : > { %p9558_p10 = pmov %p9548_p0 }
 0x1f0   : > { %8081 = dma.done.wait (%p9557_p5), [#allocation27], 32  }
 0x1f1   : > { %8083 = vsyncadd (%p9558_p10), [#allocation27], 4294967264  ;;  %s9559_s2 = sld [smem:[#allocation40_spill]]  ;;  %v7119_v14 = vld [vmem:[%s8631_s0 + $0x4] ss:$8 sps:$4 sm:$0xff]   ;;  %s9560_s7 = sld [smem:[#allocation42_spill]] }
 0x1f2   : > { %1657 = vmatprep.mubr.bf16.mxu0 %v7119_v14  ;;  %v7117_v38 = vld [vmem:[%s8631_s0] ss:$8 sps:$4 sm:$0xff]   ;;  %v7120_v40 = vld [vmem:[%s8631_s0 + $0x14] ss:$8 sps:$4 sm:$0xff]   ;;  %v7122_v44 = vld [vmem:[%s8631_s0 + $0x10] ss:$8 sps:$4 sm:$0xff]  }
 0x1f3   : > { %v7123_v46 = vld [vmem:[%s8631_s0 + $0x24] ss:$8 sps:$4 sm:$0xff]   ;;  %v7125_v50 = vld [vmem:[%s8631_s0 + $0x20] ss:$8 sps:$4 sm:$0xff]   ;;  %v7126_v52 = vld [vmem:[%s8631_s0 + $0x34] ss:$8 sps:$4 sm:$0xff]  }
 0x1f4   : > { %v7128_v56 = vld [vmem:[%s8631_s0 + $0x30] ss:$8 sps:$4 sm:$0xff]   ;;  %v7129_v58 = vld [vmem:[%s8631_s0 + $0x44] ss:$8 sps:$4 sm:$0xff]   ;;  %v7131_v62 = vld [vmem:[%s8631_s0 + $0x40] ss:$8 sps:$4 sm:$0xff]  }
 0x1f5   : > { %v7132_v0 = vld [vmem:[%s8631_s0 + $0x54] ss:$8 sps:$4 sm:$0xff]   ;;  %s9561_s10 = sld [smem:[#allocation41_spill]]  ;;  %s9562_s6 = sld [smem:[#allocation55_spill]]  ;;  %vm5939_vm0 = vcmask 7168   ;;  %vm5634_vm1 = vcmask 523264  }
 0x1f6   : > { %v7144_v14 = vld [vmem:[%s8631_s0 + $0x94] ss:$8 sps:$4 sm:$0xff]   ;;  %s9563_s14 = sld [smem:[#allocation53_spill]]  ;;  %s9564_s22 = sld [smem:[#allocation54_spill]]  ;;  %vm5747_vm2 = vcmask 261120   ;;  %vm5852_vm3 = vcmask 130048  }
 0x1f7   : > { %v7069_v1 = vld [vmem:[%s9559_s2 + $0x4] ss:$8 sps:$4 sm:$0xff]   ;;  %v7071_v2 = vld [vmem:[%s9559_s2] ss:$8 sps:$4 sm:$0xff]   ;;  %v7072_v3 = vld [vmem:[%s9559_s2 + $0x14] ss:$8 sps:$4 sm:$0xff]  }
 0x1f8   : > { %1625 = vmatprep.subr.bf16.mxu0 %v7069_v1  ;;  %v7074_v4 = vld [vmem:[%s9559_s2 + $0x10] ss:$8 sps:$4 sm:$0xff]   ;;  %v7075_v5 = vld [vmem:[%s9559_s2 + $0x24] ss:$8 sps:$4 sm:$0xff]   ;;  %v7077_v6 = vld [vmem:[%s9559_s2 + $0x20] ss:$8 sps:$4 sm:$0xff]  }
 0x1f9   : > { %1626 = vmatpush1.bf16.msra.mxu0 %v7071_v2  ;;  %v7078_v7 = vld [vmem:[%s9559_s2 + $0x34] ss:$8 sps:$4 sm:$0xff]   ;;  %v7080_v8 = vld [vmem:[%s9559_s2 + $0x30] ss:$8 sps:$4 sm:$0xff]   ;;  %v7081_v9 = vld [vmem:[%s9559_s2 + $0x44] ss:$8 sps:$4 sm:$0xff]  }
 0x1fa   : > { %1627 = vmatprep.subr.bf16.mxu0 %v7072_v3  ;;  %v7083_v10 = vld [vmem:[%s9559_s2 + $0x40] ss:$8 sps:$4 sm:$0xff]   ;;  %v7084_v11 = vld [vmem:[%s9559_s2 + $0x54] ss:$8 sps:$4 sm:$0xff]   ;;  %v7086_v12 = vld [vmem:[%s9559_s2 + $0x50] ss:$8 sps:$4 sm:$0xff]  }
 0x1fb   : > { %v7087_v13 = vld [vmem:[%s9559_s2 + $0x64] ss:$8 sps:$4 sm:$0xff]   ;;  %v7089_v15 = vld [vmem:[%s9559_s2 + $0x60] ss:$8 sps:$4 sm:$0xff]   ;;  %v7090_v16 = vld [vmem:[%s9559_s2 + $0x74] ss:$8 sps:$4 sm:$0xff]  }
 0x1fc   : > { %v7092_v17 = vld [vmem:[%s9559_s2 + $0x70] ss:$8 sps:$4 sm:$0xff]   ;;  %v7093_v18 = vld [vmem:[%s9559_s2 + $0x84] ss:$8 sps:$4 sm:$0xff]   ;;  %v7095_v19 = vld [vmem:[%s9559_s2 + $0x80] ss:$8 sps:$4 sm:$0xff]   ;;  %s9565_s29 = smov %s9564_s22 }
 0x1fd   : > { %1628 = vmatpush1.bf16.msra.mxu0 %v7074_v4  ;;  %v7096_v20 = vld [vmem:[%s9559_s2 + $0x94] ss:$8 sps:$4 sm:$0xff]   ;;  %v7098_v21 = vld [vmem:[%s9559_s2 + $0x90] ss:$8 sps:$4 sm:$0xff]   ;;  %v7099_v22 = vld [vmem:[%s9559_s2 + $0xa4] ss:$8 sps:$4 sm:$0xff]  }
 0x1fe   : > { %1629 = vmatprep.subr.bf16.mxu0 %v7075_v5  ;;  %v7101_v23 = vld [vmem:[%s9559_s2 + $0xa0] ss:$8 sps:$4 sm:$0xff]   ;;  %v7102_v24 = vld [vmem:[%s9559_s2 + $0xb4] ss:$8 sps:$4 sm:$0xff]   ;;  %v7104_v25 = vld [vmem:[%s9559_s2 + $0xb0] ss:$8 sps:$4 sm:$0xff]  }
 0x1ff   : > { %v7105_v26 = vld [vmem:[%s9559_s2 + $0xc4] ss:$8 sps:$4 sm:$0xff]   ;;  %v7107_v27 = vld [vmem:[%s9559_s2 + $0xc0] ss:$8 sps:$4 sm:$0xff]   ;;  %v7108_v28 = vld [vmem:[%s9559_s2 + $0xd4] ss:$8 sps:$4 sm:$0xff]  }
 0x200   : > { %v7110_v29 = vld [vmem:[%s9559_s2 + $0xd0] ss:$8 sps:$4 sm:$0xff]   ;;  %v7111_v30 = vld [vmem:[%s9559_s2 + $0xe4] ss:$8 sps:$4 sm:$0xff]   ;;  %v7113_v31 = vld [vmem:[%s9559_s2 + $0xe0] ss:$8 sps:$4 sm:$0xff]  }
 0x201   : > { %1630 = vmatpush1.bf16.msra.mxu0 %v7077_v6  ;;  %v7114_v32 = vld [vmem:[%s9559_s2 + $0xf4] ss:$8 sps:$4 sm:$0xff]   ;;  %v7165_v33 = vld [vmem:[%s9560_s7 + $0x4] ss:$8 sps:$4 sm:$0xff]   ;;  %v7167_v34 = vld [vmem:[%s9560_s7] ss:$8 sps:$4 sm:$0xff]  }
 0x202   : > { %1631 = vmatprep.subr.bf16.mxu0 %v7078_v7  ;;  %v7168_v35 = vld [vmem:[%s9560_s7 + $0x14] ss:$8 sps:$4 sm:$0xff]   ;;  %v7116_v36 = vld [vmem:[%s9559_s2 + $0xf0] ss:$8 sps:$4 sm:$0xff]   ;;  %2118 = vmatprep.subr.bf16.mxu1 %v7165_v33  ;;  %v7171_v39 = vld [vmem:[%s9560_s7 + $0x24] ss:$8 sps:$4 sm:$0xff]  }
 0x203   : > { %2119 = vmatpush1.bf16.msra.mxu1 %v7167_v34  ;;  %v7170_v37 = vld [vmem:[%s9560_s7 + $0x10] ss:$8 sps:$4 sm:$0xff]   ;;  %v7173_v41 = vld [vmem:[%s9560_s7 + $0x20] ss:$8 sps:$4 sm:$0xff]   ;;  %v7174_v42 = vld [vmem:[%s9560_s7 + $0x34] ss:$8 sps:$4 sm:$0xff]  }
 0x204   : > { %2120 = vmatprep.subr.bf16.mxu1 %v7168_v35  ;;  %v7176_v43 = vld [vmem:[%s9560_s7 + $0x30] ss:$8 sps:$4 sm:$0xff]   ;;  %v7177_v45 = vld [vmem:[%s9560_s7 + $0x44] ss:$8 sps:$4 sm:$0xff]   ;;  %v7179_v47 = vld [vmem:[%s9560_s7 + $0x40] ss:$8 sps:$4 sm:$0xff]   ;;  %v1295_v35 = vlaneseq }
 0x205   : > { %1632 = vmatpush1.bf16.msra.mxu0 %v7080_v8  ;;  %v7180_v48 = vld [vmem:[%s9560_s7 + $0x54] ss:$8 sps:$4 sm:$0xff]   ;;  %v7182_v49 = vld [vmem:[%s9560_s7 + $0x50] ss:$8 sps:$4 sm:$0xff]   ;;  %v7183_v51 = vld [vmem:[%s9560_s7 + $0x64] ss:$8 sps:$4 sm:$0xff]  }
 0x206   : > { %1633 = vmatprep.subr.bf16.mxu0 %v7081_v9  ;;  %v7185_v53 = vld [vmem:[%s9560_s7 + $0x60] ss:$8 sps:$4 sm:$0xff]   ;;  %v7186_v54 = vld [vmem:[%s9560_s7 + $0x74] ss:$8 sps:$4 sm:$0xff]   ;;  %v7188_v55 = vld [vmem:[%s9560_s7 + $0x70] ss:$8 sps:$4 sm:$0xff]  }
 0x207   : > { %2121 = vmatpush1.bf16.msra.mxu1 %v7170_v37  ;;  %v7189_v57 = vld [vmem:[%s9560_s7 + $0x84] ss:$8 sps:$4 sm:$0xff]   ;;  %v7191_v59 = vld [vmem:[%s9560_s7 + $0x80] ss:$8 sps:$4 sm:$0xff]   ;;  %v7192_v60 = vld [vmem:[%s9560_s7 + $0x94] ss:$8 sps:$4 sm:$0xff]  }
 0x208   : > { %2122 = vmatprep.subr.bf16.mxu1 %v7171_v39  ;;  %v7194_v61 = vld [vmem:[%s9560_s7 + $0x90] ss:$8 sps:$4 sm:$0xff]   ;;  %v7195_v63 = vld [vmem:[%s9560_s7 + $0xa4] ss:$8 sps:$4 sm:$0xff]   ;;  %v7197_v1 = vld [vmem:[%s9560_s7 + $0xa0] ss:$8 sps:$4 sm:$0xff]  }
 0x209   : > { %1634 = vmatpush1.bf16.msra.mxu0 %v7083_v10  ;;  %v7198_v2 = vld [vmem:[%s9560_s7 + $0xb4] ss:$8 sps:$4 sm:$0xff]   ;;  %v7200_v3 = vld [vmem:[%s9560_s7 + $0xb0] ss:$8 sps:$4 sm:$0xff]   ;;  %v7201_v5 = vld [vmem:[%s9560_s7 + $0xc4] ss:$8 sps:$4 sm:$0xff]  }
 0x20a   : > { %1635 = vmatprep.subr.bf16.mxu0 %v7084_v11  ;;  %v7134_v4 = vld [vmem:[%s8631_s0 + $0x50] ss:$8 sps:$4 sm:$0xff]   ;;  %v7135_v6 = vld [vmem:[%s8631_s0 + $0x64] ss:$8 sps:$4 sm:$0xff]   ;;  %v7137_v9 = vld [vmem:[%s8631_s0 + $0x60] ss:$8 sps:$4 sm:$0xff]  }
 0x20b   : > { %2123 = vmatpush1.bf16.msra.mxu1 %v7173_v41  ;;  %v7203_v7 = vld [vmem:[%s9560_s7 + $0xc0] ss:$8 sps:$4 sm:$0xff]   ;;  %v7204_v8 = vld [vmem:[%s9560_s7 + $0xd4] ss:$8 sps:$4 sm:$0xff]   ;;  %s9566_s25 = sld [smem:[#allocation58_spill]]  ;;  %s6278_s19 = sshll.u32 %s8336_s28, 3 }
 0x20c   : > { %2124 = vmatprep.subr.bf16.mxu1 %v7174_v42  ;;  %v7138_v10 = vld [vmem:[%s8631_s0 + $0x74] ss:$8 sps:$4 sm:$0xff]   ;;  %v7140_v11 = vld [vmem:[%s8631_s0 + $0x70] ss:$8 sps:$4 sm:$0xff]   ;;  %v7213_v33 = vld [vmem:[#allocation8] ss:$8 sps:$4 sm:$0xff]  }
 0x20d   : > { %1636 = vmatpush1.bf16.msra.mxu0 %v7086_v12  ;;  %v7141_v12 = vld [vmem:[%s8631_s0 + $0x84] ss:$8 sps:$4 sm:$0xff]   ;;  %v7218_v37 = vld [vmem:[#allocation8 + $0x14] ss:$8 sps:$4 sm:$0xff]   ;;  %p1217_p11 = scmp.lt.s32.totalorder %s6278_s19, 31  ;;  %s9567_s28 = sld [smem:[#allocation56_spill]] }
 0x20e   : > { %1637 = vmatprep.subr.bf16.mxu0 %v7087_v13  ;;  %v7143_v13 = vld [vmem:[%s8631_s0 + $0x80] ss:$8 sps:$4 sm:$0xff]   ;;  %s9568_s26 = sld [smem:[#allocation57_spill]]  ;;  %s9569_s3 = sld [smem:[#allocation59_spill]]  ;;  %vm5930_vm4 = vcmask 23552  }
 0x20f   : > { %2125 = vmatpush1.bf16.msra.mxu1 %v7176_v43  ;;  %v7215_v34 = vld [vmem:[#allocation8 + $0x4] ss:$8 sps:$4 sm:$0xff]   ;;  %v7219_v42 = vld [vmem:[#allocation8 + $0x20] ss:$8 sps:$4 sm:$0xff]   ;;  %s9577_s19 = smov (!%p1217_p11, %s6278_s19), 31  ;;  %s9571_s9 = sld [smem:[#allocation61_spill]] }
 0x210   : > { %2126 = vmatprep.subr.bf16.mxu1 %v7177_v45  ;;  %v7221_v43 = vld [vmem:[#allocation8 + $0x24] ss:$8 sps:$4 sm:$0xff]   ;;  %s6279_s11 = sshll.u32 %s9577_s19, 3 }
 0x211   : > { %1638 = vmatpush1.bf16.msra.mxu0 %v7089_v15  ;;  %v7146_v15 = vld [vmem:[%s8631_s0 + $0x90] ss:$8 sps:$4 sm:$0xff]   ;;  %s9402_s4 = scalar_lea.vmem %s8313_s5, %s6279_s11 }
 0x212   : > { %1639 = vmatprep.subr.bf16.mxu0 %v7090_v16  ;;  %v7147_v16 = vld [vmem:[%s8631_s0 + $0xa4] ss:$8 sps:$4 sm:$0xff]  }
 0x213   : > { %2127 = vmatpush1.bf16.msra.mxu1 %v7179_v47  ;;  %v7222_v47 = vld [vmem:[#allocation8 + $0x30] ss:$8 sps:$4 sm:$0xff]  }
 0x214   : > { %2128 = vmatprep.subr.bf16.mxu1 %v7180_v48  ;;  %v7224_v48 = vld [vmem:[#allocation8 + $0x34] ss:$8 sps:$4 sm:$0xff]  }
 0x215   : > { %1640 = vmatpush1.bf16.msra.mxu0 %v7092_v17  ;;  %v7149_v17 = vld [vmem:[%s8631_s0 + $0xa0] ss:$8 sps:$4 sm:$0xff]   ;;  %s1220_s13 = scalar_lea.vmem %s9571_s9, %s6279_s11 }
 0x216   : > { %1641 = vmatprep.subr.bf16.mxu0 %v7093_v18  ;;  %v7150_v18 = vld [vmem:[%s8631_s0 + $0xb4] ss:$8 sps:$4 sm:$0xff]  }
 0x217   : > { %2129 = vmatpush1.bf16.msra.mxu1 %v7182_v49 }
 0x218   : > { %2130 = vmatprep.subr.bf16.mxu1 %v7183_v51 }
 0x219   : > { %1642 = vmatpush1.bf16.msra.mxu0 %v7095_v19  ;;  %v7206_v19 = vld [vmem:[%s9560_s7 + $0xd0] ss:$8 sps:$4 sm:$0xff]  }
 0x21a   : > { %1643 = vmatprep.subr.bf16.mxu0 %v7096_v20  ;;  %v7152_v20 = vld [vmem:[%s8631_s0 + $0xb0] ss:$8 sps:$4 sm:$0xff]  }
 0x21b   : > { %2131 = vmatpush1.bf16.msra.mxu1 %v7185_v53 }
 0x21c   : > { %2132 = vmatprep.subr.bf16.mxu1 %v7186_v54 }
 0x21d   : > { %1644 = vmatpush1.bf16.msra.mxu0 %v7098_v21  ;;  %v7153_v21 = vld [vmem:[%s8631_s0 + $0xc4] ss:$8 sps:$4 sm:$0xff]  }
 0x21e   : > { %1645 = vmatprep.subr.bf16.mxu0 %v7099_v22  ;;  %v7207_v22 = vld [vmem:[%s9560_s7 + $0xe4] ss:$8 sps:$4 sm:$0xff]  }
 0x21f   : > { %2133 = vmatpush1.bf16.msra.mxu1 %v7188_v55  ;;  %v7225_v55 = vld [vmem:[#allocation8 + $0x40] ss:$8 sps:$4 sm:$0xff]  }
 0x220   : > { %2134 = vmatprep.subr.bf16.mxu1 %v7189_v57 }
 0x221   : > { %1646 = vmatpush1.bf16.msra.mxu0 %v7101_v23  ;;  %v7209_v23 = vld [vmem:[%s9560_s7 + $0xe0] ss:$8 sps:$4 sm:$0xff]  }
 0x222   : > { %1647 = vmatprep.subr.bf16.mxu0 %v7102_v24  ;;  %v7210_v24 = vld [vmem:[%s9560_s7 + $0xf4] ss:$8 sps:$4 sm:$0xff]  }
 0x223   : > { %2135 = vmatpush1.bf16.msra.mxu1 %v7191_v59 }
 0x224   : > { %2136 = vmatprep.subr.bf16.mxu1 %v7192_v60 }
 0x225   : > { %1648 = vmatpush1.bf16.msra.mxu0 %v7104_v25  ;;  %v7212_v25 = vld [vmem:[%s9560_s7 + $0xf0] ss:$8 sps:$4 sm:$0xff]  }
 0x226   : > { %1649 = vmatprep.subr.bf16.mxu0 %v7105_v26  ;;  %v7155_v26 = vld [vmem:[%s8631_s0 + $0xc0] ss:$8 sps:$4 sm:$0xff]  }
 0x227   : > { %2137 = vmatpush1.bf16.msra.mxu1 %v7194_v61 }
 0x228   : > { %2138 = vmatprep.subr.bf16.mxu1 %v7195_v63 }
 0x229   : > { %1650 = vmatpush1.bf16.msra.mxu0 %v7107_v27  ;;  %v7156_v27 = vld [vmem:[%s8631_s0 + $0xd4] ss:$8 sps:$4 sm:$0xff]  }
 0x22a   : > { %1651 = vmatprep.subr.bf16.mxu0 %v7108_v28  ;;  %v7158_v28 = vld [vmem:[%s8631_s0 + $0xd0] ss:$8 sps:$4 sm:$0xff]  }
 0x22b   : > { %2139 = vmatpush1.bf16.msra.mxu1 %v7197_v1 }
 0x22c   : > { %2140 = vmatprep.subr.bf16.mxu1 %v7198_v2 }
 0x22d   : > { %1652 = vmatpush1.bf16.msra.mxu0 %v7110_v29  ;;  %v7159_v29 = vld [vmem:[%s8631_s0 + $0xe4] ss:$8 sps:$4 sm:$0xff]  }
 0x22e   : > { %1653 = vmatprep.subr.bf16.mxu0 %v7111_v30  ;;  %v7161_v30 = vld [vmem:[%s8631_s0 + $0xe0] ss:$8 sps:$4 sm:$0xff]  }
 0x22f   : > { %2141 = vmatpush1.bf16.msra.mxu1 %v7200_v3  ;;  %v7233_v3 = vld [vmem:[#allocation8 + $0x64] ss:$8 sps:$4 sm:$0xff]  }
 0x230   : > { %2142 = vmatprep.subr.bf16.mxu1 %v7201_v5 }
 0x231   : > { %1654 = vmatpush1.bf16.msra.mxu0 %v7113_v31  ;;  %v7162_v31 = vld [vmem:[%s8631_s0 + $0xf4] ss:$8 sps:$4 sm:$0xff]  }
 0x232   : > { %1655 = vmatprep.subr.bf16.mxu0 %v7114_v32  ;;  %v7164_v32 = vld [vmem:[%s8631_s0 + $0xf0] ss:$8 sps:$4 sm:$0xff]   ;;  %s9570_s0 = sld [smem:[#allocation60_spill]] }
 0x233   : > { %2143 = vmatpush1.bf16.msra.mxu1 %v7203_v7 }
 0x234   : > { %2144 = vmatprep.subr.bf16.mxu1 %v7204_v8 }
 0x235   : > { %1656 = vmatpush1.bf16.msra.mxu0 %v7116_v36  ;;  %v7216_v36 = vld [vmem:[#allocation8 + $0x10] ss:$8 sps:$4 sm:$0xff]  }
 0x236   : > { %2611 = vmatprep.subr.bf16.mxu0 %v7215_v34 }
 0x237   : > { %2145 = vmatpush1.bf16.msra.mxu1 %v7206_v19 }
 0x238   : > { %1658 = vmatmul.mubr.bf16.vlgmr.msra.gmra.mrb[0].mxu0 %v7117_v38  ;;  %2146 = vmatprep.subr.bf16.mxu1 %v7207_v22  ;;  %v1296_v38 = vshrl.u32 %v1295_v35, 7 }
 0x239   : > { %1667 = vmatprep.mubr.bf16.mxu0 %v7120_v40  ;;  %2612 = vmatpush1.bf16.msra.mxu0 %v7213_v33  ;;  %v1293_v40 = vld [vmem:[%s9561_s10] sm:$0x3] }
 0x23a   : > { %2613 = vmatprep.subr.bf16.mxu0 %v7218_v37  ;;  %v8772_v39 = vsub.s32 0, %v1296_v38  ;;  %v8775_v41 = vsub.s32 1, %v1296_v38 }
 0x23b   : > { %2147 = vmatpush1.bf16.msra.mxu1 %v7209_v23 }
 0x23c   : > { %2148 = vmatprep.subr.bf16.mxu1 %v7210_v24  ;;  %v8781_v45 = vrot.slane %v1293_v40, %v8775_v41 }
 0x23d   : > { %2614 = vmatpush1.bf16.msra.mxu0 %v7216_v36  ;;  %v7240_v36 = vld [vmem:[#allocation8 + $0x90] ss:$8 sps:$4 sm:$0xff]  }
 0x23e   : > { %2615 = vmatprep.subr.bf16.mxu0 %v7221_v43 }
 0x23f   : > { %2149 = vmatpush1.bf16.msra.mxu1 %v7212_v25 }
 0x240   : > { %1668 = vmatmul.mubr.bf16.gmra.mrb[4].mxu0 %v7122_v44  ;;  %v8778_v44 = vrot.slane %v1293_v40, %v8772_v39  ;;  %v7245_v40 = vld [vmem:[#allocation8 + $0xa4] ss:$8 sps:$4 sm:$0xff]  }
 0x241   : > { %1677 = vmatprep.mubr.bf16.mxu0 %v7123_v46  ;;  %2616 = vmatpush1.bf16.msra.mxu0 %v7219_v42 }
 0x242   : > { %2617 = vmatprep.subr.bf16.mxu0 %v7224_v48 }
 0x245   : > { %2618 = vmatpush1.bf16.msra.mxu0 %v7222_v47 }
 0x248   : > { %1678 = vmatmul.mubr.bf16.gmra.mrb[8].mxu0 %v7125_v50 }
 0x249   : > { %1687 = vmatprep.mubr.bf16.mxu0 %v7126_v52 }
 0x250   : > { %1688 = vmatmul.mubr.bf16.gmra.mrb[12].mxu0 %v7128_v56  ;;  %v7227_v56 = vld [vmem:[#allocation8 + $0x44] ss:$8 sps:$4 sm:$0xff]  }
 0x251   : > { %1697 = vmatprep.mubr.bf16.mxu0 %v7129_v58  ;;  %v7230_v58 = vld [vmem:[#allocation8 + $0x54] ss:$8 sps:$4 sm:$0xff]   ;;  %2619 = vmatprep.subr.bf16.mxu0 %v7227_v56 }
 0x252   : > { %2620 = vmatpush1.bf16.msra.mxu0 %v7225_v55 }
 0x253   : > { %2621 = vmatprep.subr.bf16.mxu0 %v7230_v58  ;;  %v7246_v58 = vld [vmem:[#allocation8 + $0xb0] ss:$8 sps:$4 sm:$0xff]  }
 0x258   : > { %1698 = vmatmul.mubr.bf16.gmra.mrb[16].mxu0 %v7131_v62 }
 0x259   : > { %1707 = vmatprep.mubr.bf16.mxu0 %v7132_v0  ;;  %v7228_v0 = vld [vmem:[#allocation8 + $0x50] ss:$8 sps:$4 sm:$0xff]  }
 0x25a   : > { %2622 = vmatpush1.bf16.msra.mxu0 %v7228_v0 }
 0x25b   : > { %2623 = vmatprep.subr.bf16.mxu0 %v7233_v3 }
 0x260   : > { %1708 = vmatmul.mubr.bf16.gmra.mrb[20].mxu0 %v7134_v4 }
 0x261   : > { %1717 = vmatprep.mubr.bf16.mxu0 %v7135_v6 }
 0x268   : > { %1718 = vmatmul.mubr.bf16.gmra.mrb[24].mxu0 %v7137_v9 }
 0x269   : > { %1727 = vmatprep.mubr.bf16.mxu0 %v7138_v10  ;;  %v7231_v10 = vld [vmem:[#allocation8 + $0x60] ss:$8 sps:$4 sm:$0xff]  }
 0x26a   : > { %2624 = vmatpush1.bf16.msra.mxu0 %v7231_v10 }
 0x270   : > { %1728 = vmatmul.mubr.bf16.gmra.mrb[28].mxu0 %v7140_v11 }
 0x271   : > { %1737 = vmatprep.mubr.bf16.mxu0 %v7141_v12  ;;  %v7236_v12 = vld [vmem:[#allocation8 + $0x74] ss:$8 sps:$4 sm:$0xff]  }
 0x272   : > { %2625 = vmatprep.subr.bf16.mxu0 %v7236_v12  ;;  %v7252_v12 = vld [vmem:[#allocation8 + $0xd0] ss:$8 sps:$4 sm:$0xff]  }
 0x278   : > { %1738 = vmatmul.mubr.bf16.gmra.mrb[32].mxu0 %v7143_v13 }
 0x279   : > { %1747 = vmatprep.mubr.bf16.mxu0 %v7144_v14 }
 0x280   : > { %1748 = vmatmul.mubr.bf16.gmra.mrb[36].mxu0 %v7146_v15 }
 0x281   : > { %1757 = vmatprep.mubr.bf16.mxu0 %v7147_v16 }
 0x288   : > { %1758 = vmatmul.mubr.bf16.gmra.mrb[40].mxu0 %v7149_v17 }
 0x289   : > { %1767 = vmatprep.mubr.bf16.mxu0 %v7150_v18  ;;  %v7234_v18 = vld [vmem:[#allocation8 + $0x70] ss:$8 sps:$4 sm:$0xff]  }
 0x28a   : > { %2626 = vmatpush1.bf16.msra.mxu0 %v7234_v18 }
 0x290   : > { %1768 = vmatmul.mubr.bf16.gmra.mrb[44].mxu0 %v7152_v20 }
 0x291   : > { %1777 = vmatprep.mubr.bf16.mxu0 %v7153_v21  ;;  %v7239_v21 = vld [vmem:[#allocation8 + $0x84] ss:$8 sps:$4 sm:$0xff]  }
 0x292   : > { %2627 = vmatprep.subr.bf16.mxu0 %v7239_v21 }
 0x298   : > { %1778 = vmatmul.mubr.bf16.gmra.mrb[48].mxu0 %v7155_v26 }
 0x299   : > { %1787 = vmatprep.mubr.bf16.mxu0 %v7156_v27 }
 0x2a0   : > { %1788 = vmatmul.mubr.bf16.gmra.mrb[52].mxu0 %v7158_v28  ;;  %v7237_v28 = vld [vmem:[#allocation8 + $0x80] ss:$8 sps:$4 sm:$0xff]  }
 0x2a1   : > { %1797 = vmatprep.mubr.bf16.mxu0 %v7159_v29  ;;  %2628 = vmatpush1.bf16.msra.mxu0 %v7237_v28 }
 0x2a8   : > { %1798 = vmatmul.mubr.bf16.gmra.mrb[56].mxu0 %v7161_v30  ;;  %v7242_v30 = vld [vmem:[#allocation8 + $0x94] ss:$8 sps:$4 sm:$0xff]  }
 0x2a9   : > { %1807 = vmatprep.mubr.bf16.mxu0 %v7162_v31  ;;  %2629 = vmatprep.subr.bf16.mxu0 %v7242_v30 }
 0x2aa   : > { %2630 = vmatpush1.bf16.msra.mxu0 %v7240_v36 }
 0x2ab   : > { %2631 = vmatprep.subr.bf16.mxu0 %v7245_v40 }
 0x2b0   : > { %1808 = vmatmul.mubr.bf16.gmra.mrb[60].mxu0 %v7164_v32 }
 0x30b   : > { %v1659_v46 = vpop.f32.mrb[0].mxu0 }
 0x30c   : > { %v1660_v49 = vadd.f32 %v1659_v46, %v8778_v44  ;;  %v1661_v50 = vpop.f32.mrb[1].mxu0 }
 0x30d   : > { %v1662_v51 = vadd.f32 %v1661_v50, %v8781_v45  ;;  %v1663_v52 = vpop.f32.mrb[2].mxu0  ;;  %v7243_v50 = vld [vmem:[#allocation8 + $0xa0] ss:$8 sps:$4 sm:$0xff]  }
 0x30e   : > { %v1664_v53 = vadd.f32 %v1663_v52, %v8778_v44  ;;  %v1665_v54 = vpop.f32.mrb[3].mxu0  ;;  %v1818_v59 = vmax.f32 %v1660_v49, 0.0  ;;  %v7248_v52 = vld [vmem:[#allocation8 + $0xb4] ss:$8 sps:$4 sm:$0xff]   ;;  %2632 = vmatpush1.bf16.msra.mxu0 %v7243_v50 }
 0x30f   : > { %v1666_v57 = vadd.f32 %v1665_v54, %v8781_v45  ;;  %v1819_v61 = vmax.f32 %v1662_v51, 0.0  ;;  %2633 = vmatprep.subr.bf16.mxu0 %v7248_v52 }
 0x310   : > { %v1820_v60 = vmax.f32 %v1664_v53, 0.0 }
 0x311   : > { %v1821_v62 = vmax.f32 %v1666_v57, 0.0 }
 0x312   : > { %v1882_v63 = vpack.c.bf16 %v1820_v60, %v1818_v59  ;;  %2634 = vmatpush1.bf16.msra.mxu0 %v7246_v58 }
 0x313   : > { %v1669_v1 = vpop.f32.mrb[4].mxu0  ;;  %v1883_v2 = vpack.c.bf16 %v1821_v62, %v1819_v61  ;;  %v7251_v61 = vld [vmem:[#allocation8 + $0xc4] ss:$8 sps:$4 sm:$0xff]  }
 0x314   : > { %v1670_v4 = vadd.f32 %v1669_v1, %v8778_v44  ;;  %v1671_v5 = vpop.f32.mrb[5].mxu0  ;;  %2635 = vmatprep.subr.bf16.mxu0 %v7251_v61 }
 0x315   : > { %v1672_v6 = vadd.f32 %v1671_v5, %v8781_v45  ;;  %v1673_v7 = vpop.f32.mrb[6].mxu0  ;;  %2150 = vmatprep.mubr.bf16.mxu1 %v1883_v2 }
 0x316   : > { %v1674_v8 = vadd.f32 %v1673_v7, %v8778_v44  ;;  %v1675_v9 = vpop.f32.mrb[7].mxu0  ;;  %2151 = vmatmul.mubr.bf16.vlgmr.msra.gmra.mrb[0].mxu1 %v1882_v63  ;;  %v1822_v13 = vmax.f32 %v1670_v4, 0.0  ;;  %v7249_v4 = vld [vmem:[#allocation8 + $0xc0] ss:$8 sps:$4 sm:$0xff]  }
 0x317   : > { %v1676_v11 = vadd.f32 %v1675_v9, %v8781_v45  ;;  %v1823_v15 = vmax.f32 %v1672_v6, 0.0  ;;  %v7254_v6 = vld [vmem:[#allocation8 + $0xd4] ss:$8 sps:$4 sm:$0xff]   ;;  %2636 = vmatpush1.bf16.msra.mxu0 %v7249_v4 }
 0x318   : > { %v1824_v14 = vmax.f32 %v1674_v8, 0.0  ;;  %2637 = vmatprep.subr.bf16.mxu0 %v7254_v6 }
 0x319   : > { %v1825_v16 = vmax.f32 %v1676_v11, 0.0 }
 0x31a   : > { %v1884_v17 = vpack.c.bf16 %v1824_v14, %v1822_v13 }
 0x31b   : > { %v1885_v19 = vpack.c.bf16 %v1825_v16, %v1823_v15  ;;  %v1679_v20 = vpop.f32.mrb[8].mxu0  ;;  %v7257_v15 = vld [vmem:[#allocation8 + $0xe4] ss:$8 sps:$4 sm:$0xff]   ;;  %2638 = vmatpush1.bf16.msra.mxu0 %v7252_v12 }
 0x31c   : > { %v1680_v22 = vadd.f32 %v1679_v20, %v8778_v44  ;;  %v1681_v23 = vpop.f32.mrb[9].mxu0  ;;  %2639 = vmatprep.subr.bf16.mxu0 %v7257_v15 }
 0x31d   : > { %v1682_v24 = vadd.f32 %v1681_v23, %v8781_v45  ;;  %v1683_v25 = vpop.f32.mrb[10].mxu0  ;;  %2160 = vmatprep.mubr.bf16.mxu1 %v1885_v19 }
 0x31e   : > { %v1684_v26 = vadd.f32 %v1683_v25, %v8778_v44  ;;  %v1685_v27 = vpop.f32.mrb[11].mxu0  ;;  %2161 = vmatmul.mubr.bf16.gmra.mrb[4].mxu1 %v1884_v17  ;;  %v1826_v31 = vmax.f32 %v1680_v22, 0.0  ;;  %v7255_v22 = vld [vmem:[#allocation8 + $0xe0] ss:$8 sps:$4 sm:$0xff]  }
 0x31f   : > { %v1686_v29 = vadd.f32 %v1685_v27, %v8781_v45  ;;  %v1827_v33 = vmax.f32 %v1682_v24, 0.0  ;;  %2640 = vmatpush1.bf16.msra.mxu0 %v7255_v22 }
 0x320   : > { %v1828_v32 = vmax.f32 %v1684_v26, 0.0 }
 0x321   : > { %v1829_v34 = vmax.f32 %v1686_v29, 0.0 }
 0x322   : > { %v1886_v35 = vpack.c.bf16 %v1828_v32, %v1826_v31 }
 0x323   : > { %v1887_v37 = vpack.c.bf16 %v1829_v34, %v1827_v33  ;;  %v1689_v38 = vpop.f32.mrb[12].mxu0 }
 0x324   : > { %v1690_v42 = vadd.f32 %v1689_v38, %v8778_v44  ;;  %v1691_v43 = vpop.f32.mrb[13].mxu0 }
 0x325   : > { %v1692_v46 = vadd.f32 %v1691_v43, %v8781_v45  ;;  %v1693_v47 = vpop.f32.mrb[14].mxu0  ;;  %2170 = vmatprep.mubr.bf16.mxu1 %v1887_v37 }
 0x326   : > { %v1694_v48 = vadd.f32 %v1693_v47, %v8778_v44  ;;  %v1695_v49 = vpop.f32.mrb[15].mxu0  ;;  %2171 = vmatmul.mubr.bf16.gmra.mrb[8].mxu1 %v1886_v35  ;;  %v1830_v53 = vmax.f32 %v1690_v42, 0.0 }
 0x327   : > { %v1696_v51 = vadd.f32 %v1695_v49, %v8781_v45  ;;  %v1831_v55 = vmax.f32 %v1692_v46, 0.0 }
 0x328   : > { %v1832_v54 = vmax.f32 %v1694_v48, 0.0 }
 0x329   : > { %v1833_v56 = vmax.f32 %v1696_v51, 0.0 }
 0x32a   : > { %v1888_v57 = vpack.c.bf16 %v1832_v54, %v1830_v53 }
 0x32b   : > { %v1889_v59 = vpack.c.bf16 %v1833_v56, %v1831_v55  ;;  %v1699_v60 = vpop.f32.mrb[16].mxu0 }
 0x32c   : > { %v1700_v62 = vadd.f32 %v1699_v60, %v8778_v44  ;;  %v1701_v63 = vpop.f32.mrb[17].mxu0 }
 0x32d   : > { %v1702_v0 = vadd.f32 %v1701_v63, %v8781_v45  ;;  %v1703_v1 = vpop.f32.mrb[18].mxu0  ;;  %2180 = vmatprep.mubr.bf16.mxu1 %v1889_v59 }
 0x32e   : > { %v1704_v2 = vadd.f32 %v1703_v1, %v8778_v44  ;;  %v1705_v3 = vpop.f32.mrb[19].mxu0  ;;  %2181 = vmatmul.mubr.bf16.gmra.mrb[12].mxu1 %v1888_v57  ;;  %v1834_v7 = vmax.f32 %v1700_v62, 0.0 }
 0x32f   : > { %v1706_v5 = vadd.f32 %v1705_v3, %v8781_v45  ;;  %v1835_v9 = vmax.f32 %v1702_v0, 0.0 }
 0x330   : > { %v1836_v8 = vmax.f32 %v1704_v2, 0.0 }
 0x331   : > { %v1837_v10 = vmax.f32 %v1706_v5, 0.0 }
 0x332   : > { %v1890_v11 = vpack.c.bf16 %v1836_v8, %v1834_v7 }
 0x333   : > { %v1891_v13 = vpack.c.bf16 %v1837_v10, %v1835_v9  ;;  %v1709_v14 = vpop.f32.mrb[20].mxu0 }
 0x334   : > { %v1710_v16 = vadd.f32 %v1709_v14, %v8778_v44  ;;  %v1711_v17 = vpop.f32.mrb[21].mxu0 }
 0x335   : > { %v1712_v18 = vadd.f32 %v1711_v17, %v8781_v45  ;;  %v1713_v19 = vpop.f32.mrb[22].mxu0  ;;  %2190 = vmatprep.mubr.bf16.mxu1 %v1891_v13 }
 0x336   : > { %v1714_v20 = vadd.f32 %v1713_v19, %v8778_v44  ;;  %v1715_v21 = vpop.f32.mrb[23].mxu0  ;;  %2191 = vmatmul.mubr.bf16.gmra.mrb[16].mxu1 %v1890_v11  ;;  %v1838_v24 = vmax.f32 %v1710_v16, 0.0 }
 0x337   : > { %v1716_v23 = vadd.f32 %v1715_v21, %v8781_v45  ;;  %v1839_v26 = vmax.f32 %v1712_v18, 0.0 }
 0x338   : > { %v1840_v25 = vmax.f32 %v1714_v20, 0.0 }
 0x339   : > { %v1841_v27 = vmax.f32 %v1716_v23, 0.0 }
 0x33a   : > { %v1892_v28 = vpack.c.bf16 %v1840_v25, %v1838_v24 }
 0x33b   : > { %v1893_v29 = vpack.c.bf16 %v1841_v27, %v1839_v26  ;;  %v1719_v30 = vpop.f32.mrb[24].mxu0 }
 0x33c   : > { %v1720_v31 = vadd.f32 %v1719_v30, %v8778_v44  ;;  %v1721_v32 = vpop.f32.mrb[25].mxu0 }
 0x33d   : > { %v1722_v33 = vadd.f32 %v1721_v32, %v8781_v45  ;;  %v1723_v34 = vpop.f32.mrb[26].mxu0  ;;  %2200 = vmatprep.mubr.bf16.mxu1 %v1893_v29 }
 0x33e   : > { %v1724_v35 = vadd.f32 %v1723_v34, %v8778_v44  ;;  %v1725_v36 = vpop.f32.mrb[27].mxu0  ;;  %2201 = vmatmul.mubr.bf16.gmra.mrb[20].mxu1 %v1892_v28  ;;  %v1842_v38 = vmax.f32 %v1720_v31, 0.0 }
 0x33f   : > { %v1726_v37 = vadd.f32 %v1725_v36, %v8781_v45  ;;  %v1843_v42 = vmax.f32 %v1722_v33, 0.0 }
 0x340   : > { %v1844_v40 = vmax.f32 %v1724_v35, 0.0 }
 0x341   : > { %v1845_v43 = vmax.f32 %v1726_v37, 0.0 }
 0x342   : > { %v1894_v46 = vpack.c.bf16 %v1844_v40, %v1842_v38 }
 0x343   : > { %v1895_v47 = vpack.c.bf16 %v1845_v43, %v1843_v42  ;;  %v1729_v48 = vpop.f32.mrb[28].mxu0 }
 0x344   : > { %v1730_v49 = vadd.f32 %v1729_v48, %v8778_v44  ;;  %v1731_v50 = vpop.f32.mrb[29].mxu0 }
 0x345   : > { %v1732_v51 = vadd.f32 %v1731_v50, %v8781_v45  ;;  %v1733_v52 = vpop.f32.mrb[30].mxu0  ;;  %2210 = vmatprep.mubr.bf16.mxu1 %v1895_v47 }
 0x346   : > { %v1734_v53 = vadd.f32 %v1733_v52, %v8778_v44  ;;  %v1735_v54 = vpop.f32.mrb[31].mxu0  ;;  %2211 = vmatmul.mubr.bf16.gmra.mrb[24].mxu1 %v1894_v46  ;;  %v1846_v56 = vmax.f32 %v1730_v49, 0.0 }
 0x347   : > { %v1736_v55 = vadd.f32 %v1735_v54, %v8781_v45  ;;  %v1847_v58 = vmax.f32 %v1732_v51, 0.0 }
 0x348   : > { %v1848_v57 = vmax.f32 %v1734_v53, 0.0 }
 0x349   : > { %v1849_v59 = vmax.f32 %v1736_v55, 0.0 }
 0x34a   : > { %v1896_v60 = vpack.c.bf16 %v1848_v57, %v1846_v56 }
 0x34b   : > { %v1897_v61 = vpack.c.bf16 %v1849_v59, %v1847_v58  ;;  %v1739_v62 = vpop.f32.mrb[32].mxu0 }
 0x34c   : > { %v1740_v63 = vadd.f32 %v1739_v62, %v8778_v44  ;;  %v1741_v0 = vpop.f32.mrb[33].mxu0 }
 0x34d   : > { %v1742_v1 = vadd.f32 %v1741_v0, %v8781_v45  ;;  %v1743_v2 = vpop.f32.mrb[34].mxu0  ;;  %2220 = vmatprep.mubr.bf16.mxu1 %v1897_v61 }
 0x34e   : > { %v1744_v3 = vadd.f32 %v1743_v2, %v8778_v44  ;;  %v1745_v4 = vpop.f32.mrb[35].mxu0  ;;  %2221 = vmatmul.mubr.bf16.gmra.mrb[28].mxu1 %v1896_v60  ;;  %v1850_v6 = vmax.f32 %v1740_v63, 0.0 }
 0x34f   : > { %v1746_v5 = vadd.f32 %v1745_v4, %v8781_v45  ;;  %v1851_v8 = vmax.f32 %v1742_v1, 0.0  ;;  %v7260_v1 = vld [vmem:[#allocation8 + $0xf4] ss:$8 sps:$4 sm:$0xff]  }
 0x350   : > { %v1852_v7 = vmax.f32 %v1744_v3, 0.0  ;;  %v7258_v3 = vld [vmem:[#allocation8 + $0xf0] ss:$8 sps:$4 sm:$0xff]   ;;  %2641 = vmatprep.subr.bf16.mxu0 %v7260_v1 }
 0x351   : > { %v1853_v9 = vmax.f32 %v1746_v5, 0.0  ;;  %2642 = vmatpush1.bf16.msra.mxu0 %v7258_v3  ;;  %v7272_v1 = vld [vmem:[#allocation11 + $0x34] ss:$8 sps:$4 sm:$0xff]  }
 0x352   : > { %v1898_v10 = vpack.c.bf16 %v1852_v7, %v1850_v6 }
 0x353   : > { %v1899_v11 = vpack.c.bf16 %v1853_v9, %v1851_v8  ;;  %v1749_v12 = vpop.f32.mrb[36].mxu0 }
 0x354   : > { %v1750_v13 = vadd.f32 %v1749_v12, %v8778_v44  ;;  %v1751_v14 = vpop.f32.mrb[37].mxu0 }
 0x355   : > { %v1752_v15 = vadd.f32 %v1751_v14, %v8781_v45  ;;  %v1753_v16 = vpop.f32.mrb[38].mxu0  ;;  %2230 = vmatprep.mubr.bf16.mxu1 %v1899_v11 }
 0x356   : > { %v1754_v17 = vadd.f32 %v1753_v16, %v8778_v44  ;;  %v1755_v18 = vpop.f32.mrb[39].mxu0  ;;  %2231 = vmatmul.mubr.bf16.gmra.mrb[32].mxu1 %v1898_v10  ;;  %v1854_v20 = vmax.f32 %v1750_v13, 0.0 }
 0x357   : > { %v1756_v19 = vadd.f32 %v1755_v18, %v8781_v45  ;;  %v1855_v22 = vmax.f32 %v1752_v15, 0.0 }
 0x358   : > { %v1856_v21 = vmax.f32 %v1754_v17, 0.0 }
 0x359   : > { %v1857_v23 = vmax.f32 %v1756_v19, 0.0 }
 0x35a   : > { %v1900_v24 = vpack.c.bf16 %v1856_v21, %v1854_v20 }
 0x35b   : > { %v1901_v25 = vpack.c.bf16 %v1857_v23, %v1855_v22  ;;  %v1759_v26 = vpop.f32.mrb[40].mxu0 }
 0x35c   : > { %v1760_v27 = vadd.f32 %v1759_v26, %v8778_v44  ;;  %v1761_v28 = vpop.f32.mrb[41].mxu0 }
 0x35d   : > { %v1762_v29 = vadd.f32 %v1761_v28, %v8781_v45  ;;  %v1763_v30 = vpop.f32.mrb[42].mxu0  ;;  %2240 = vmatprep.mubr.bf16.mxu1 %v1901_v25 }
 0x35e   : > { %v1764_v31 = vadd.f32 %v1763_v30, %v8778_v44  ;;  %v1765_v32 = vpop.f32.mrb[43].mxu0  ;;  %2241 = vmatmul.mubr.bf16.gmra.mrb[36].mxu1 %v1900_v24  ;;  %v1858_v34 = vmax.f32 %v1760_v27, 0.0 }
 0x35f   : > { %v1766_v33 = vadd.f32 %v1765_v32, %v8781_v45  ;;  %v1859_v36 = vmax.f32 %v1762_v29, 0.0 }
 0x360   : > { %v1860_v35 = vmax.f32 %v1764_v31, 0.0 }
 0x361   : > { %v1861_v37 = vmax.f32 %v1766_v33, 0.0 }
 0x362   : > { %v1902_v38 = vpack.c.bf16 %v1860_v35, %v1858_v34 }
 0x363   : > { %v1903_v40 = vpack.c.bf16 %v1861_v37, %v1859_v36  ;;  %v1769_v42 = vpop.f32.mrb[44].mxu0 }
 0x364   : > { %v1770_v43 = vadd.f32 %v1769_v42, %v8778_v44  ;;  %v1771_v46 = vpop.f32.mrb[45].mxu0 }
 0x365   : > { %v1772_v47 = vadd.f32 %v1771_v46, %v8781_v45  ;;  %v1773_v48 = vpop.f32.mrb[46].mxu0  ;;  %2250 = vmatprep.mubr.bf16.mxu1 %v1903_v40 }
 0x366   : > { %v1774_v49 = vadd.f32 %v1773_v48, %v8778_v44  ;;  %v1775_v50 = vpop.f32.mrb[47].mxu0  ;;  %2251 = vmatmul.mubr.bf16.gmra.mrb[40].mxu1 %v1902_v38  ;;  %v1862_v52 = vmax.f32 %v1770_v43, 0.0 }
 0x367   : > { %v1776_v51 = vadd.f32 %v1775_v50, %v8781_v45  ;;  %v1863_v54 = vmax.f32 %v1772_v47, 0.0 }
 0x368   : > { %v1864_v53 = vmax.f32 %v1774_v49, 0.0 }
 0x369   : > { %v1865_v55 = vmax.f32 %v1776_v51, 0.0 }
 0x36a   : > { %v1904_v56 = vpack.c.bf16 %v1864_v53, %v1862_v52 }
 0x36b   : > { %v1905_v57 = vpack.c.bf16 %v1865_v55, %v1863_v54  ;;  %v1779_v58 = vpop.f32.mrb[48].mxu0 }
 0x36c   : > { %v1780_v59 = vadd.f32 %v1779_v58, %v8778_v44  ;;  %v1781_v60 = vpop.f32.mrb[49].mxu0  ;;  %v7264_v58 = vld [vmem:[#allocation11 + $0x10] ss:$8 sps:$4 sm:$0xff]  }
 0x36d   : > { %v1782_v61 = vadd.f32 %v1781_v60, %v8781_v45  ;;  %v1783_v62 = vpop.f32.mrb[50].mxu0  ;;  %2260 = vmatprep.mubr.bf16.mxu1 %v1905_v57  ;;  %v7263_v57 = vld [vmem:[#allocation11 + $0x4] ss:$8 sps:$4 sm:$0xff]   ;;  %v7267_v60 = vld [vmem:[#allocation11 + $0x20] ss:$8 sps:$4 sm:$0xff]  }
 0x36e   : > { %v1784_v63 = vadd.f32 %v1783_v62, %v8778_v44  ;;  %v1785_v0 = vpop.f32.mrb[51].mxu0  ;;  %2261 = vmatmul.mubr.bf16.gmra.mrb[44].mxu1 %v1904_v56  ;;  %v1866_v4 = vmax.f32 %v1780_v59, 0.0  ;;  %v7261_v56 = vld [vmem:[#allocation11] ss:$8 sps:$4 sm:$0xff]   ;;  %3104 = vmatprep.subr.bf16.mxu1 %v7263_v57  ;;  %v7266_v59 = vld [vmem:[#allocation11 + $0x14] ss:$8 sps:$4 sm:$0xff]  }
 0x36f   : > { %v1786_v2 = vadd.f32 %v1785_v0, %v8781_v45  ;;  %v1867_v6 = vmax.f32 %v1782_v61, 0.0  ;;  %3105 = vmatpush1.bf16.msra.mxu1 %v7261_v56  ;;  %v7269_v61 = vld [vmem:[#allocation11 + $0x24] ss:$8 sps:$4 sm:$0xff]   ;;  %v7270_v0 = vld [vmem:[#allocation11 + $0x30] ss:$8 sps:$4 sm:$0xff]  }
 0x370   : > { %v1868_v5 = vmax.f32 %v1784_v63, 0.0  ;;  %3106 = vmatprep.subr.bf16.mxu1 %v7266_v59  ;;  %v7288_v57 = vld [vmem:[#allocation11 + $0x90] ss:$8 sps:$4 sm:$0xff]  }
 0x371   : > { %v1869_v7 = vmax.f32 %v1786_v2, 0.0 }
 0x372   : > { %v1906_v8 = vpack.c.bf16 %v1868_v5, %v1866_v4 }
 0x373   : > { %v1907_v9 = vpack.c.bf16 %v1869_v7, %v1867_v6  ;;  %v1789_v10 = vpop.f32.mrb[52].mxu0  ;;  %3107 = vmatpush1.bf16.msra.mxu1 %v7264_v58 }
 0x374   : > { %v1790_v11 = vadd.f32 %v1789_v10, %v8778_v44  ;;  %v1791_v12 = vpop.f32.mrb[53].mxu0  ;;  %3108 = vmatprep.subr.bf16.mxu1 %v7269_v61 }
 0x375   : > { %v1792_v13 = vadd.f32 %v1791_v12, %v8781_v45  ;;  %v1793_v14 = vpop.f32.mrb[54].mxu0  ;;  %2270 = vmatprep.mubr.bf16.mxu1 %v1907_v9  ;;  %v7275_v9 = vld [vmem:[#allocation11 + $0x44] ss:$8 sps:$4 sm:$0xff]  }
 0x376   : > { %v1794_v15 = vadd.f32 %v1793_v14, %v8778_v44  ;;  %v1795_v16 = vpop.f32.mrb[55].mxu0  ;;  %2271 = vmatmul.mubr.bf16.gmra.mrb[48].mxu1 %v1906_v8  ;;  %v1870_v18 = vmax.f32 %v1790_v11, 0.0  ;;  %v7273_v8 = vld [vmem:[#allocation11 + $0x40] ss:$8 sps:$4 sm:$0xff]   ;;  %v7278_v11 = vld [vmem:[#allocation11 + $0x54] ss:$8 sps:$4 sm:$0xff]  }
 0x377   : > { %v1796_v17 = vadd.f32 %v1795_v16, %v8781_v45  ;;  %v1871_v20 = vmax.f32 %v1792_v13, 0.0  ;;  %3109 = vmatpush1.bf16.msra.mxu1 %v7267_v60 }
 0x378   : > { %v1872_v19 = vmax.f32 %v1794_v15, 0.0  ;;  %3110 = vmatprep.subr.bf16.mxu1 %v7272_v1 }
 0x379   : > { %v1873_v21 = vmax.f32 %v1796_v17, 0.0  ;;  %v7276_v17 = vld [vmem:[#allocation11 + $0x50] ss:$8 sps:$4 sm:$0xff]  }
 0x37a   : > { %v1908_v22 = vpack.c.bf16 %v1872_v19, %v1870_v18 }
 0x37b   : > { %v1909_v23 = vpack.c.bf16 %v1873_v21, %v1871_v20  ;;  %v1799_v24 = vpop.f32.mrb[56].mxu0  ;;  %3111 = vmatpush1.bf16.msra.mxu1 %v7270_v0  ;;  %v7281_v20 = vld [vmem:[#allocation11 + $0x64] ss:$8 sps:$4 sm:$0xff]  }
 0x37c   : > { %v1800_v25 = vadd.f32 %v1799_v24, %v8778_v44  ;;  %v1801_v26 = vpop.f32.mrb[57].mxu0  ;;  %3112 = vmatprep.subr.bf16.mxu1 %v7275_v9 }
 0x37d   : > { %v1802_v27 = vadd.f32 %v1801_v26, %v8781_v45  ;;  %v1803_v28 = vpop.f32.mrb[58].mxu0  ;;  %2280 = vmatprep.mubr.bf16.mxu1 %v1909_v23 }
 0x37e   : > { %v1804_v29 = vadd.f32 %v1803_v28, %v8778_v44  ;;  %v1805_v30 = vpop.f32.mrb[59].mxu0  ;;  %2281 = vmatmul.mubr.bf16.gmra.mrb[52].mxu1 %v1908_v22  ;;  %v1874_v32 = vmax.f32 %v1800_v25, 0.0 }
 0x37f   : > { %v1806_v31 = vadd.f32 %v1805_v30, %v8781_v45  ;;  %v1875_v34 = vmax.f32 %v1802_v27, 0.0  ;;  %3113 = vmatpush1.bf16.msra.mxu1 %v7273_v8  ;;  %v7279_v27 = vld [vmem:[#allocation11 + $0x60] ss:$8 sps:$4 sm:$0xff]  }
 0x380   : > { %v1876_v33 = vmax.f32 %v1804_v29, 0.0  ;;  %3114 = vmatprep.subr.bf16.mxu1 %v7278_v11  ;;  %v7284_v29 = vld [vmem:[#allocation11 + $0x74] ss:$8 sps:$4 sm:$0xff]   ;;  %v7294_v11 = vld [vmem:[#allocation11 + $0xb0] ss:$8 sps:$4 sm:$0xff]  }
 0x381   : > { %v1877_v35 = vmax.f32 %v1806_v31, 0.0 }
 0x382   : > { %v1910_v36 = vpack.c.bf16 %v1876_v33, %v1874_v32 }
 0x383   : > { %v1911_v37 = vpack.c.bf16 %v1877_v35, %v1875_v34  ;;  %v1809_v38 = vpop.f32.mrb[60].mxu0  ;;  %3115 = vmatpush1.bf16.msra.mxu1 %v7276_v17  ;;  %v7282_v35 = vld [vmem:[#allocation11 + $0x70] ss:$8 sps:$4 sm:$0xff]  }
 0x384   : > { %v1810_v40 = vadd.f32 %v1809_v38, %v8778_v44  ;;  %v1811_v42 = vpop.f32.mrb[61].mxu0  ;;  %3116 = vmatprep.subr.bf16.mxu1 %v7281_v20  ;;  %v7287_v38 = vld [vmem:[#allocation11 + $0x84] ss:$8 sps:$4 sm:$0xff]  }
 0x385   : > { %v1812_v43 = vadd.f32 %v1811_v42, %v8781_v45  ;;  %v1813_v46 = vpop.f32.mrb[62].mxu0  ;;  %2290 = vmatprep.mubr.bf16.mxu1 %v1911_v37 }
 0x386   : > { %v1814_v47 = vadd.f32 %v1813_v46, %v8778_v44  ;;  %v1815_v48 = vpop.f32.mrb[63].mxu0  ;;  %2291 = vmatmul.mubr.bf16.gmra.mrb[56].mxu1 %v1910_v36  ;;  %v1878_v50 = vmax.f32 %v1810_v40, 0.0  ;;  %v1946_v44 = vld [vmem:[#allocation7] sm:$0x3] }
 0x387   : > { %v1816_v49 = vadd.f32 %v1815_v48, %v8781_v45  ;;  %v1879_v52 = vmax.f32 %v1812_v43, 0.0  ;;  %v8848_v45 = vrot.slane %v1946_v44, %v8772_v39  ;;  %v8851_v62 = vrot.slane %v1946_v44, %v8775_v41  ;;  %3117 = vmatpush1.bf16.msra.mxu1 %v7279_v27  ;;  %v7293_v44 = vld [vmem:[#allocation11 + $0xa4] ss:$8 sps:$4 sm:$0xff]  }
 0x388   : > { %v1880_v51 = vmax.f32 %v1814_v47, 0.0  ;;  %3118 = vmatprep.subr.bf16.mxu1 %v7284_v29  ;;  %v7300_v29 = vld [vmem:[#allocation11 + $0xd0] ss:$8 sps:$4 sm:$0xff]  }
 0x389   : > { %v1881_v53 = vmax.f32 %v1816_v49, 0.0  ;;  %v7285_v49 = vld [vmem:[#allocation11 + $0x80] ss:$8 sps:$4 sm:$0xff]  }
 0x38a   : > { %v1912_v54 = vpack.c.bf16 %v1880_v51, %v1878_v50  ;;  %v7290_v51 = vld [vmem:[#allocation11 + $0x94] ss:$8 sps:$4 sm:$0xff]  }
 0x38b   : > { %v1913_v55 = vpack.c.bf16 %v1881_v53, %v1879_v52  ;;  %3119 = vmatpush1.bf16.msra.mxu1 %v7282_v35 }
 0x38c   : > { %3120 = vmatprep.subr.bf16.mxu1 %v7287_v38 }
 0x38d   : > { %2300 = vmatprep.mubr.bf16.mxu1 %v1913_v55 }
 0x38e   : > { %2301 = vmatmul.mubr.bf16.gmra.mrb[60].mxu1 %v1912_v54 }
 0x38f   : > { %3121 = vmatpush1.bf16.msra.mxu1 %v7285_v49 }
 0x390   : > { %3122 = vmatprep.subr.bf16.mxu1 %v7290_v51 }
 0x393   : > { %3123 = vmatpush1.bf16.msra.mxu1 %v7288_v57 }
 0x394   : > { %3124 = vmatprep.subr.bf16.mxu1 %v7293_v44 }
 0x3e9   : > { %v2152_v63 = vpop.f32.mrb[0].mxu1 }
 0x3ea   : > { %v2153_v2 = vadd.f32 %v2152_v63, %v8848_v45  ;;  %v2154_v3 = vpop.f32.mrb[1].mxu1 }
 0x3eb   : > { %v2155_v4 = vadd.f32 %v2154_v3, %v8851_v62  ;;  %v2156_v5 = vpop.f32.mrb[2].mxu1  ;;  %v7291_v3 = vld [vmem:[#allocation11 + $0xa0] ss:$8 sps:$4 sm:$0xff]  }
 0x3ec   : > { %v2157_v6 = vadd.f32 %v2156_v5, %v8848_v45  ;;  %v2158_v7 = vpop.f32.mrb[3].mxu1  ;;  %v2311_v12 = vmax.f32 %v2153_v2, 0.0  ;;  %v7296_v5 = vld [vmem:[#allocation11 + $0xb4] ss:$8 sps:$4 sm:$0xff]   ;;  %3125 = vmatpush1.bf16.msra.mxu1 %v7291_v3 }
 0x3ed   : > { %v2159_v10 = vadd.f32 %v2158_v7, %v8851_v62  ;;  %v2312_v14 = vmax.f32 %v2155_v4, 0.0  ;;  %3126 = vmatprep.subr.bf16.mxu1 %v7296_v5 }
 0x3ee   : > { %v2313_v13 = vmax.f32 %v2157_v6, 0.0 }
 0x3ef   : > { %v2314_v15 = vmax.f32 %v2159_v10, 0.0 }
 0x3f0   : > { %v2375_v16 = vpack.c.bf16 %v2313_v13, %v2311_v12  ;;  %3127 = vmatpush1.bf16.msra.mxu1 %v7294_v11 }
 0x3f1   : > { %v2376_v18 = vpack.c.bf16 %v2314_v15, %v2312_v14  ;;  %v2162_v19 = vpop.f32.mrb[4].mxu1  ;;  %v7299_v14 = vld [vmem:[#allocation11 + $0xc4] ss:$8 sps:$4 sm:$0xff]  }
 0x3f2   : > { %v2163_v21 = vadd.f32 %v2162_v19, %v8848_v45  ;;  %v2164_v22 = vpop.f32.mrb[5].mxu1  ;;  %3128 = vmatprep.subr.bf16.mxu1 %v7299_v14 }
 0x3f3   : > { %v2165_v23 = vadd.f32 %v2164_v22, %v8851_v62  ;;  %v2166_v24 = vpop.f32.mrb[6].mxu1  ;;  %2643 = vmatprep.mubr.bf16.mxu0 %v2376_v18 }
 0x3f4   : > { %v2167_v25 = vadd.f32 %v2166_v24, %v8848_v45  ;;  %v2168_v26 = vpop.f32.mrb[7].mxu1  ;;  %2644 = vmatmul.mubr.bf16.vlgmr.msra.gmra.mrb[64].mxu0 %v2375_v16  ;;  %v2315_v30 = vmax.f32 %v2163_v21, 0.0  ;;  %v7297_v21 = vld [vmem:[#allocation11 + $0xc0] ss:$8 sps:$4 sm:$0xff]  }
 0x3f5   : > { %v2169_v28 = vadd.f32 %v2168_v26, %v8851_v62  ;;  %v2316_v32 = vmax.f32 %v2165_v23, 0.0  ;;  %v7302_v23 = vld [vmem:[#allocation11 + $0xd4] ss:$8 sps:$4 sm:$0xff]   ;;  %3129 = vmatpush1.bf16.msra.mxu1 %v7297_v21 }
 0x3f6   : > { %v2317_v31 = vmax.f32 %v2167_v25, 0.0  ;;  %3130 = vmatprep.subr.bf16.mxu1 %v7302_v23 }
 0x3f7   : > { %v2318_v33 = vmax.f32 %v2169_v28, 0.0 }
 0x3f8   : > { %v2377_v34 = vpack.c.bf16 %v2317_v31, %v2315_v30 }
 0x3f9   : > { %v2378_v36 = vpack.c.bf16 %v2318_v33, %v2316_v32  ;;  %v2172_v37 = vpop.f32.mrb[8].mxu1  ;;  %v7305_v32 = vld [vmem:[#allocation11 + $0xe4] ss:$8 sps:$4 sm:$0xff]   ;;  %3131 = vmatpush1.bf16.msra.mxu1 %v7300_v29 }
 0x3fa   : > { %v2173_v40 = vadd.f32 %v2172_v37, %v8848_v45  ;;  %v2174_v42 = vpop.f32.mrb[9].mxu1  ;;  %3132 = vmatprep.subr.bf16.mxu1 %v7305_v32 }
 0x3fb   : > { %v2175_v43 = vadd.f32 %v2174_v42, %v8851_v62  ;;  %v2176_v46 = vpop.f32.mrb[10].mxu1  ;;  %2653 = vmatprep.mubr.bf16.mxu0 %v2378_v36 }
 0x3fc   : > { %v2177_v47 = vadd.f32 %v2176_v46, %v8848_v45  ;;  %v2178_v48 = vpop.f32.mrb[11].mxu1  ;;  %2654 = vmatmul.mubr.bf16.gmra.mrb[68].mxu0 %v2377_v34  ;;  %v2319_v52 = vmax.f32 %v2173_v40, 0.0  ;;  %v7303_v40 = vld [vmem:[#allocation11 + $0xe0] ss:$8 sps:$4 sm:$0xff]  }
 0x3fd   : > { %v2179_v50 = vadd.f32 %v2178_v48, %v8851_v62  ;;  %v2320_v54 = vmax.f32 %v2175_v43, 0.0  ;;  %3133 = vmatpush1.bf16.msra.mxu1 %v7303_v40 }
 0x3fe   : > { %v2321_v53 = vmax.f32 %v2177_v47, 0.0 }
 0x3ff   : > { %v2322_v55 = vmax.f32 %v2179_v50, 0.0 }
 0x400   : > { %v2379_v56 = vpack.c.bf16 %v2321_v53, %v2319_v52 }
 0x401   : > { %v2380_v58 = vpack.c.bf16 %v2322_v55, %v2320_v54  ;;  %v2182_v59 = vpop.f32.mrb[12].mxu1 }
 0x402   : > { %v2183_v60 = vadd.f32 %v2182_v59, %v8848_v45  ;;  %v2184_v61 = vpop.f32.mrb[13].mxu1 }
 0x403   : > { %v2185_v63 = vadd.f32 %v2184_v61, %v8851_v62  ;;  %v2186_v0 = vpop.f32.mrb[14].mxu1  ;;  %2663 = vmatprep.mubr.bf16.mxu0 %v2380_v58 }
 0x404   : > { %v2187_v1 = vadd.f32 %v2186_v0, %v8848_v45  ;;  %v2188_v2 = vpop.f32.mrb[15].mxu1  ;;  %2664 = vmatmul.mubr.bf16.gmra.mrb[72].mxu0 %v2379_v56  ;;  %v2323_v6 = vmax.f32 %v2183_v60, 0.0 }
 0x405   : > { %v2189_v4 = vadd.f32 %v2188_v2, %v8851_v62  ;;  %v2324_v8 = vmax.f32 %v2185_v63, 0.0 }
 0x406   : > { %v2325_v7 = vmax.f32 %v2187_v1, 0.0 }
 0x407   : > { %v2326_v9 = vmax.f32 %v2189_v4, 0.0 }
 0x408   : > { %v2381_v10 = vpack.c.bf16 %v2325_v7, %v2323_v6 }
 0x409   : > { %v2382_v12 = vpack.c.bf16 %v2326_v9, %v2324_v8  ;;  %v2192_v13 = vpop.f32.mrb[16].mxu1 }
 0x40a   : > { %v2193_v15 = vadd.f32 %v2192_v13, %v8848_v45  ;;  %v2194_v16 = vpop.f32.mrb[17].mxu1 }
 0x40b   : > { %v2195_v17 = vadd.f32 %v2194_v16, %v8851_v62  ;;  %v2196_v18 = vpop.f32.mrb[18].mxu1  ;;  %2673 = vmatprep.mubr.bf16.mxu0 %v2382_v12 }
 0x40c   : > { %v2197_v19 = vadd.f32 %v2196_v18, %v8848_v45  ;;  %v2198_v20 = vpop.f32.mrb[19].mxu1  ;;  %2674 = vmatmul.mubr.bf16.gmra.mrb[76].mxu0 %v2381_v10  ;;  %v2327_v24 = vmax.f32 %v2193_v15, 0.0 }
 0x40d   : > { %v2199_v22 = vadd.f32 %v2198_v20, %v8851_v62  ;;  %v2328_v26 = vmax.f32 %v2195_v17, 0.0 }
 0x40e   : > { %v2329_v25 = vmax.f32 %v2197_v19, 0.0 }
 0x40f   : > { %v2330_v27 = vmax.f32 %v2199_v22, 0.0 }
 0x410   : > { %v2383_v28 = vpack.c.bf16 %v2329_v25, %v2327_v24 }
 0x411   : > { %v2384_v30 = vpack.c.bf16 %v2330_v27, %v2328_v26  ;;  %v2202_v31 = vpop.f32.mrb[20].mxu1 }
 0x412   : > { %v2203_v33 = vadd.f32 %v2202_v31, %v8848_v45  ;;  %v2204_v34 = vpop.f32.mrb[21].mxu1 }
 0x413   : > { %v2205_v35 = vadd.f32 %v2204_v34, %v8851_v62  ;;  %v2206_v36 = vpop.f32.mrb[22].mxu1  ;;  %2683 = vmatprep.mubr.bf16.mxu0 %v2384_v30 }
 0x414   : > { %v2207_v37 = vadd.f32 %v2206_v36, %v8848_v45  ;;  %v2208_v38 = vpop.f32.mrb[23].mxu1  ;;  %2684 = vmatmul.mubr.bf16.gmra.mrb[80].mxu0 %v2383_v28  ;;  %v2331_v43 = vmax.f32 %v2203_v33, 0.0 }
 0x415   : > { %v2209_v42 = vadd.f32 %v2208_v38, %v8851_v62  ;;  %v2332_v47 = vmax.f32 %v2205_v35, 0.0 }
 0x416   : > { %v2333_v46 = vmax.f32 %v2207_v37, 0.0 }
 0x417   : > { %v2334_v48 = vmax.f32 %v2209_v42, 0.0 }
 0x418   : > { %v2385_v49 = vpack.c.bf16 %v2333_v46, %v2331_v43 }
 0x419   : > { %v2386_v50 = vpack.c.bf16 %v2334_v48, %v2332_v47  ;;  %v2212_v51 = vpop.f32.mrb[24].mxu1 }
 0x41a   : > { %v2213_v52 = vadd.f32 %v2212_v51, %v8848_v45  ;;  %v2214_v53 = vpop.f32.mrb[25].mxu1 }
 0x41b   : > { %v2215_v54 = vadd.f32 %v2214_v53, %v8851_v62  ;;  %v2216_v55 = vpop.f32.mrb[26].mxu1  ;;  %2693 = vmatprep.mubr.bf16.mxu0 %v2386_v50 }
 0x41c   : > { %v2217_v56 = vadd.f32 %v2216_v55, %v8848_v45  ;;  %v2218_v57 = vpop.f32.mrb[27].mxu1  ;;  %2694 = vmatmul.mubr.bf16.gmra.mrb[84].mxu0 %v2385_v49  ;;  %v2335_v59 = vmax.f32 %v2213_v52, 0.0 }
 0x41d   : > { %v2219_v58 = vadd.f32 %v2218_v57, %v8851_v62  ;;  %v2336_v60 = vmax.f32 %v2215_v54, 0.0 }
 0x41e   : > { %v2337_v44 = vmax.f32 %v2217_v56, 0.0 }
 0x41f   : > { %v2338_v61 = vmax.f32 %v2219_v58, 0.0 }
 0x420   : > { %v2387_v63 = vpack.c.bf16 %v2337_v44, %v2335_v59 }
 0x421   : > { %v2388_v0 = vpack.c.bf16 %v2338_v61, %v2336_v60  ;;  %v2222_v1 = vpop.f32.mrb[28].mxu1 }
 0x422   : > { %v2223_v2 = vadd.f32 %v2222_v1, %v8848_v45  ;;  %v2224_v3 = vpop.f32.mrb[29].mxu1 }
 0x423   : > { %v2225_v4 = vadd.f32 %v2224_v3, %v8851_v62  ;;  %v2226_v5 = vpop.f32.mrb[30].mxu1  ;;  %2703 = vmatprep.mubr.bf16.mxu0 %v2388_v0 }
 0x424   : > { %v2227_v6 = vadd.f32 %v2226_v5, %v8848_v45  ;;  %v2228_v7 = vpop.f32.mrb[31].mxu1  ;;  %2704 = vmatmul.mubr.bf16.gmra.mrb[88].mxu0 %v2387_v63  ;;  %v2339_v9 = vmax.f32 %v2223_v2, 0.0 }
 0x425   : > { %v2229_v8 = vadd.f32 %v2228_v7, %v8851_v62  ;;  %v2340_v11 = vmax.f32 %v2225_v4, 0.0 }
 0x426   : > { %v2341_v10 = vmax.f32 %v2227_v6, 0.0 }
 0x427   : > { %v2342_v12 = vmax.f32 %v2229_v8, 0.0 }
 0x428   : > { %v2389_v13 = vpack.c.bf16 %v2341_v10, %v2339_v9 }
 0x429   : > { %v2390_v14 = vpack.c.bf16 %v2342_v12, %v2340_v11  ;;  %v2232_v15 = vpop.f32.mrb[32].mxu1 }
 0x42a   : > { %v2233_v16 = vadd.f32 %v2232_v15, %v8848_v45  ;;  %v2234_v17 = vpop.f32.mrb[33].mxu1 }
 0x42b   : > { %v2235_v18 = vadd.f32 %v2234_v17, %v8851_v62  ;;  %v2236_v19 = vpop.f32.mrb[34].mxu1  ;;  %2713 = vmatprep.mubr.bf16.mxu0 %v2390_v14 }
 0x42c   : > { %v2237_v20 = vadd.f32 %v2236_v19, %v8848_v45  ;;  %v2238_v21 = vpop.f32.mrb[35].mxu1  ;;  %2714 = vmatmul.mubr.bf16.gmra.mrb[92].mxu0 %v2389_v13  ;;  %v2343_v23 = vmax.f32 %v2233_v16, 0.0 }
 0x42d   : > { %v2239_v22 = vadd.f32 %v2238_v21, %v8851_v62  ;;  %v2344_v25 = vmax.f32 %v2235_v18, 0.0  ;;  %v7308_v18 = vld [vmem:[#allocation11 + $0xf4] ss:$8 sps:$4 sm:$0xff]  }
 0x42e   : > { %v2345_v24 = vmax.f32 %v2237_v20, 0.0  ;;  %v7306_v20 = vld [vmem:[#allocation11 + $0xf0] ss:$8 sps:$4 sm:$0xff]   ;;  %3134 = vmatprep.subr.bf16.mxu1 %v7308_v18 }
 0x42f   : > { %v2346_v26 = vmax.f32 %v2239_v22, 0.0  ;;  %3135 = vmatpush1.bf16.msra.mxu1 %v7306_v20  ;;  %v7320_v18 = vld [vmem:[#allocation14 + $0x34] ss:$8 sps:$4 sm:$0xff]  }
 0x430   : > { %v2391_v27 = vpack.c.bf16 %v2345_v24, %v2343_v23 }
 0x431   : > { %v2392_v28 = vpack.c.bf16 %v2346_v26, %v2344_v25  ;;  %v2242_v29 = vpop.f32.mrb[36].mxu1 }
 0x432   : > { %v2243_v30 = vadd.f32 %v2242_v29, %v8848_v45  ;;  %v2244_v31 = vpop.f32.mrb[37].mxu1 }
 0x433   : > { %v2245_v32 = vadd.f32 %v2244_v31, %v8851_v62  ;;  %v2246_v33 = vpop.f32.mrb[38].mxu1  ;;  %2723 = vmatprep.mubr.bf16.mxu0 %v2392_v28 }
 0x434   : > { %v2247_v34 = vadd.f32 %v2246_v33, %v8848_v45  ;;  %v2248_v35 = vpop.f32.mrb[39].mxu1  ;;  %2724 = vmatmul.mubr.bf16.gmra.mrb[96].mxu0 %v2391_v27  ;;  %v2347_v37 = vmax.f32 %v2243_v30, 0.0 }
 0x435   : > { %v2249_v36 = vadd.f32 %v2248_v35, %v8851_v62  ;;  %v2348_v40 = vmax.f32 %v2245_v32, 0.0 }
 0x436   : > { %v2349_v38 = vmax.f32 %v2247_v34, 0.0 }
 0x437   : > { %v2350_v42 = vmax.f32 %v2249_v36, 0.0 }
 0x438   : > { %v2393_v43 = vpack.c.bf16 %v2349_v38, %v2347_v37 }
 0x439   : > { %v2394_v46 = vpack.c.bf16 %v2350_v42, %v2348_v40  ;;  %v2252_v47 = vpop.f32.mrb[40].mxu1 }
 0x43a   : > { %v2253_v48 = vadd.f32 %v2252_v47, %v8848_v45  ;;  %v2254_v49 = vpop.f32.mrb[41].mxu1 }
 0x43b   : > { %v2255_v50 = vadd.f32 %v2254_v49, %v8851_v62  ;;  %v2256_v51 = vpop.f32.mrb[42].mxu1  ;;  %2733 = vmatprep.mubr.bf16.mxu0 %v2394_v46 }
 0x43c   : > { %v2257_v52 = vadd.f32 %v2256_v51, %v8848_v45  ;;  %v2258_v53 = vpop.f32.mrb[43].mxu1  ;;  %2734 = vmatmul.mubr.bf16.gmra.mrb[100].mxu0 %v2393_v43  ;;  %v2351_v55 = vmax.f32 %v2253_v48, 0.0 }
 0x43d   : > { %v2259_v54 = vadd.f32 %v2258_v53, %v8851_v62  ;;  %v2352_v57 = vmax.f32 %v2255_v50, 0.0 }
 0x43e   : > { %v2353_v56 = vmax.f32 %v2257_v52, 0.0 }
 0x43f   : > { %v2354_v58 = vmax.f32 %v2259_v54, 0.0 }
 0x440   : > { %v2395_v59 = vpack.c.bf16 %v2353_v56, %v2351_v55 }
 0x441   : > { %v2396_v44 = vpack.c.bf16 %v2354_v58, %v2352_v57  ;;  %v2262_v60 = vpop.f32.mrb[44].mxu1 }
 0x442   : > { %v2263_v61 = vadd.f32 %v2262_v60, %v8848_v45  ;;  %v2264_v63 = vpop.f32.mrb[45].mxu1 }
 0x443   : > { %v2265_v0 = vadd.f32 %v2264_v63, %v8851_v62  ;;  %v2266_v1 = vpop.f32.mrb[46].mxu1  ;;  %2743 = vmatprep.mubr.bf16.mxu0 %v2396_v44 }
 0x444   : > { %v2267_v2 = vadd.f32 %v2266_v1, %v8848_v45  ;;  %v2268_v3 = vpop.f32.mrb[47].mxu1  ;;  %2744 = vmatmul.mubr.bf16.gmra.mrb[104].mxu0 %v2395_v59  ;;  %v2355_v5 = vmax.f32 %v2263_v61, 0.0 }
 0x445   : > { %v2269_v4 = vadd.f32 %v2268_v3, %v8851_v62  ;;  %v2356_v7 = vmax.f32 %v2265_v0, 0.0 }
 0x446   : > { %v2357_v6 = vmax.f32 %v2267_v2, 0.0 }
 0x447   : > { %v2358_v8 = vmax.f32 %v2269_v4, 0.0 }
 0x448   : > { %v2397_v9 = vpack.c.bf16 %v2357_v6, %v2355_v5 }
 0x449   : > { %v2398_v10 = vpack.c.bf16 %v2358_v8, %v2356_v7  ;;  %v2272_v11 = vpop.f32.mrb[48].mxu1 }
 0x44a   : > { %v2273_v12 = vadd.f32 %v2272_v11, %v8848_v45  ;;  %v2274_v13 = vpop.f32.mrb[49].mxu1  ;;  %v7312_v11 = vld [vmem:[#allocation14 + $0x10] ss:$8 sps:$4 sm:$0xff]  }
 0x44b   : > { %v2275_v14 = vadd.f32 %v2274_v13, %v8851_v62  ;;  %v2276_v15 = vpop.f32.mrb[50].mxu1  ;;  %2753 = vmatprep.mubr.bf16.mxu0 %v2398_v10  ;;  %v7311_v10 = vld [vmem:[#allocation14 + $0x4] ss:$8 sps:$4 sm:$0xff]   ;;  %v7315_v13 = vld [vmem:[#allocation14 + $0x20] ss:$8 sps:$4 sm:$0xff]  }
 0x44c   : > { %v2277_v16 = vadd.f32 %v2276_v15, %v8848_v45  ;;  %v2278_v17 = vpop.f32.mrb[51].mxu1  ;;  %2754 = vmatmul.mubr.bf16.gmra.mrb[108].mxu0 %v2397_v9  ;;  %v2359_v21 = vmax.f32 %v2273_v12, 0.0  ;;  %v7309_v9 = vld [vmem:[#allocation14] ss:$8 sps:$4 sm:$0xff]   ;;  %3597 = vmatprep.subr.bf16.mxu0 %v7311_v10  ;;  %v7314_v12 = vld [vmem:[#allocation14 + $0x14] ss:$8 sps:$4 sm:$0xff]  }
 0x44d   : > { %v2279_v19 = vadd.f32 %v2278_v17, %v8851_v62  ;;  %v2360_v23 = vmax.f32 %v2275_v14, 0.0  ;;  %3598 = vmatpush1.bf16.msra.mxu0 %v7309_v9  ;;  %v7317_v14 = vld [vmem:[#allocation14 + $0x24] ss:$8 sps:$4 sm:$0xff]   ;;  %v7318_v17 = vld [vmem:[#allocation14 + $0x30] ss:$8 sps:$4 sm:$0xff]  }
 0x44e   : > { %v2361_v22 = vmax.f32 %v2277_v16, 0.0  ;;  %3599 = vmatprep.subr.bf16.mxu0 %v7314_v12  ;;  %v7336_v10 = vld [vmem:[#allocation14 + $0x90] ss:$8 sps:$4 sm:$0xff]  }
 0x44f   : > { %v2362_v24 = vmax.f32 %v2279_v19, 0.0 }
 0x450   : > { %v2399_v25 = vpack.c.bf16 %v2361_v22, %v2359_v21 }
 0x451   : > { %v2400_v26 = vpack.c.bf16 %v2362_v24, %v2360_v23  ;;  %v2282_v27 = vpop.f32.mrb[52].mxu1  ;;  %3600 = vmatpush1.bf16.msra.mxu0 %v7312_v11 }
 0x452   : > { %v2283_v28 = vadd.f32 %v2282_v27, %v8848_v45  ;;  %v2284_v29 = vpop.f32.mrb[53].mxu1  ;;  %3601 = vmatprep.subr.bf16.mxu0 %v7317_v14 }
 0x453   : > { %v2285_v30 = vadd.f32 %v2284_v29, %v8851_v62  ;;  %v2286_v31 = vpop.f32.mrb[54].mxu1  ;;  %2763 = vmatprep.mubr.bf16.mxu0 %v2400_v26  ;;  %v7323_v26 = vld [vmem:[#allocation14 + $0x44] ss:$8 sps:$4 sm:$0xff]  }
 0x454   : > { %v2287_v32 = vadd.f32 %v2286_v31, %v8848_v45  ;;  %v2288_v33 = vpop.f32.mrb[55].mxu1  ;;  %2764 = vmatmul.mubr.bf16.gmra.mrb[112].mxu0 %v2399_v25  ;;  %v2363_v35 = vmax.f32 %v2283_v28, 0.0  ;;  %v7321_v25 = vld [vmem:[#allocation14 + $0x40] ss:$8 sps:$4 sm:$0xff]   ;;  %v7326_v28 = vld [vmem:[#allocation14 + $0x54] ss:$8 sps:$4 sm:$0xff]  }
 0x455   : > { %v2289_v34 = vadd.f32 %v2288_v33, %v8851_v62  ;;  %v2364_v37 = vmax.f32 %v2285_v30, 0.0  ;;  %3602 = vmatpush1.bf16.msra.mxu0 %v7315_v13 }
 0x456   : > { %v2365_v36 = vmax.f32 %v2287_v32, 0.0  ;;  %3603 = vmatprep.subr.bf16.mxu0 %v7320_v18 }
 0x457   : > { %v2366_v38 = vmax.f32 %v2289_v34, 0.0  ;;  %v7324_v34 = vld [vmem:[#allocation14 + $0x50] ss:$8 sps:$4 sm:$0xff]  }
 0x458   : > { %v2401_v40 = vpack.c.bf16 %v2365_v36, %v2363_v35 }
 0x459   : > { %v2402_v42 = vpack.c.bf16 %v2366_v38, %v2364_v37  ;;  %v2292_v43 = vpop.f32.mrb[56].mxu1  ;;  %3604 = vmatpush1.bf16.msra.mxu0 %v7318_v17  ;;  %v7329_v37 = vld [vmem:[#allocation14 + $0x64] ss:$8 sps:$4 sm:$0xff]  }
 0x45a   : > { %v2293_v46 = vadd.f32 %v2292_v43, %v8848_v45  ;;  %v2294_v47 = vpop.f32.mrb[57].mxu1  ;;  %3605 = vmatprep.subr.bf16.mxu0 %v7323_v26 }
 0x45b   : > { %v2295_v48 = vadd.f32 %v2294_v47, %v8851_v62  ;;  %v2296_v49 = vpop.f32.mrb[58].mxu1  ;;  %2773 = vmatprep.mubr.bf16.mxu0 %v2402_v42 }
 0x45c   : > { %v2297_v50 = vadd.f32 %v2296_v49, %v8848_v45  ;;  %v2298_v51 = vpop.f32.mrb[59].mxu1  ;;  %2774 = vmatmul.mubr.bf16.gmra.mrb[116].mxu0 %v2401_v40  ;;  %v2367_v53 = vmax.f32 %v2293_v46, 0.0 }
 0x45d   : > { %v2299_v52 = vadd.f32 %v2298_v51, %v8851_v62  ;;  %v2368_v55 = vmax.f32 %v2295_v48, 0.0  ;;  %3606 = vmatpush1.bf16.msra.mxu0 %v7321_v25  ;;  %v7327_v48 = vld [vmem:[#allocation14 + $0x60] ss:$8 sps:$4 sm:$0xff]  }
 0x45e   : > { %v2369_v54 = vmax.f32 %v2297_v50, 0.0  ;;  %3607 = vmatprep.subr.bf16.mxu0 %v7326_v28  ;;  %v7332_v50 = vld [vmem:[#allocation14 + $0x74] ss:$8 sps:$4 sm:$0xff]   ;;  %v7342_v28 = vld [vmem:[#allocation14 + $0xb0] ss:$8 sps:$4 sm:$0xff]  }
 0x45f   : > { %v2370_v56 = vmax.f32 %v2299_v52, 0.0 }
 0x460   : > { %v2403_v57 = vpack.c.bf16 %v2369_v54, %v2367_v53 }
 0x461   : > { %v2404_v58 = vpack.c.bf16 %v2370_v56, %v2368_v55  ;;  %v2302_v59 = vpop.f32.mrb[60].mxu1  ;;  %3608 = vmatpush1.bf16.msra.mxu0 %v7324_v34  ;;  %v7330_v56 = vld [vmem:[#allocation14 + $0x70] ss:$8 sps:$4 sm:$0xff]  }
 0x462   : > { %v2303_v44 = vadd.f32 %v2302_v59, %v8848_v45  ;;  %v2304_v60 = vpop.f32.mrb[61].mxu1  ;;  %3609 = vmatprep.subr.bf16.mxu0 %v7329_v37  ;;  %v7335_v59 = vld [vmem:[#allocation14 + $0x84] ss:$8 sps:$4 sm:$0xff]  }
 0x463   : > { %v2305_v61 = vadd.f32 %v2304_v60, %v8851_v62  ;;  %v2306_v63 = vpop.f32.mrb[62].mxu1  ;;  %2783 = vmatprep.mubr.bf16.mxu0 %v2404_v58 }
 0x464   : > { %v2307_v0 = vadd.f32 %v2306_v63, %v8848_v45  ;;  %v2308_v1 = vpop.f32.mrb[63].mxu1  ;;  %2784 = vmatmul.mubr.bf16.gmra.mrb[120].mxu0 %v2403_v57  ;;  %v2371_v3 = vmax.f32 %v2303_v44, 0.0  ;;  %v2439_v45 = vld [vmem:[#allocation10] sm:$0x3] }
 0x465   : > { %v2309_v2 = vadd.f32 %v2308_v1, %v8851_v62  ;;  %v2372_v5 = vmax.f32 %v2305_v61, 0.0  ;;  %v8918_v62 = vrot.slane %v2439_v45, %v8772_v39  ;;  %v8921_v15 = vrot.slane %v2439_v45, %v8775_v41  ;;  %3610 = vmatpush1.bf16.msra.mxu0 %v7327_v48  ;;  %v7341_v45 = vld [vmem:[#allocation14 + $0xa4] ss:$8 sps:$4 sm:$0xff]  }
 0x466   : > { %v2373_v4 = vmax.f32 %v2307_v0, 0.0  ;;  %3611 = vmatprep.subr.bf16.mxu0 %v7332_v50  ;;  %v7348_v50 = vld [vmem:[#allocation14 + $0xd0] ss:$8 sps:$4 sm:$0xff]  }
 0x467   : > { %v2374_v6 = vmax.f32 %v2309_v2, 0.0  ;;  %v7333_v2 = vld [vmem:[#allocation14 + $0x80] ss:$8 sps:$4 sm:$0xff]  }
 0x468   : > { %v2405_v7 = vpack.c.bf16 %v2373_v4, %v2371_v3  ;;  %v7338_v4 = vld [vmem:[#allocation14 + $0x94] ss:$8 sps:$4 sm:$0xff]  }
 0x469   : > { %v2406_v8 = vpack.c.bf16 %v2374_v6, %v2372_v5  ;;  %3612 = vmatpush1.bf16.msra.mxu0 %v7330_v56 }
 0x46a   : > { %3613 = vmatprep.subr.bf16.mxu0 %v7335_v59 }
 0x46b   : > { %2793 = vmatprep.mubr.bf16.mxu0 %v2406_v8 }
 0x46c   : > { %2794 = vmatmul.mubr.bf16.gmra.mrb[124].mxu0 %v2405_v7 }
 0x46d   : > { %3614 = vmatpush1.bf16.msra.mxu0 %v7333_v2 }
 0x46e   : > { %3615 = vmatprep.subr.bf16.mxu0 %v7338_v4 }
 0x471   : > { %3616 = vmatpush1.bf16.msra.mxu0 %v7336_v10 }
 0x472   : > { %3617 = vmatprep.subr.bf16.mxu0 %v7341_v45 }
 0x4c7   : > { %v2645_v16 = vpop.f32.mrb[64].mxu0 }
 0x4c8   : > { %v2646_v19 = vadd.f32 %v2645_v16, %v8918_v62  ;;  %v2647_v20 = vpop.f32.mrb[65].mxu0 }
 0x4c9   : > { %v2648_v21 = vadd.f32 %v2647_v20, %v8921_v15  ;;  %v2649_v22 = vpop.f32.mrb[66].mxu0  ;;  %v7339_v20 = vld [vmem:[#allocation14 + $0xa0] ss:$8 sps:$4 sm:$0xff]  }
 0x4ca   : > { %v2650_v23 = vadd.f32 %v2649_v22, %v8918_v62  ;;  %v2651_v24 = vpop.f32.mrb[67].mxu0  ;;  %v2804_v29 = vmax.f32 %v2646_v19, 0.0  ;;  %v7344_v22 = vld [vmem:[#allocation14 + $0xb4] ss:$8 sps:$4 sm:$0xff]   ;;  %3618 = vmatpush1.bf16.msra.mxu0 %v7339_v20 }
 0x4cb   : > { %v2652_v27 = vadd.f32 %v2651_v24, %v8921_v15  ;;  %v2805_v31 = vmax.f32 %v2648_v21, 0.0  ;;  %3619 = vmatprep.subr.bf16.mxu0 %v7344_v22 }
 0x4cc   : > { %v2806_v30 = vmax.f32 %v2650_v23, 0.0 }
 0x4cd   : > { %v2807_v32 = vmax.f32 %v2652_v27, 0.0 }
 0x4ce   : > { %v2868_v33 = vpack.c.bf16 %v2806_v30, %v2804_v29  ;;  %3620 = vmatpush1.bf16.msra.mxu0 %v7342_v28 }
 0x4cf   : > { %v2869_v35 = vpack.c.bf16 %v2807_v32, %v2805_v31  ;;  %v2655_v36 = vpop.f32.mrb[68].mxu0  ;;  %v7347_v31 = vld [vmem:[#allocation14 + $0xc4] ss:$8 sps:$4 sm:$0xff]  }
 0x4d0   : > { %v2656_v38 = vadd.f32 %v2655_v36, %v8918_v62  ;;  %v2657_v40 = vpop.f32.mrb[69].mxu0  ;;  %3621 = vmatprep.subr.bf16.mxu0 %v7347_v31 }
 0x4d1   : > { %v2658_v42 = vadd.f32 %v2657_v40, %v8921_v15  ;;  %v2659_v43 = vpop.f32.mrb[70].mxu0  ;;  %3136 = vmatprep.mubr.bf16.mxu1 %v2869_v35 }
 0x4d2   : > { %v2660_v46 = vadd.f32 %v2659_v43, %v8918_v62  ;;  %v2661_v47 = vpop.f32.mrb[71].mxu0  ;;  %3137 = vmatmul.mubr.bf16.vlgmr.msra.gmra.mrb[64].mxu1 %v2868_v33  ;;  %v2808_v51 = vmax.f32 %v2656_v38, 0.0  ;;  %v7345_v38 = vld [vmem:[#allocation14 + $0xc0] ss:$8 sps:$4 sm:$0xff]  }
 0x4d3   : > { %v2662_v49 = vadd.f32 %v2661_v47, %v8921_v15  ;;  %v2809_v53 = vmax.f32 %v2658_v42, 0.0  ;;  %v7350_v42 = vld [vmem:[#allocation14 + $0xd4] ss:$8 sps:$4 sm:$0xff]   ;;  %3622 = vmatpush1.bf16.msra.mxu0 %v7345_v38 }
 0x4d4   : > { %v2810_v52 = vmax.f32 %v2660_v46, 0.0  ;;  %3623 = vmatprep.subr.bf16.mxu0 %v7350_v42 }
 0x4d5   : > { %v2811_v54 = vmax.f32 %v2662_v49, 0.0 }
 0x4d6   : > { %v2870_v55 = vpack.c.bf16 %v2810_v52, %v2808_v51 }
 0x4d7   : > { %v2871_v57 = vpack.c.bf16 %v2811_v54, %v2809_v53  ;;  %v2665_v58 = vpop.f32.mrb[72].mxu0  ;;  %v7353_v53 = vld [vmem:[#allocation14 + $0xe4] ss:$8 sps:$4 sm:$0xff]   ;;  %3624 = vmatpush1.bf16.msra.mxu0 %v7348_v50 }
 0x4d8   : > { %v2666_v44 = vadd.f32 %v2665_v58, %v8918_v62  ;;  %v2667_v60 = vpop.f32.mrb[73].mxu0  ;;  %3625 = vmatprep.subr.bf16.mxu0 %v7353_v53 }
 0x4d9   : > { %v2668_v61 = vadd.f32 %v2667_v60, %v8921_v15  ;;  %v2669_v63 = vpop.f32.mrb[74].mxu0  ;;  %3146 = vmatprep.mubr.bf16.mxu1 %v2871_v57 }
 0x4da   : > { %v2670_v0 = vadd.f32 %v2669_v63, %v8918_v62  ;;  %v2671_v1 = vpop.f32.mrb[75].mxu0  ;;  %3147 = vmatmul.mubr.bf16.gmra.mrb[68].mxu1 %v2870_v55  ;;  %v2812_v5 = vmax.f32 %v2666_v44, 0.0  ;;  %v7351_v44 = vld [vmem:[#allocation14 + $0xe0] ss:$8 sps:$4 sm:$0xff]  }
 0x4db   : > { %v2672_v3 = vadd.f32 %v2671_v1, %v8921_v15  ;;  %v2813_v7 = vmax.f32 %v2668_v61, 0.0  ;;  %3626 = vmatpush1.bf16.msra.mxu0 %v7351_v44 }
 0x4dc   : > { %v2814_v6 = vmax.f32 %v2670_v0, 0.0 }
 0x4dd   : > { %v2815_v8 = vmax.f32 %v2672_v3, 0.0 }
 0x4de   : > { %v2872_v9 = vpack.c.bf16 %v2814_v6, %v2812_v5 }
 0x4df   : > { %v2873_v11 = vpack.c.bf16 %v2815_v8, %v2813_v7  ;;  %v2675_v12 = vpop.f32.mrb[76].mxu0 }
 0x4e0   : > { %v2676_v13 = vadd.f32 %v2675_v12, %v8918_v62  ;;  %v2677_v14 = vpop.f32.mrb[77].mxu0 }
 0x4e1   : > { %v2678_v16 = vadd.f32 %v2677_v14, %v8921_v15  ;;  %v2679_v17 = vpop.f32.mrb[78].mxu0  ;;  %3156 = vmatprep.mubr.bf16.mxu1 %v2873_v11 }
 0x4e2   : > { %v2680_v18 = vadd.f32 %v2679_v17, %v8918_v62  ;;  %v2681_v19 = vpop.f32.mrb[79].mxu0  ;;  %3157 = vmatmul.mubr.bf16.gmra.mrb[72].mxu1 %v2872_v9  ;;  %v2816_v23 = vmax.f32 %v2676_v13, 0.0 }
 0x4e3   : > { %v2682_v21 = vadd.f32 %v2681_v19, %v8921_v15  ;;  %v2817_v25 = vmax.f32 %v2678_v16, 0.0 }
 0x4e4   : > { %v2818_v24 = vmax.f32 %v2680_v18, 0.0 }
 0x4e5   : > { %v2819_v26 = vmax.f32 %v2682_v21, 0.0 }
 0x4e6   : > { %v2874_v27 = vpack.c.bf16 %v2818_v24, %v2816_v23 }
 0x4e7   : > { %v2875_v29 = vpack.c.bf16 %v2819_v26, %v2817_v25  ;;  %v2685_v30 = vpop.f32.mrb[80].mxu0 }
 0x4e8   : > { %v2686_v32 = vadd.f32 %v2685_v30, %v8918_v62  ;;  %v2687_v33 = vpop.f32.mrb[81].mxu0 }
 0x4e9   : > { %v2688_v34 = vadd.f32 %v2687_v33, %v8921_v15  ;;  %v2689_v35 = vpop.f32.mrb[82].mxu0  ;;  %3166 = vmatprep.mubr.bf16.mxu1 %v2875_v29 }
 0x4ea   : > { %v2690_v36 = vadd.f32 %v2689_v35, %v8918_v62  ;;  %v2691_v37 = vpop.f32.mrb[83].mxu0  ;;  %3167 = vmatmul.mubr.bf16.gmra.mrb[76].mxu1 %v2874_v27  ;;  %v2820_v43 = vmax.f32 %v2686_v32, 0.0 }
 0x4eb   : > { %v2692_v40 = vadd.f32 %v2691_v37, %v8921_v15  ;;  %v2821_v47 = vmax.f32 %v2688_v34, 0.0 }
 0x4ec   : > { %v2822_v46 = vmax.f32 %v2690_v36, 0.0 }
 0x4ed   : > { %v2823_v48 = vmax.f32 %v2692_v40, 0.0 }
 0x4ee   : > { %v2876_v49 = vpack.c.bf16 %v2822_v46, %v2820_v43 }
 0x4ef   : > { %v2877_v51 = vpack.c.bf16 %v2823_v48, %v2821_v47  ;;  %v2695_v52 = vpop.f32.mrb[84].mxu0 }
 0x4f0   : > { %v2696_v54 = vadd.f32 %v2695_v52, %v8918_v62  ;;  %v2697_v55 = vpop.f32.mrb[85].mxu0 }
 0x4f1   : > { %v2698_v56 = vadd.f32 %v2697_v55, %v8921_v15  ;;  %v2699_v57 = vpop.f32.mrb[86].mxu0  ;;  %3176 = vmatprep.mubr.bf16.mxu1 %v2877_v51 }
 0x4f2   : > { %v2700_v58 = vadd.f32 %v2699_v57, %v8918_v62  ;;  %v2701_v59 = vpop.f32.mrb[87].mxu0  ;;  %3177 = vmatmul.mubr.bf16.gmra.mrb[80].mxu1 %v2876_v49  ;;  %v2824_v61 = vmax.f32 %v2696_v54, 0.0 }
 0x4f3   : > { %v2702_v60 = vadd.f32 %v2701_v59, %v8921_v15  ;;  %v2825_v0 = vmax.f32 %v2698_v56, 0.0 }
 0x4f4   : > { %v2826_v63 = vmax.f32 %v2700_v58, 0.0 }
 0x4f5   : > { %v2827_v1 = vmax.f32 %v2702_v60, 0.0 }
 0x4f6   : > { %v2878_v2 = vpack.c.bf16 %v2826_v63, %v2824_v61 }
 0x4f7   : > { %v2879_v3 = vpack.c.bf16 %v2827_v1, %v2825_v0  ;;  %v2705_v4 = vpop.f32.mrb[88].mxu0 }
 0x4f8   : > { %v2706_v5 = vadd.f32 %v2705_v4, %v8918_v62  ;;  %v2707_v6 = vpop.f32.mrb[89].mxu0 }
 0x4f9   : > { %v2708_v7 = vadd.f32 %v2707_v6, %v8921_v15  ;;  %v2709_v8 = vpop.f32.mrb[90].mxu0  ;;  %3186 = vmatprep.mubr.bf16.mxu1 %v2879_v3 }
 0x4fa   : > { %v2710_v9 = vadd.f32 %v2709_v8, %v8918_v62  ;;  %v2711_v10 = vpop.f32.mrb[91].mxu0  ;;  %3187 = vmatmul.mubr.bf16.gmra.mrb[84].mxu1 %v2878_v2  ;;  %v2828_v12 = vmax.f32 %v2706_v5, 0.0 }
 0x4fb   : > { %v2712_v11 = vadd.f32 %v2711_v10, %v8921_v15  ;;  %v2829_v13 = vmax.f32 %v2708_v7, 0.0 }
 0x4fc   : > { %v2830_v45 = vmax.f32 %v2710_v9, 0.0 }
 0x4fd   : > { %v2831_v14 = vmax.f32 %v2712_v11, 0.0 }
 0x4fe   : > { %v2880_v16 = vpack.c.bf16 %v2830_v45, %v2828_v12 }
 0x4ff   : > { %v2881_v17 = vpack.c.bf16 %v2831_v14, %v2829_v13  ;;  %v2715_v18 = vpop.f32.mrb[92].mxu0 }
 0x500   : > { %v2716_v19 = vadd.f32 %v2715_v18, %v8918_v62  ;;  %v2717_v20 = vpop.f32.mrb[93].mxu0 }
 0x501   : > { %v2718_v21 = vadd.f32 %v2717_v20, %v8921_v15  ;;  %v2719_v22 = vpop.f32.mrb[94].mxu0  ;;  %3196 = vmatprep.mubr.bf16.mxu1 %v2881_v17 }
 0x502   : > { %v2720_v23 = vadd.f32 %v2719_v22, %v8918_v62  ;;  %v2721_v24 = vpop.f32.mrb[95].mxu0  ;;  %3197 = vmatmul.mubr.bf16.gmra.mrb[88].mxu1 %v2880_v16  ;;  %v2832_v26 = vmax.f32 %v2716_v19, 0.0 }
 0x503   : > { %v2722_v25 = vadd.f32 %v2721_v24, %v8921_v15  ;;  %v2833_v28 = vmax.f32 %v2718_v21, 0.0 }
 0x504   : > { %v2834_v27 = vmax.f32 %v2720_v23, 0.0 }
 0x505   : > { %v2835_v29 = vmax.f32 %v2722_v25, 0.0 }
 0x506   : > { %v2882_v30 = vpack.c.bf16 %v2834_v27, %v2832_v26 }
 0x507   : > { %v2883_v31 = vpack.c.bf16 %v2835_v29, %v2833_v28  ;;  %v2725_v32 = vpop.f32.mrb[96].mxu0 }
 0x508   : > { %v2726_v33 = vadd.f32 %v2725_v32, %v8918_v62  ;;  %v2727_v34 = vpop.f32.mrb[97].mxu0 }
 0x509   : > { %v2728_v35 = vadd.f32 %v2727_v34, %v8921_v15  ;;  %v2729_v36 = vpop.f32.mrb[98].mxu0  ;;  %3206 = vmatprep.mubr.bf16.mxu1 %v2883_v31 }
 0x50a   : > { %v2730_v37 = vadd.f32 %v2729_v36, %v8918_v62  ;;  %v2731_v38 = vpop.f32.mrb[99].mxu0  ;;  %3207 = vmatmul.mubr.bf16.gmra.mrb[92].mxu1 %v2882_v30  ;;  %v2836_v42 = vmax.f32 %v2726_v33, 0.0 }
 0x50b   : > { %v2732_v40 = vadd.f32 %v2731_v38, %v8921_v15  ;;  %v2837_v46 = vmax.f32 %v2728_v35, 0.0  ;;  %v7356_v35 = vld [vmem:[#allocation14 + $0xf4] ss:$8 sps:$4 sm:$0xff]  }
 0x50c   : > { %v2838_v43 = vmax.f32 %v2730_v37, 0.0  ;;  %v7354_v37 = vld [vmem:[#allocation14 + $0xf0] ss:$8 sps:$4 sm:$0xff]   ;;  %3627 = vmatprep.subr.bf16.mxu0 %v7356_v35 }
 0x50d   : > { %v2839_v47 = vmax.f32 %v2732_v40, 0.0  ;;  %3628 = vmatpush1.bf16.msra.mxu0 %v7354_v37  ;;  %v7359_v35 = vld [vmem:[#allocation19 + $0x4] ss:$8 sps:$4 sm:$0xff]   ;;  %v7362_v37 = vld [vmem:[#allocation19 + $0x14] ss:$8 sps:$4 sm:$0xff]  }
 0x50e   : > { %v2884_v48 = vpack.c.bf16 %v2838_v43, %v2836_v42  ;;  %4142 = vmatprep.subr.bf16.mxu1 %v7359_v35 }
 0x50f   : > { %v2885_v49 = vpack.c.bf16 %v2839_v47, %v2837_v46  ;;  %v2735_v50 = vpop.f32.mrb[100].mxu0 }
 0x510   : > { %v2736_v51 = vadd.f32 %v2735_v50, %v8918_v62  ;;  %v2737_v52 = vpop.f32.mrb[101].mxu0 }
 0x511   : > { %v2738_v53 = vadd.f32 %v2737_v52, %v8921_v15  ;;  %v2739_v54 = vpop.f32.mrb[102].mxu0  ;;  %3216 = vmatprep.mubr.bf16.mxu1 %v2885_v49 }
 0x512   : > { %v2740_v55 = vadd.f32 %v2739_v54, %v8918_v62  ;;  %v2741_v56 = vpop.f32.mrb[103].mxu0  ;;  %3217 = vmatmul.mubr.bf16.gmra.mrb[96].mxu1 %v2884_v48  ;;  %v2840_v58 = vmax.f32 %v2736_v51, 0.0 }
 0x513   : > { %v2742_v57 = vadd.f32 %v2741_v56, %v8921_v15  ;;  %v2841_v44 = vmax.f32 %v2738_v53, 0.0 }
 0x514   : > { %v2842_v59 = vmax.f32 %v2740_v55, 0.0 }
 0x515   : > { %v2843_v60 = vmax.f32 %v2742_v57, 0.0 }
 0x516   : > { %v2886_v61 = vpack.c.bf16 %v2842_v59, %v2840_v58 }
 0x517   : > { %v2887_v63 = vpack.c.bf16 %v2843_v60, %v2841_v44  ;;  %v2745_v0 = vpop.f32.mrb[104].mxu0 }
 0x518   : > { %v2746_v1 = vadd.f32 %v2745_v0, %v8918_v62  ;;  %v2747_v2 = vpop.f32.mrb[105].mxu0 }
 0x519   : > { %v2748_v3 = vadd.f32 %v2747_v2, %v8921_v15  ;;  %v2749_v4 = vpop.f32.mrb[106].mxu0  ;;  %3226 = vmatprep.mubr.bf16.mxu1 %v2887_v63 }
 0x51a   : > { %v2750_v5 = vadd.f32 %v2749_v4, %v8918_v62  ;;  %v2751_v6 = vpop.f32.mrb[107].mxu0  ;;  %3227 = vmatmul.mubr.bf16.gmra.mrb[100].mxu1 %v2886_v61  ;;  %v2844_v8 = vmax.f32 %v2746_v1, 0.0 }
 0x51b   : > { %v2752_v7 = vadd.f32 %v2751_v6, %v8921_v15  ;;  %v2845_v10 = vmax.f32 %v2748_v3, 0.0 }
 0x51c   : > { %v2846_v9 = vmax.f32 %v2750_v5, 0.0 }
 0x51d   : > { %v2847_v11 = vmax.f32 %v2752_v7, 0.0 }
 0x51e   : > { %v2888_v12 = vpack.c.bf16 %v2846_v9, %v2844_v8 }
 0x51f   : > { %v2889_v45 = vpack.c.bf16 %v2847_v11, %v2845_v10  ;;  %v2755_v13 = vpop.f32.mrb[108].mxu0 }
 0x520   : > { %v2756_v14 = vadd.f32 %v2755_v13, %v8918_v62  ;;  %v2757_v16 = vpop.f32.mrb[109].mxu0 }
 0x521   : > { %v2758_v17 = vadd.f32 %v2757_v16, %v8921_v15  ;;  %v2759_v18 = vpop.f32.mrb[110].mxu0  ;;  %3236 = vmatprep.mubr.bf16.mxu1 %v2889_v45 }
 0x522   : > { %v2760_v19 = vadd.f32 %v2759_v18, %v8918_v62  ;;  %v2761_v20 = vpop.f32.mrb[111].mxu0  ;;  %3237 = vmatmul.mubr.bf16.gmra.mrb[104].mxu1 %v2888_v12  ;;  %v2848_v22 = vmax.f32 %v2756_v14, 0.0 }
 0x523   : > { %v2762_v21 = vadd.f32 %v2761_v20, %v8921_v15  ;;  %v2849_v24 = vmax.f32 %v2758_v17, 0.0 }
 0x524   : > { %v2850_v23 = vmax.f32 %v2760_v19, 0.0 }
 0x525   : > { %v2851_v25 = vmax.f32 %v2762_v21, 0.0 }
 0x526   : > { %v2890_v26 = vpack.c.bf16 %v2850_v23, %v2848_v22 }
 0x527   : > { %v2891_v27 = vpack.c.bf16 %v2851_v25, %v2849_v24  ;;  %v2765_v28 = vpop.f32.mrb[112].mxu0 }
 0x528   : > { %v2766_v29 = vadd.f32 %v2765_v28, %v8918_v62  ;;  %v2767_v30 = vpop.f32.mrb[113].mxu0 }
 0x529   : > { %v2768_v31 = vadd.f32 %v2767_v30, %v8921_v15  ;;  %v2769_v32 = vpop.f32.mrb[114].mxu0  ;;  %3246 = vmatprep.mubr.bf16.mxu1 %v2891_v27 }
 0x52a   : > { %v2770_v33 = vadd.f32 %v2769_v32, %v8918_v62  ;;  %v2771_v34 = vpop.f32.mrb[115].mxu0  ;;  %3247 = vmatmul.mubr.bf16.gmra.mrb[108].mxu1 %v2890_v26  ;;  %v2852_v38 = vmax.f32 %v2766_v29, 0.0  ;;  %v2932_v26 = vld [vmem:[#allocation13] sm:$0x3] }
 0x52b   : > { %v2772_v36 = vadd.f32 %v2771_v34, %v8921_v15  ;;  %v2853_v42 = vmax.f32 %v2768_v31, 0.0  ;;  %v8988_v27 = vrot.slane %v2932_v26, %v8772_v39  ;;  %v8991_v28 = vrot.slane %v2932_v26, %v8775_v41  ;;  %v7357_v34 = vld [vmem:[#allocation19] ss:$8 sps:$4 sm:$0xff]  }
 0x52c   : > { %v2854_v40 = vmax.f32 %v2770_v33, 0.0  ;;  %4143 = vmatpush1.bf16.msra.mxu1 %v7357_v34 }
 0x52d   : > { %v2855_v43 = vmax.f32 %v2772_v36, 0.0  ;;  %4144 = vmatprep.subr.bf16.mxu1 %v7362_v37 }
 0x52e   : > { %v2892_v46 = vpack.c.bf16 %v2854_v40, %v2852_v38 }
 0x52f   : > { %v2893_v47 = vpack.c.bf16 %v2855_v43, %v2853_v42  ;;  %v2775_v48 = vpop.f32.mrb[116].mxu0 }
 0x530   : > { %v2776_v49 = vadd.f32 %v2775_v48, %v8918_v62  ;;  %v2777_v50 = vpop.f32.mrb[117].mxu0  ;;  %v7365_v48 = vld [vmem:[#allocation19 + $0x24] ss:$8 sps:$4 sm:$0xff]  }
 0x531   : > { %v2778_v51 = vadd.f32 %v2777_v50, %v8921_v15  ;;  %v2779_v52 = vpop.f32.mrb[118].mxu0  ;;  %3256 = vmatprep.mubr.bf16.mxu1 %v2893_v47 }
 0x532   : > { %v2780_v53 = vadd.f32 %v2779_v52, %v8918_v62  ;;  %v2781_v54 = vpop.f32.mrb[119].mxu0  ;;  %3257 = vmatmul.mubr.bf16.gmra.mrb[112].mxu1 %v2892_v46  ;;  %v2856_v56 = vmax.f32 %v2776_v49, 0.0  ;;  %v7360_v46 = vld [vmem:[#allocation19 + $0x10] ss:$8 sps:$4 sm:$0xff]  }
 0x533   : > { %v2782_v55 = vadd.f32 %v2781_v54, %v8921_v15  ;;  %v2857_v58 = vmax.f32 %v2778_v51, 0.0  ;;  %4145 = vmatpush1.bf16.msra.mxu1 %v7360_v46 }
 0x534   : > { %v2858_v57 = vmax.f32 %v2780_v53, 0.0  ;;  %4146 = vmatprep.subr.bf16.mxu1 %v7365_v48 }
 0x535   : > { %v2859_v59 = vmax.f32 %v2782_v55, 0.0  ;;  %v7363_v55 = vld [vmem:[#allocation19 + $0x20] ss:$8 sps:$4 sm:$0xff]  }
 0x536   : > { %v2894_v44 = vpack.c.bf16 %v2858_v57, %v2856_v56 }
 0x537   : > { %v2895_v60 = vpack.c.bf16 %v2859_v59, %v2857_v58  ;;  %v2785_v61 = vpop.f32.mrb[120].mxu0  ;;  %4147 = vmatpush1.bf16.msra.mxu1 %v7363_v55 }
 0x538   : > { %v2786_v63 = vadd.f32 %v2785_v61, %v8918_v62  ;;  %v2787_v0 = vpop.f32.mrb[121].mxu0 }
 0x539   : > { %v2788_v1 = vadd.f32 %v2787_v0, %v8921_v15  ;;  %v2789_v2 = vpop.f32.mrb[122].mxu0  ;;  %3266 = vmatprep.mubr.bf16.mxu1 %v2895_v60 }
 0x53a   : > { %v2790_v3 = vadd.f32 %v2789_v2, %v8918_v62  ;;  %v2791_v4 = vpop.f32.mrb[123].mxu0  ;;  %3267 = vmatmul.mubr.bf16.gmra.mrb[116].mxu1 %v2894_v44  ;;  %v2860_v6 = vmax.f32 %v2786_v63, 0.0 }
 0x53b   : > { %v2792_v5 = vadd.f32 %v2791_v4, %v8921_v15  ;;  %v2861_v8 = vmax.f32 %v2788_v1, 0.0 }
 0x53c   : > { %v2862_v7 = vmax.f32 %v2790_v3, 0.0 }
 0x53d   : > { %v2863_v9 = vmax.f32 %v2792_v5, 0.0 }
 0x53e   : > { %v2896_v10 = vpack.c.bf16 %v2862_v7, %v2860_v6 }
 0x53f   : > { %v2897_v11 = vpack.c.bf16 %v2863_v9, %v2861_v8  ;;  %v2795_v12 = vpop.f32.mrb[124].mxu0 }
 0x540   : > { %v2796_v45 = vadd.f32 %v2795_v12, %v8918_v62  ;;  %v2797_v13 = vpop.f32.mrb[125].mxu0 }
 0x541   : > { %v2798_v14 = vadd.f32 %v2797_v13, %v8921_v15  ;;  %v2799_v16 = vpop.f32.mrb[126].mxu0  ;;  %3276 = vmatprep.mubr.bf16.mxu1 %v2897_v11 }
 0x542   : > { %v2800_v17 = vadd.f32 %v2799_v16, %v8918_v62  ;;  %v2801_v18 = vpop.f32.mrb[127].mxu0  ;;  %3277 = vmatmul.mubr.bf16.gmra.mrb[120].mxu1 %v2896_v10  ;;  %v2864_v20 = vmax.f32 %v2796_v45, 0.0 }
 0x543   : > { %v2802_v19 = vadd.f32 %v2801_v18, %v8921_v15  ;;  %v2865_v22 = vmax.f32 %v2798_v14, 0.0 }
 0x544   : > { %v2866_v21 = vmax.f32 %v2800_v17, 0.0 }
 0x545   : > { %v2867_v23 = vmax.f32 %v2802_v19, 0.0 }
 0x546   : > { %v2898_v24 = vpack.c.bf16 %v2866_v21, %v2864_v20 }
 0x547   : > { %v2899_v25 = vpack.c.bf16 %v2867_v23, %v2865_v22 }
 0x549   : > { %3286 = vmatprep.mubr.bf16.mxu1 %v2899_v25 }
 0x54a   : > { %3287 = vmatmul.mubr.bf16.gmra.mrb[124].mxu1 %v2898_v24 }
 0x5a5   : > { %v3138_v62 = vpop.f32.mrb[64].mxu1 }
 0x5a6   : > { %v3139_v29 = vadd.f32 %v3138_v62, %v8988_v27  ;;  %v3140_v30 = vpop.f32.mrb[65].mxu1 }
 0x5a7   : > { %v3141_v15 = vadd.f32 %v3140_v30, %v8991_v28  ;;  %v3142_v31 = vpop.f32.mrb[66].mxu1 }
 0x5a8   : > { %v3143_v32 = vadd.f32 %v3142_v31, %v8988_v27  ;;  %v3144_v33 = vpop.f32.mrb[67].mxu1  ;;  %v3297_v38 = vmax.f32 %v3139_v29, 0.0 }
 0x5a9   : > { %v3145_v36 = vadd.f32 %v3144_v33, %v8991_v28  ;;  %v3298_v42 = vmax.f32 %v3141_v15, 0.0 }
 0x5aa   : > { %v3299_v40 = vmax.f32 %v3143_v32, 0.0 }
 0x5ab   : > { %v3300_v43 = vmax.f32 %v3145_v36, 0.0 }
 0x5ac   : > { %v3361_v47 = vpack.c.bf16 %v3299_v40, %v3297_v38 }
 0x5ad   : > { %v3362_v49 = vpack.c.bf16 %v3300_v43, %v3298_v42  ;;  %v3148_v50 = vpop.f32.mrb[68].mxu1 }
 0x5ae   : > { %v3149_v51 = vadd.f32 %v3148_v50, %v8988_v27  ;;  %v3150_v52 = vpop.f32.mrb[69].mxu1 }
 0x5af   : > { %v3151_v53 = vadd.f32 %v3150_v52, %v8991_v28  ;;  %v3152_v54 = vpop.f32.mrb[70].mxu1  ;;  %3629 = vmatprep.mubr.bf16.mxu0 %v3362_v49 }
 0x5b0   : > { %v3153_v56 = vadd.f32 %v3152_v54, %v8988_v27  ;;  %v3154_v57 = vpop.f32.mrb[71].mxu1  ;;  %3630 = vmatmul.mubr.bf16.vlgmr.msra.gmra.mrb[128].mxu0 %v3361_v47  ;;  %v3301_v59 = vmax.f32 %v3149_v51, 0.0 }
 0x5b1   : > { %v3155_v58 = vadd.f32 %v3154_v57, %v8991_v28  ;;  %v3302_v60 = vmax.f32 %v3151_v53, 0.0 }
 0x5b2   : > { %v3303_v44 = vmax.f32 %v3153_v56, 0.0 }
 0x5b3   : > { %v3304_v61 = vmax.f32 %v3155_v58, 0.0 }
 0x5b4   : > { %v3363_v63 = vpack.c.bf16 %v3303_v44, %v3301_v59 }
 0x5b5   : > { %v3364_v0 = vpack.c.bf16 %v3304_v61, %v3302_v60  ;;  %v3158_v1 = vpop.f32.mrb[72].mxu1 }
 0x5b6   : > { %v3159_v2 = vadd.f32 %v3158_v1, %v8988_v27  ;;  %v3160_v3 = vpop.f32.mrb[73].mxu1 }
 0x5b7   : > { %v3161_v4 = vadd.f32 %v3160_v3, %v8991_v28  ;;  %v3162_v5 = vpop.f32.mrb[74].mxu1  ;;  %3639 = vmatprep.mubr.bf16.mxu0 %v3364_v0 }
 0x5b8   : > { %v3163_v6 = vadd.f32 %v3162_v5, %v8988_v27  ;;  %v3164_v7 = vpop.f32.mrb[75].mxu1  ;;  %3640 = vmatmul.mubr.bf16.gmra.mrb[132].mxu0 %v3363_v63  ;;  %v3305_v9 = vmax.f32 %v3159_v2, 0.0 }
 0x5b9   : > { %v3165_v8 = vadd.f32 %v3164_v7, %v8991_v28  ;;  %v3306_v11 = vmax.f32 %v3161_v4, 0.0 }
 0x5ba   : > { %v3307_v10 = vmax.f32 %v3163_v6, 0.0 }
 0x5bb   : > { %v3308_v12 = vmax.f32 %v3165_v8, 0.0 }
 0x5bc   : > { %v3365_v45 = vpack.c.bf16 %v3307_v10, %v3305_v9 }
 0x5bd   : > { %v3366_v13 = vpack.c.bf16 %v3308_v12, %v3306_v11  ;;  %v3168_v14 = vpop.f32.mrb[76].mxu1 }
 0x5be   : > { %v3169_v16 = vadd.f32 %v3168_v14, %v8988_v27  ;;  %v3170_v17 = vpop.f32.mrb[77].mxu1 }
 0x5bf   : > { %v3171_v18 = vadd.f32 %v3170_v17, %v8991_v28  ;;  %v3172_v19 = vpop.f32.mrb[78].mxu1  ;;  %3649 = vmatprep.mubr.bf16.mxu0 %v3366_v13 }
 0x5c0   : > { %v3173_v20 = vadd.f32 %v3172_v19, %v8988_v27  ;;  %v3174_v21 = vpop.f32.mrb[79].mxu1  ;;  %3650 = vmatmul.mubr.bf16.gmra.mrb[136].mxu0 %v3365_v45  ;;  %v3309_v23 = vmax.f32 %v3169_v16, 0.0 }
 0x5c1   : > { %v3175_v22 = vadd.f32 %v3174_v21, %v8991_v28  ;;  %v3310_v25 = vmax.f32 %v3171_v18, 0.0 }
 0x5c2   : > { %v3311_v24 = vmax.f32 %v3173_v20, 0.0 }
 0x5c3   : > { %v3312_v26 = vmax.f32 %v3175_v22, 0.0 }
 0x5c4   : > { %v3367_v62 = vpack.c.bf16 %v3311_v24, %v3309_v23 }
 0x5c5   : > { %v3368_v29 = vpack.c.bf16 %v3312_v26, %v3310_v25  ;;  %v3178_v30 = vpop.f32.mrb[80].mxu1 }
 0x5c6   : > { %v3179_v15 = vadd.f32 %v3178_v30, %v8988_v27  ;;  %v3180_v31 = vpop.f32.mrb[81].mxu1 }
 0x5c7   : > { %v3181_v32 = vadd.f32 %v3180_v31, %v8991_v28  ;;  %v3182_v33 = vpop.f32.mrb[82].mxu1  ;;  %3659 = vmatprep.mubr.bf16.mxu0 %v3368_v29 }
 0x5c8   : > { %v3183_v34 = vadd.f32 %v3182_v33, %v8988_v27  ;;  %v3184_v35 = vpop.f32.mrb[83].mxu1  ;;  %3660 = vmatmul.mubr.bf16.gmra.mrb[140].mxu0 %v3367_v62  ;;  %v3313_v37 = vmax.f32 %v3179_v15, 0.0 }
 0x5c9   : > { %v3185_v36 = vadd.f32 %v3184_v35, %v8991_v28  ;;  %v3314_v40 = vmax.f32 %v3181_v32, 0.0 }
 0x5ca   : > { %v3315_v38 = vmax.f32 %v3183_v34, 0.0 }
 0x5cb   : > { %v3316_v42 = vmax.f32 %v3185_v36, 0.0 }
 0x5cc   : > { %v3369_v43 = vpack.c.bf16 %v3315_v38, %v3313_v37 }
 0x5cd   : > { %v3370_v46 = vpack.c.bf16 %v3316_v42, %v3314_v40  ;;  %v3188_v47 = vpop.f32.mrb[84].mxu1 }
 0x5ce   : > { %v3189_v48 = vadd.f32 %v3188_v47, %v8988_v27  ;;  %v3190_v49 = vpop.f32.mrb[85].mxu1 }
 0x5cf   : > { %v3191_v50 = vadd.f32 %v3190_v49, %v8991_v28  ;;  %v3192_v51 = vpop.f32.mrb[86].mxu1  ;;  %3669 = vmatprep.mubr.bf16.mxu0 %v3370_v46 }
 0x5d0   : > { %v3193_v52 = vadd.f32 %v3192_v51, %v8988_v27  ;;  %v3194_v53 = vpop.f32.mrb[87].mxu1  ;;  %3670 = vmatmul.mubr.bf16.gmra.mrb[144].mxu0 %v3369_v43  ;;  %v3317_v55 = vmax.f32 %v3189_v48, 0.0 }
 0x5d1   : > { %v3195_v54 = vadd.f32 %v3194_v53, %v8991_v28  ;;  %v3318_v57 = vmax.f32 %v3191_v50, 0.0 }
 0x5d2   : > { %v3319_v56 = vmax.f32 %v3193_v52, 0.0 }
 0x5d3   : > { %v3320_v58 = vmax.f32 %v3195_v54, 0.0 }
 0x5d4   : > { %v3371_v59 = vpack.c.bf16 %v3319_v56, %v3317_v55 }
 0x5d5   : > { %v3372_v44 = vpack.c.bf16 %v3320_v58, %v3318_v57  ;;  %v3198_v60 = vpop.f32.mrb[88].mxu1 }
 0x5d6   : > { %v3199_v61 = vadd.f32 %v3198_v60, %v8988_v27  ;;  %v3200_v63 = vpop.f32.mrb[89].mxu1 }
 0x5d7   : > { %v3201_v0 = vadd.f32 %v3200_v63, %v8991_v28  ;;  %v3202_v1 = vpop.f32.mrb[90].mxu1  ;;  %3679 = vmatprep.mubr.bf16.mxu0 %v3372_v44 }
 0x5d8   : > { %v3203_v2 = vadd.f32 %v3202_v1, %v8988_v27  ;;  %v3204_v3 = vpop.f32.mrb[91].mxu1  ;;  %3680 = vmatmul.mubr.bf16.gmra.mrb[148].mxu0 %v3371_v59  ;;  %v3321_v5 = vmax.f32 %v3199_v61, 0.0 }
 0x5d9   : > { %v3205_v4 = vadd.f32 %v3204_v3, %v8991_v28  ;;  %v3322_v7 = vmax.f32 %v3201_v0, 0.0 }
 0x5da   : > { %v3323_v6 = vmax.f32 %v3203_v2, 0.0 }
 0x5db   : > { %v3324_v8 = vmax.f32 %v3205_v4, 0.0 }
 0x5dc   : > { %v3373_v9 = vpack.c.bf16 %v3323_v6, %v3321_v5 }
 0x5dd   : > { %v3374_v10 = vpack.c.bf16 %v3324_v8, %v3322_v7  ;;  %v3208_v11 = vpop.f32.mrb[92].mxu1 }
 0x5de   : > { %v3209_v12 = vadd.f32 %v3208_v11, %v8988_v27  ;;  %v3210_v45 = vpop.f32.mrb[93].mxu1 }
 0x5df   : > { %v3211_v13 = vadd.f32 %v3210_v45, %v8991_v28  ;;  %v3212_v14 = vpop.f32.mrb[94].mxu1  ;;  %3689 = vmatprep.mubr.bf16.mxu0 %v3374_v10 }
 0x5e0   : > { %v3213_v16 = vadd.f32 %v3212_v14, %v8988_v27  ;;  %v3214_v17 = vpop.f32.mrb[95].mxu1  ;;  %3690 = vmatmul.mubr.bf16.gmra.mrb[152].mxu0 %v3373_v9  ;;  %v3325_v19 = vmax.f32 %v3209_v12, 0.0 }
 0x5e1   : > { %v3215_v18 = vadd.f32 %v3214_v17, %v8991_v28  ;;  %v3326_v21 = vmax.f32 %v3211_v13, 0.0 }
 0x5e2   : > { %v3327_v20 = vmax.f32 %v3213_v16, 0.0 }
 0x5e3   : > { %v3328_v22 = vmax.f32 %v3215_v18, 0.0 }
 0x5e4   : > { %v3375_v23 = vpack.c.bf16 %v3327_v20, %v3325_v19 }
 0x5e5   : > { %v3376_v24 = vpack.c.bf16 %v3328_v22, %v3326_v21  ;;  %v3218_v25 = vpop.f32.mrb[96].mxu1 }
 0x5e6   : > { %v3219_v26 = vadd.f32 %v3218_v25, %v8988_v27  ;;  %v3220_v62 = vpop.f32.mrb[97].mxu1 }
 0x5e7   : > { %v3221_v29 = vadd.f32 %v3220_v62, %v8991_v28  ;;  %v3222_v30 = vpop.f32.mrb[98].mxu1  ;;  %3699 = vmatprep.mubr.bf16.mxu0 %v3376_v24 }
 0x5e8   : > { %v3223_v15 = vadd.f32 %v3222_v30, %v8988_v27  ;;  %v3224_v31 = vpop.f32.mrb[99].mxu1  ;;  %3700 = vmatmul.mubr.bf16.gmra.mrb[156].mxu0 %v3375_v23  ;;  %v3329_v33 = vmax.f32 %v3219_v26, 0.0  ;;  %v7366_v30 = vld [vmem:[#allocation19 + $0x30] ss:$8 sps:$4 sm:$0xff]  }
 0x5e9   : > { %v3225_v32 = vadd.f32 %v3224_v31, %v8991_v28  ;;  %v3330_v35 = vmax.f32 %v3221_v29, 0.0 }
 0x5ea   : > { %v3331_v34 = vmax.f32 %v3223_v15, 0.0  ;;  %v7368_v15 = vld [vmem:[#allocation19 + $0x34] ss:$8 sps:$4 sm:$0xff]  }
 0x5eb   : > { %v3332_v36 = vmax.f32 %v3225_v32, 0.0  ;;  %4148 = vmatprep.subr.bf16.mxu1 %v7368_v15  ;;  %v7389_v15 = vld [vmem:[#allocation19 + $0xa4] ss:$8 sps:$4 sm:$0xff]  }
 0x5ec   : > { %v3377_v37 = vpack.c.bf16 %v3331_v34, %v3329_v33  ;;  %4149 = vmatpush1.bf16.msra.mxu1 %v7366_v30  ;;  %v7387_v30 = vld [vmem:[#allocation19 + $0xa0] ss:$8 sps:$4 sm:$0xff]  }
 0x5ed   : > { %v3378_v38 = vpack.c.bf16 %v3332_v36, %v3330_v35  ;;  %v3228_v40 = vpop.f32.mrb[100].mxu1 }
 0x5ee   : > { %v3229_v42 = vadd.f32 %v3228_v40, %v8988_v27  ;;  %v3230_v43 = vpop.f32.mrb[101].mxu1 }
 0x5ef   : > { %v3231_v46 = vadd.f32 %v3230_v43, %v8991_v28  ;;  %v3232_v47 = vpop.f32.mrb[102].mxu1  ;;  %3709 = vmatprep.mubr.bf16.mxu0 %v3378_v38 }
 0x5f0   : > { %v3233_v48 = vadd.f32 %v3232_v47, %v8988_v27  ;;  %v3234_v49 = vpop.f32.mrb[103].mxu1  ;;  %3710 = vmatmul.mubr.bf16.gmra.mrb[160].mxu0 %v3377_v37  ;;  %v3333_v51 = vmax.f32 %v3229_v42, 0.0 }
 0x5f1   : > { %v3235_v50 = vadd.f32 %v3234_v49, %v8991_v28  ;;  %v3334_v53 = vmax.f32 %v3231_v46, 0.0  ;;  %v7369_v49 = vld [vmem:[#allocation19 + $0x40] ss:$8 sps:$4 sm:$0xff]  }
 0x5f2   : > { %v3335_v52 = vmax.f32 %v3233_v48, 0.0 }
 0x5f3   : > { %v3336_v54 = vmax.f32 %v3235_v50, 0.0  ;;  %v7371_v50 = vld [vmem:[#allocation19 + $0x44] ss:$8 sps:$4 sm:$0xff]  }
 0x5f4   : > { %v3379_v55 = vpack.c.bf16 %v3335_v52, %v3333_v51  ;;  %4150 = vmatprep.subr.bf16.mxu1 %v7371_v50 }
 0x5f5   : > { %v3380_v56 = vpack.c.bf16 %v3336_v54, %v3334_v53  ;;  %v3238_v57 = vpop.f32.mrb[104].mxu1  ;;  %4151 = vmatpush1.bf16.msra.mxu1 %v7369_v49 }
 0x5f6   : > { %v3239_v58 = vadd.f32 %v3238_v57, %v8988_v27  ;;  %v3240_v59 = vpop.f32.mrb[105].mxu1 }
 0x5f7   : > { %v3241_v44 = vadd.f32 %v3240_v59, %v8991_v28  ;;  %v3242_v60 = vpop.f32.mrb[106].mxu1  ;;  %3719 = vmatprep.mubr.bf16.mxu0 %v3380_v56 }
 0x5f8   : > { %v3243_v61 = vadd.f32 %v3242_v60, %v8988_v27  ;;  %v3244_v63 = vpop.f32.mrb[107].mxu1  ;;  %3720 = vmatmul.mubr.bf16.gmra.mrb[164].mxu0 %v3379_v55  ;;  %v3337_v1 = vmax.f32 %v3239_v58, 0.0 }
 0x5f9   : > { %v3245_v0 = vadd.f32 %v3244_v63, %v8991_v28  ;;  %v3338_v3 = vmax.f32 %v3241_v44, 0.0 }
 0x5fa   : > { %v3339_v2 = vmax.f32 %v3243_v61, 0.0 }
 0x5fb   : > { %v3340_v4 = vmax.f32 %v3245_v0, 0.0 }
 0x5fc   : > { %v3381_v5 = vpack.c.bf16 %v3339_v2, %v3337_v1  ;;  %v7372_v1 = vld [vmem:[#allocation19 + $0x50] ss:$8 sps:$4 sm:$0xff]   ;;  %v7374_v2 = vld [vmem:[#allocation19 + $0x54] ss:$8 sps:$4 sm:$0xff]  }
 0x5fd   : > { %v3382_v6 = vpack.c.bf16 %v3340_v4, %v3338_v3  ;;  %v3248_v7 = vpop.f32.mrb[108].mxu1  ;;  %4152 = vmatprep.subr.bf16.mxu1 %v7374_v2 }
 0x5fe   : > { %v3249_v8 = vadd.f32 %v3248_v7, %v8988_v27  ;;  %v3250_v9 = vpop.f32.mrb[109].mxu1  ;;  %4153 = vmatpush1.bf16.msra.mxu1 %v7372_v1 }
 0x5ff   : > { %v3251_v10 = vadd.f32 %v3250_v9, %v8991_v28  ;;  %v3252_v11 = vpop.f32.mrb[110].mxu1  ;;  %3729 = vmatprep.mubr.bf16.mxu0 %v3382_v6 }
 0x600   : > { %v3253_v12 = vadd.f32 %v3252_v11, %v8988_v27  ;;  %v3254_v45 = vpop.f32.mrb[111].mxu1  ;;  %3730 = vmatmul.mubr.bf16.gmra.mrb[168].mxu0 %v3381_v5  ;;  %v3341_v14 = vmax.f32 %v3249_v8, 0.0 }
 0x601   : > { %v3255_v13 = vadd.f32 %v3254_v45, %v8991_v28  ;;  %v3342_v17 = vmax.f32 %v3251_v10, 0.0 }
 0x602   : > { %v3343_v16 = vmax.f32 %v3253_v12, 0.0 }
 0x603   : > { %v3344_v18 = vmax.f32 %v3255_v13, 0.0 }
 0x604   : > { %v3383_v19 = vpack.c.bf16 %v3343_v16, %v3341_v14 }
 0x605   : > { %v3384_v20 = vpack.c.bf16 %v3344_v18, %v3342_v17  ;;  %v3258_v21 = vpop.f32.mrb[112].mxu1  ;;  %v7375_v17 = vld [vmem:[#allocation19 + $0x60] ss:$8 sps:$4 sm:$0xff]   ;;  %v7377_v18 = vld [vmem:[#allocation19 + $0x64] ss:$8 sps:$4 sm:$0xff]  }
 0x606   : > { %v3259_v22 = vadd.f32 %v3258_v21, %v8988_v27  ;;  %v3260_v23 = vpop.f32.mrb[113].mxu1  ;;  %4154 = vmatprep.subr.bf16.mxu1 %v7377_v18 }
 0x607   : > { %v3261_v24 = vadd.f32 %v3260_v23, %v8991_v28  ;;  %v3262_v25 = vpop.f32.mrb[114].mxu1  ;;  %3739 = vmatprep.mubr.bf16.mxu0 %v3384_v20  ;;  %4155 = vmatpush1.bf16.msra.mxu1 %v7375_v17 }
 0x608   : > { %v3263_v26 = vadd.f32 %v3262_v25, %v8988_v27  ;;  %v3264_v62 = vpop.f32.mrb[115].mxu1  ;;  %3740 = vmatmul.mubr.bf16.gmra.mrb[172].mxu0 %v3383_v19  ;;  %v3345_v31 = vmax.f32 %v3259_v22, 0.0  ;;  %v7378_v25 = vld [vmem:[#allocation19 + $0x70] ss:$8 sps:$4 sm:$0xff]  }
 0x609   : > { %v3265_v29 = vadd.f32 %v3264_v62, %v8991_v28  ;;  %v3346_v33 = vmax.f32 %v3261_v24, 0.0  ;;  %v7383_v62 = vld [vmem:[#allocation19 + $0x84] ss:$8 sps:$4 sm:$0xff]  }
 0x60a   : > { %v3347_v32 = vmax.f32 %v3263_v26, 0.0  ;;  %v7380_v26 = vld [vmem:[#allocation19 + $0x74] ss:$8 sps:$4 sm:$0xff]  }
 0x60b   : > { %v3348_v34 = vmax.f32 %v3265_v29, 0.0  ;;  %4156 = vmatprep.subr.bf16.mxu1 %v7380_v26  ;;  %v7386_v29 = vld [vmem:[#allocation19 + $0x94] ss:$8 sps:$4 sm:$0xff]  }
 0x60c   : > { %v3385_v35 = vpack.c.bf16 %v3347_v32, %v3345_v31  ;;  %4157 = vmatpush1.bf16.msra.mxu1 %v7378_v25  ;;  %v7390_v31 = vld [vmem:[#allocation19 + $0xb0] ss:$8 sps:$4 sm:$0xff]   ;;  %v7392_v32 = vld [vmem:[#allocation19 + $0xb4] ss:$8 sps:$4 sm:$0xff]  }
 0x60d   : > { %v3386_v36 = vpack.c.bf16 %v3348_v34, %v3346_v33  ;;  %v3268_v37 = vpop.f32.mrb[116].mxu1  ;;  %4158 = vmatprep.subr.bf16.mxu1 %v7383_v62  ;;  %v7393_v33 = vld [vmem:[#allocation19 + $0xc0] ss:$8 sps:$4 sm:$0xff]   ;;  %v7395_v34 = vld [vmem:[#allocation19 + $0xc4] ss:$8 sps:$4 sm:$0xff]  }
 0x60e   : > { %v3269_v38 = vadd.f32 %v3268_v37, %v8988_v27  ;;  %v3270_v40 = vpop.f32.mrb[117].mxu1  ;;  %v7399_v37 = vld [vmem:[#allocation19 + $0xe0] ss:$8 sps:$4 sm:$0xff]  }
 0x60f   : > { %v3271_v42 = vadd.f32 %v3270_v40, %v8991_v28  ;;  %v3272_v43 = vpop.f32.mrb[118].mxu1  ;;  %3749 = vmatprep.mubr.bf16.mxu0 %v3386_v36  ;;  %v7398_v36 = vld [vmem:[#allocation19 + $0xd4] ss:$8 sps:$4 sm:$0xff]  }
 0x610   : > { %v3273_v46 = vadd.f32 %v3272_v43, %v8988_v27  ;;  %v3274_v47 = vpop.f32.mrb[119].mxu1  ;;  %3750 = vmatmul.mubr.bf16.gmra.mrb[176].mxu0 %v3385_v35  ;;  %v3349_v51 = vmax.f32 %v3269_v38, 0.0  ;;  %v7396_v35 = vld [vmem:[#allocation19 + $0xd0] ss:$8 sps:$4 sm:$0xff]   ;;  %v7401_v38 = vld [vmem:[#allocation19 + $0xe4] ss:$8 sps:$4 sm:$0xff]  }
 0x611   : > { %v3275_v48 = vadd.f32 %v3274_v47, %v8991_v28  ;;  %v3350_v53 = vmax.f32 %v3271_v42, 0.0  ;;  %v7404_v40 = vld [vmem:[#allocation19 + $0xf4] ss:$8 sps:$4 sm:$0xff]   ;;  %v7402_v42 = vld [vmem:[#allocation19 + $0xf0] ss:$8 sps:$4 sm:$0xff]  }
 0x612   : > { %v3351_v52 = vmax.f32 %v3273_v46, 0.0  ;;  %v7407_v43 = vld [vmem:[#allocation17 + $0x4] ss:$8 sps:$4 sm:$0xff]  }
 0x613   : > { %v3352_v54 = vmax.f32 %v3275_v48, 0.0 }
 0x614   : > { %v3387_v55 = vpack.c.bf16 %v3351_v52, %v3349_v51 }
 0x615   : > { %v3388_v56 = vpack.c.bf16 %v3352_v54, %v3350_v53  ;;  %v3278_v57 = vpop.f32.mrb[120].mxu1 }
 0x616   : > { %v3279_v58 = vadd.f32 %v3278_v57, %v8988_v27  ;;  %v3280_v59 = vpop.f32.mrb[121].mxu1 }
 0x617   : > { %v3281_v44 = vadd.f32 %v3280_v59, %v8991_v28  ;;  %v3282_v60 = vpop.f32.mrb[122].mxu1  ;;  %3759 = vmatprep.mubr.bf16.mxu0 %v3388_v56 }
 0x618   : > { %v3283_v61 = vadd.f32 %v3282_v60, %v8988_v27  ;;  %v3284_v63 = vpop.f32.mrb[123].mxu1  ;;  %3760 = vmatmul.mubr.bf16.gmra.mrb[180].mxu0 %v3387_v55  ;;  %v3353_v3 = vmax.f32 %v3279_v58, 0.0  ;;  %v3425_v58 = vld [vmem:[#allocation16] sm:$0x3] }
 0x619   : > { %v3285_v0 = vadd.f32 %v3284_v63, %v8991_v28  ;;  %v3354_v5 = vmax.f32 %v3281_v44, 0.0 }
 0x61a   : > { %v3355_v4 = vmax.f32 %v3283_v61, 0.0  ;;  %v9064_v61 = vrot.slane %v3425_v58, %v8772_v39 }
 0x61b   : > { %v3356_v6 = vmax.f32 %v3285_v0, 0.0  ;;  %v9069_v0 = vrot.slane %v3425_v58, %v8775_v41 }
 0x61c   : > { %v3389_v7 = vpack.c.bf16 %v3355_v4, %v3353_v3 }
 0x61d   : > { %v3390_v8 = vpack.c.bf16 %v3356_v6, %v3354_v5  ;;  %v3288_v9 = vpop.f32.mrb[124].mxu1 }
 0x61e   : > { %v3289_v10 = vadd.f32 %v3288_v9, %v8988_v27  ;;  %v3290_v11 = vpop.f32.mrb[125].mxu1 }
 0x61f   : > { %v3291_v12 = vadd.f32 %v3290_v11, %v8991_v28  ;;  %v3292_v45 = vpop.f32.mrb[126].mxu1  ;;  %3769 = vmatprep.mubr.bf16.mxu0 %v3390_v8 }
 0x620   : > { %v3293_v13 = vadd.f32 %v3292_v45, %v8988_v27  ;;  %v3294_v14 = vpop.f32.mrb[127].mxu1  ;;  %3770 = vmatmul.mubr.bf16.gmra.mrb[184].mxu0 %v3389_v7  ;;  %v3357_v19 = vmax.f32 %v3289_v10, 0.0  ;;  %v7381_v27 = vld [vmem:[#allocation19 + $0x80] ss:$8 sps:$4 sm:$0xff]  }
 0x621   : > { %v3295_v16 = vadd.f32 %v3294_v14, %v8991_v28  ;;  %v3358_v21 = vmax.f32 %v3291_v12, 0.0  ;;  %4159 = vmatpush1.bf16.msra.mxu1 %v7381_v27  ;;  %v7384_v28 = vld [vmem:[#allocation19 + $0x90] ss:$8 sps:$4 sm:$0xff]  }
 0x622   : > { %v3359_v20 = vmax.f32 %v3293_v13, 0.0  ;;  %4160 = vmatprep.subr.bf16.mxu1 %v7386_v29 }
 0x623   : > { %v3360_v22 = vmax.f32 %v3295_v16, 0.0 }
 0x624   : > { %v3391_v23 = vpack.c.bf16 %v3359_v20, %v3357_v19 }
 0x625   : > { %v3392_v24 = vpack.c.bf16 %v3360_v22, %v3358_v21  ;;  %4161 = vmatpush1.bf16.msra.mxu1 %v7384_v28 }
 0x626   : > { %4162 = vmatprep.subr.bf16.mxu1 %v7389_v15 }
 0x627   : > { %3779 = vmatprep.mubr.bf16.mxu0 %v3392_v24 }
 0x628   : > { %3780 = vmatmul.mubr.bf16.gmra.mrb[188].mxu0 %v3391_v23 }
 0x629   : > { %4163 = vmatpush1.bf16.msra.mxu1 %v7387_v30 }
 0x62a   : > { %4164 = vmatprep.subr.bf16.mxu1 %v7392_v32 }
 0x62d   : > { %4165 = vmatpush1.bf16.msra.mxu1 %v7390_v31 }
 0x62e   : > { %4166 = vmatprep.subr.bf16.mxu1 %v7395_v34 }
 0x631   : > { %4167 = vmatpush1.bf16.msra.mxu1 %v7393_v33 }
 0x632   : > { %4168 = vmatprep.subr.bf16.mxu1 %v7398_v36 }
 0x635   : > { %4169 = vmatpush1.bf16.msra.mxu1 %v7396_v35 }
 0x636   : > { %4170 = vmatprep.subr.bf16.mxu1 %v7401_v38 }
 0x639   : > { %4171 = vmatpush1.bf16.msra.mxu1 %v7399_v37 }
 0x63a   : > { %4172 = vmatprep.subr.bf16.mxu1 %v7404_v40 }
 0x63d   : > { %4173 = vmatpush1.bf16.msra.mxu1 %v7402_v42 }
 0x63e   : > { %4319 = vmatprep.subr.bf16.mxu1 %v7407_v43 }
 0x683   : > { %v3631_v46 = vpop.f32.mrb[128].mxu0 }
 0x684   : > { %v3633_v47 = vpop.f32.mrb[129].mxu0  ;;  %v3632_v1 = vadd.f32 %v3631_v46, %v9064_v61 }
 0x685   : > { %v3635_v48 = vpop.f32.mrb[130].mxu0  ;;  %v3634_v2 = vadd.f32 %v3633_v47, %v9069_v0 }
 0x686   : > { %v3637_v49 = vpop.f32.mrb[131].mxu0  ;;  %v3636_v4 = vadd.f32 %v3635_v48, %v9064_v61  ;;  %v3790_v10 = vmax.f32 %v3632_v1, 0.0 }
 0x687   : > { %v3638_v7 = vadd.f32 %v3637_v49, %v9069_v0  ;;  %v3791_v13 = vmax.f32 %v3634_v2, 0.0 }
 0x688   : > { %v3792_v17 = vmax.f32 %v3636_v4, 0.0 }
 0x689   : > { %v3793_v20 = vmax.f32 %v3638_v7, 0.0 }
 0x68b   : > { %v3641_v50 = vpop.f32.mrb[132].mxu0 }
 0x68c   : > { %v3643_v51 = vpop.f32.mrb[133].mxu0  ;;  %v3642_v23 = vadd.f32 %v3641_v50, %v9064_v61 }
 0x68d   : > { %v3645_v52 = vpop.f32.mrb[134].mxu0  ;;  %v3644_v25 = vadd.f32 %v3643_v51, %v9069_v0 }
 0x68e   : > { %v3647_v53 = vpop.f32.mrb[135].mxu0  ;;  %v3646_v62 = vadd.f32 %v3645_v52, %v9064_v61  ;;  %v3794_v32 = vmax.f32 %v3642_v23, 0.0 }
 0x68f   : > { %v3648_v30 = vadd.f32 %v3647_v53, %v9069_v0  ;;  %v3795_v36 = vmax.f32 %v3644_v25, 0.0 }
 0x690   : > { %v3796_v40 = vmax.f32 %v3646_v62, 0.0 }
 0x691   : > { %v3797_v46 = vmax.f32 %v3648_v30, 0.0 }
 0x693   : > { %v3651_v54 = vpop.f32.mrb[136].mxu0 }
 0x694   : > { %v3653_v55 = vpop.f32.mrb[137].mxu0  ;;  %v3652_v49 = vadd.f32 %v3651_v54, %v9064_v61 }
 0x695   : > { %v3655_v56 = vpop.f32.mrb[138].mxu0  ;;  %v3654_v51 = vadd.f32 %v3653_v55, %v9069_v0 }
 0x696   : > { %v3657_v57 = vpop.f32.mrb[139].mxu0  ;;  %v3656_v58 = vadd.f32 %v3655_v56, %v9064_v61 }
 0x69b   : > { %v9057_v59 = vpop.f32.mrb[140].mxu0 }
 0x69c   : > { %v9059_v44 = vpop.f32.mrb[141].mxu0 }
 0x69d   : > { %v9061_v60 = vpop.f32.mrb[142].mxu0 }
 0x69e   : > { %v9066_v63 = vpop.f32.mrb[143].mxu0 }
 0x6a3   : > { %v3671_v3 = vpop.f32.mrb[144].mxu0 }
 0x6a4   : > { %v3672_v5 = vadd.f32 %v3671_v3, %v9064_v61  ;;  %v3673_v6 = vpop.f32.mrb[145].mxu0  ;;  %v3658_v3 = vadd.f32 %v3657_v57, %v9069_v0 }
 0x6a5   : > { %v3674_v8 = vadd.f32 %v3673_v6, %v9069_v0  ;;  %v3675_v9 = vpop.f32.mrb[146].mxu0  ;;  %v3798_v6 = vmax.f32 %v3652_v49, 0.0 }
 0x6a6   : > { %v3806_v11 = vmax.f32 %v3672_v5, 0.0  ;;  %v3676_v12 = vadd.f32 %v3675_v9, %v9064_v61  ;;  %v3677_v45 = vpop.f32.mrb[147].mxu0  ;;  %v3799_v9 = vmax.f32 %v3654_v51, 0.0 }
 0x6a7   : > { %v3807_v14 = vmax.f32 %v3674_v8, 0.0  ;;  %v3678_v16 = vadd.f32 %v3677_v45, %v9069_v0  ;;  %v3801_v45 = vmax.f32 %v3658_v3, 0.0 }
 0x6a8   : > { %v9079_v18 = vadd.f32 %v3806_v11, %v3790_v10  ;;  %v3808_v19 = vmax.f32 %v3676_v12, 0.0  ;;  %v3800_v11 = vmax.f32 %v3656_v58, 0.0 }
 0x6a9   : > { %v9081_v21 = vadd.f32 %v3807_v14, %v3791_v13  ;;  %v3809_v22 = vmax.f32 %v3678_v16, 0.0  ;;  %v3662_v14 = vadd.f32 %v9057_v59, %v9064_v61 }
 0x6aa   : > { %v9084_v24 = vadd.f32 %v3808_v19, %v3792_v17  ;;  %v3664_v17 = vadd.f32 %v9059_v44, %v9069_v0 }
 0x6ab   : > { %v9087_v26 = vadd.f32 %v3809_v22, %v3793_v20  ;;  %v3681_v27 = vpop.f32.mrb[148].mxu0  ;;  %v3666_v22 = vadd.f32 %v9061_v60, %v9064_v61 }
 0x6ac   : > { %v3682_v28 = vadd.f32 %v3681_v27, %v9064_v61  ;;  %v3683_v29 = vpop.f32.mrb[149].mxu0  ;;  %v3668_v27 = vadd.f32 %v9066_v63, %v9069_v0 }
 0x6ad   : > { %v3684_v15 = vadd.f32 %v3683_v29, %v9069_v0  ;;  %v3685_v31 = vpop.f32.mrb[150].mxu0 }
 0x6ae   : > { %v3810_v33 = vmax.f32 %v3682_v28, 0.0  ;;  %v3686_v34 = vadd.f32 %v3685_v31, %v9064_v61  ;;  %v3687_v35 = vpop.f32.mrb[151].mxu0  ;;  %v3802_v28 = vmax.f32 %v3662_v14, 0.0 }
 0x6af   : > { %v3811_v37 = vmax.f32 %v3684_v15, 0.0  ;;  %v3688_v38 = vadd.f32 %v3687_v35, %v9069_v0  ;;  %v3803_v15 = vmax.f32 %v3664_v17, 0.0  ;;  %v3805_v35 = vmax.f32 %v3668_v27, 0.0 }
 0x6b0   : > { %v9095_v42 = vadd.f32 %v3810_v33, %v3794_v32  ;;  %v3812_v43 = vmax.f32 %v3686_v34, 0.0  ;;  %v3804_v33 = vmax.f32 %v3666_v22, 0.0 }
 0x6b1   : > { %v9097_v47 = vadd.f32 %v3811_v37, %v3795_v36  ;;  %v3813_v48 = vmax.f32 %v3688_v38, 0.0 }
 0x6b2   : > { %v9100_v50 = vadd.f32 %v3812_v43, %v3796_v40 }
 0x6b3   : > { %v9103_v52 = vadd.f32 %v3813_v48, %v3797_v46  ;;  %v3691_v53 = vpop.f32.mrb[152].mxu0 }
 0x6b4   : > { %v3692_v1 = vadd.f32 %v3691_v53, %v9064_v61  ;;  %v3693_v2 = vpop.f32.mrb[153].mxu0 }
 0x6b5   : > { %v3694_v4 = vadd.f32 %v3693_v2, %v9069_v0  ;;  %v3695_v5 = vpop.f32.mrb[154].mxu0 }
 0x6b6   : > { %v3814_v7 = vmax.f32 %v3692_v1, 0.0  ;;  %v3696_v54 = vadd.f32 %v3695_v5, %v9064_v61  ;;  %v3697_v8 = vpop.f32.mrb[155].mxu0 }
 0x6b7   : > { %v3815_v55 = vmax.f32 %v3694_v4, 0.0  ;;  %v3698_v10 = vadd.f32 %v3697_v8, %v9069_v0 }
 0x6b8   : > { %v9111_v12 = vadd.f32 %v3814_v7, %v3798_v6  ;;  %v3816_v56 = vmax.f32 %v3696_v54, 0.0 }
 0x6b9   : > { %v9113_v13 = vadd.f32 %v3815_v55, %v3799_v9  ;;  %v3817_v57 = vmax.f32 %v3698_v10, 0.0 }
 0x6ba   : > { %v9117_v16 = vadd.f32 %v3816_v56, %v3800_v11 }
 0x6bb   : > { %v9121_v19 = vadd.f32 %v3817_v57, %v3801_v45  ;;  %v3701_v20 = vpop.f32.mrb[156].mxu0 }
 0x6bc   : > { %v3702_v23 = vadd.f32 %v3701_v20, %v9064_v61  ;;  %v3703_v25 = vpop.f32.mrb[157].mxu0 }
 0x6bd   : > { %v3704_v62 = vadd.f32 %v3703_v25, %v9069_v0  ;;  %v3705_v59 = vpop.f32.mrb[158].mxu0 }
 0x6be   : > { %v3818_v29 = vmax.f32 %v3702_v23, 0.0  ;;  %v3706_v30 = vadd.f32 %v3705_v59, %v9064_v61  ;;  %v3707_v44 = vpop.f32.mrb[159].mxu0 }
 0x6bf   : > { %v3819_v31 = vmax.f32 %v3704_v62, 0.0  ;;  %v3708_v32 = vadd.f32 %v3707_v44, %v9069_v0 }
 0x6c0   : > { %v9131_v60 = vadd.f32 %v3818_v29, %v3802_v28  ;;  %v3820_v34 = vmax.f32 %v3706_v30, 0.0 }
 0x6c1   : > { %v9133_v36 = vadd.f32 %v3819_v31, %v3803_v15  ;;  %v3821_v63 = vmax.f32 %v3708_v32, 0.0 }
 0x6c2   : > { %v9135_v37 = vadd.f32 %v3820_v34, %v3804_v33 }
 0x6c3   : > { %v9137_v38 = vadd.f32 %v3821_v63, %v3805_v35  ;;  %v3711_v40 = vpop.f32.mrb[160].mxu0 }
 0x6c4   : > { %v3712_v43 = vadd.f32 %v3711_v40, %v9064_v61  ;;  %v3713_v46 = vpop.f32.mrb[161].mxu0 }
 0x6c5   : > { %v3714_v48 = vadd.f32 %v3713_v46, %v9069_v0  ;;  %v3715_v49 = vpop.f32.mrb[162].mxu0 }
 0x6c6   : > { %v3822_v51 = vmax.f32 %v3712_v43, 0.0  ;;  %v3716_v53 = vadd.f32 %v3715_v49, %v9064_v61  ;;  %v3717_v58 = vpop.f32.mrb[163].mxu0 }
 0x6c7   : > { %v3823_v1 = vmax.f32 %v3714_v48, 0.0  ;;  %v3718_v2 = vadd.f32 %v3717_v58, %v9069_v0 }
 0x6c8   : > { %v9144_v3 = vadd.f32 %v9079_v18, %v3822_v51  ;;  %v3824_v4 = vmax.f32 %v3716_v53, 0.0 }
 0x6c9   : > { %v9147_v5 = vadd.f32 %v9081_v21, %v3823_v1  ;;  %v3825_v6 = vmax.f32 %v3718_v2, 0.0 }
 0x6ca   : > { %v9150_v7 = vadd.f32 %v9084_v24, %v3824_v4 }
 0x6cb   : > { %v9153_v54 = vadd.f32 %v9087_v26, %v3825_v6  ;;  %v3721_v8 = vpop.f32.mrb[164].mxu0 }
 0x6cc   : > { %v3722_v9 = vadd.f32 %v3721_v8, %v9064_v61  ;;  %v3723_v55 = vpop.f32.mrb[165].mxu0 }
 0x6cd   : > { %v3724_v10 = vadd.f32 %v3723_v55, %v9069_v0  ;;  %v3725_v11 = vpop.f32.mrb[166].mxu0 }
 0x6ce   : > { %v3826_v18 = vmax.f32 %v3722_v9, 0.0  ;;  %v3726_v56 = vadd.f32 %v3725_v11, %v9064_v61  ;;  %v3727_v45 = vpop.f32.mrb[167].mxu0 }
 0x6cf   : > { %v3827_v21 = vmax.f32 %v3724_v10, 0.0  ;;  %v3728_v57 = vadd.f32 %v3727_v45, %v9069_v0 }
 0x6d0   : > { %v9160_v24 = vadd.f32 %v9095_v42, %v3826_v18  ;;  %v3828_v14 = vmax.f32 %v3726_v56, 0.0 }
 0x6d1   : > { %v9163_v26 = vadd.f32 %v9097_v47, %v3827_v21  ;;  %v3829_v17 = vmax.f32 %v3728_v57, 0.0 }
 0x6d2   : > { %v9166_v20 = vadd.f32 %v9100_v50, %v3828_v14 }
 0x6d3   : > { %v9169_v22 = vadd.f32 %v9103_v52, %v3829_v17  ;;  %v3731_v23 = vpop.f32.mrb[168].mxu0 }
 0x6d4   : > { %v3732_v25 = vadd.f32 %v3731_v23, %v9064_v61  ;;  %v3733_v27 = vpop.f32.mrb[169].mxu0 }
 0x6d5   : > { %v3734_v62 = vadd.f32 %v3733_v27, %v9069_v0  ;;  %v3735_v59 = vpop.f32.mrb[170].mxu0 }
 0x6d6   : > { %v3830_v42 = vmax.f32 %v3732_v25, 0.0  ;;  %v3736_v28 = vadd.f32 %v3735_v59, %v9064_v61  ;;  %v3737_v29 = vpop.f32.mrb[171].mxu0 }
 0x6d7   : > { %v3831_v47 = vmax.f32 %v3734_v62, 0.0  ;;  %v3738_v30 = vadd.f32 %v3737_v29, %v9069_v0 }
 0x6d8   : > { %v9176_v50 = vadd.f32 %v9111_v12, %v3830_v42  ;;  %v3832_v44 = vmax.f32 %v3736_v28, 0.0 }
 0x6d9   : > { %v9179_v52 = vadd.f32 %v9113_v13, %v3831_v47  ;;  %v3833_v15 = vmax.f32 %v3738_v30, 0.0  ;;  %v7405_v47 = vld [vmem:[#allocation17] ss:$8 sps:$4 sm:$0xff]  }
 0x6da   : > { %v9182_v31 = vadd.f32 %v9117_v16, %v3832_v44 }
 0x6db   : > { %v9185_v32 = vadd.f32 %v9121_v19, %v3833_v15  ;;  %v3741_v33 = vpop.f32.mrb[172].mxu0  ;;  %v7410_v15 = vld [vmem:[#allocation17 + $0x14] ss:$8 sps:$4 sm:$0xff]  }
 0x6dc   : > { %v3742_v34 = vadd.f32 %v3741_v33, %v9064_v61  ;;  %v3743_v35 = vpop.f32.mrb[173].mxu0 }
 0x6dd   : > { %v3744_v63 = vadd.f32 %v3743_v35, %v9069_v0  ;;  %v3745_v40 = vpop.f32.mrb[174].mxu0 }
 0x6de   : > { %v3834_v12 = vmax.f32 %v3742_v34, 0.0  ;;  %v3746_v43 = vadd.f32 %v3745_v40, %v9064_v61  ;;  %v3747_v46 = vpop.f32.mrb[175].mxu0 }
 0x6df   : > { %v3835_v13 = vmax.f32 %v3744_v63, 0.0  ;;  %v3748_v48 = vadd.f32 %v3747_v46, %v9069_v0 }
 0x6e0   : > { %v9192_v16 = vadd.f32 %v9131_v60, %v3834_v12  ;;  %v3836_v49 = vmax.f32 %v3746_v43, 0.0  ;;  %v7408_v12 = vld [vmem:[#allocation17 + $0x10] ss:$8 sps:$4 sm:$0xff]  }
 0x6e1   : > { %v9195_v19 = vadd.f32 %v9133_v36, %v3835_v13  ;;  %v3837_v51 = vmax.f32 %v3748_v48, 0.0  ;;  %v7413_v48 = vld [vmem:[#allocation17 + $0x24] ss:$8 sps:$4 sm:$0xff]  }
 0x6e2   : > { %v9198_v53 = vadd.f32 %v9135_v37, %v3836_v49 }
 0x6e3   : > { %v9201_v58 = vadd.f32 %v9137_v38, %v3837_v51  ;;  %v3751_v1 = vpop.f32.mrb[176].mxu0 }
 0x6e4   : > { %v3752_v2 = vadd.f32 %v3751_v1, %v9064_v61  ;;  %v3753_v4 = vpop.f32.mrb[177].mxu0 }
 0x6e5   : > { %v3754_v6 = vadd.f32 %v3753_v4, %v9069_v0  ;;  %v3755_v8 = vpop.f32.mrb[178].mxu0 }
 0x6e6   : > { %v3838_v60 = vmax.f32 %v3752_v2, 0.0  ;;  %v3756_v9 = vadd.f32 %v3755_v8, %v9064_v61  ;;  %v3757_v55 = vpop.f32.mrb[179].mxu0 }
 0x6e7   : > { %v3839_v36 = vmax.f32 %v3754_v6, 0.0  ;;  %v3758_v10 = vadd.f32 %v3757_v55, %v9069_v0 }
 0x6e8   : > { %v3886_v37 = vadd.f32 %v9144_v3, %v3838_v60  ;;  %v3840_v11 = vmax.f32 %v3756_v9, 0.0  ;;  %v7411_v9 = vld [vmem:[#allocation17 + $0x20] ss:$8 sps:$4 sm:$0xff]  }
 0x6e9   : > { %v3887_v38 = vadd.f32 %v9147_v5, %v3839_v36  ;;  %v3841_v18 = vmax.f32 %v3758_v10, 0.0  ;;  %v7416_v10 = vld [vmem:[#allocation17 + $0x34] ss:$8 sps:$4 sm:$0xff]  }
 0x6ea   : > { %v3888_v56 = vadd.f32 %v9150_v7, %v3840_v11  ;;  %v3902_v57 = vmul.f32 0.25, %v3886_v37 }
 0x6eb   : > { %v3889_v45 = vadd.f32 %v9153_v54, %v3841_v18  ;;  %v3761_v21 = vpop.f32.mrb[180].mxu0  ;;  %v3903_v25 = vmul.f32 0.25, %v3887_v38 }
 0x6ec   : > { %v3904_v14 = vmul.f32 0.25, %v3888_v56  ;;  %v3762_v17 = vadd.f32 %v3761_v21, %v9064_v61  ;;  %v3763_v23 = vpop.f32.mrb[181].mxu0 }
 0x6ed   : > { %v3905_v27 = vmul.f32 0.25, %v3889_v45  ;;  %v3764_v62 = vadd.f32 %v3763_v23, %v9069_v0  ;;  %v3765_v59 = vpop.f32.mrb[182].mxu0  ;;  %v7414_v45 = vld [vmem:[#allocation17 + $0x30] ss:$8 sps:$4 sm:$0xff]  }
 0x6ee   : > { %v9213_v3 = vpack.c.bf16 %v3904_v14, %v3902_v57  ;;  %v3842_v42 = vmax.f32 %v3762_v17, 0.0  ;;  %v3766_v5 = vadd.f32 %v3765_v59, %v9064_v61  ;;  %v3767_v28 = vpop.f32.mrb[183].mxu0  ;;  %v7419_v17 = vld [vmem:[#allocation17 + $0x44] ss:$8 sps:$4 sm:$0xff]  }
 0x6ef   : > { %v3843_v7 = vmax.f32 %v3764_v62, 0.0  ;;  %v3768_v54 = vadd.f32 %v3767_v28, %v9069_v0  ;;  %v9217_v29 = vpack.c.bf16 %v3905_v27, %v3903_v25 }
 0x6f0   : > { %v3890_v30 = vadd.f32 %v9160_v24, %v3842_v42  ;;  %v3844_v44 = vmax.f32 %v3766_v5, 0.0 }
 0x6f1   : > { %v3891_v33 = vadd.f32 %v9163_v26, %v3843_v7  ;;  %v3845_v34 = vmax.f32 %v3768_v54, 0.0  ;;  %4174 = vmatprep.mubr.bf16.mxu1 %v9217_v29  ;;  %v7417_v7 = vld [vmem:[#allocation17 + $0x40] ss:$8 sps:$4 sm:$0xff]  }
 0x6f2   : > { %v3892_v35 = vadd.f32 %v9166_v20, %v3844_v44  ;;  %4175 = vmatmul.mubr.bf16.vlgmr.msra.gmra.mrb[128].mxu1 %v9213_v3  ;;  %v3906_v43 = vmul.f32 0.25, %v3890_v30  ;;  %v7422_v30 = vld [vmem:[#allocation17 + $0x54] ss:$8 sps:$4 sm:$0xff]  }
 0x6f3   : > { %v3893_v63 = vadd.f32 %v9169_v22, %v3845_v34  ;;  %4320 = vmatpush1.bf16.msra.mxu1 %v7405_v47  ;;  %v3771_v40 = vpop.f32.mrb[184].mxu0  ;;  %v3907_v26 = vmul.f32 0.25, %v3891_v33  ;;  %v7420_v33 = vld [vmem:[#allocation17 + $0x50] ss:$8 sps:$4 sm:$0xff]  }
 0x6f4   : > { %v3908_v46 = vmul.f32 0.25, %v3892_v35  ;;  %v3772_v24 = vadd.f32 %v3771_v40, %v9064_v61  ;;  %v3773_v13 = vpop.f32.mrb[185].mxu0  ;;  %4321 = vmatprep.subr.bf16.mxu1 %v7410_v15 }
 0x6f5   : > { %v3909_v49 = vmul.f32 0.25, %v3893_v63  ;;  %v3774_v51 = vadd.f32 %v3773_v13, %v9069_v0  ;;  %v3775_v1 = vpop.f32.mrb[186].mxu0  ;;  %v9260_v13 = vld [vmem:[%s8638_s15] sm:$0xff]  }
 0x6f6   : > { %v3846_v20 = vmax.f32 %v3772_v24, 0.0  ;;  %v3776_v2 = vadd.f32 %v3775_v1, %v9064_v61  ;;  %v3777_v4 = vpop.f32.mrb[187].mxu0  ;;  %v9228_v22 = vpack.c.bf16 %v3908_v46, %v3906_v43  ;;  %v7423_v43 = vld [vmem:[#allocation17 + $0x60] ss:$8 sps:$4 sm:$0xff]   ;;  %v8151_v46 = vmov 0  }
 0x6f7   : > { %v3847_v6 = vmax.f32 %v3774_v51, 0.0  ;;  %v3778_v8 = vadd.f32 %v3777_v4, %v9069_v0  ;;  %4322 = vmatpush1.bf16.msra.mxu1 %v7408_v12  ;;  %v9231_v60 = vpack.c.bf16 %v3909_v49, %v3907_v26  ;;  %v7435_v24 = vld [vmem:[#allocation22 + $0x4] ss:$8 sps:$4 sm:$0xff]   ;;  %v7438_v26 = vld [vmem:[#allocation22 + $0x14] ss:$8 sps:$4 sm:$0xff]  }
 0x6f8   : > { %v3894_v55 = vadd.f32 %v9176_v50, %v3846_v20  ;;  %v3848_v36 = vmax.f32 %v3776_v2, 0.0  ;;  %4323 = vmatprep.subr.bf16.mxu1 %v7413_v48  ;;  %v7433_v48 = vld [vmem:[#allocation22] ss:$8 sps:$4 sm:$0xff]   ;;  %v7436_v49 = vld [vmem:[#allocation22 + $0x10] ss:$8 sps:$4 sm:$0xff]  }
 0x6f9   : > { %v3895_v37 = vadd.f32 %v9179_v52, %v3847_v6  ;;  %v3849_v11 = vmax.f32 %v3778_v8, 0.0  ;;  %4184 = vmatprep.mubr.bf16.mxu1 %v9231_v60  ;;  %v7441_v51 = vld [vmem:[#allocation22 + $0x24] ss:$8 sps:$4 sm:$0xff]   ;;  %v7439_v20 = vld [vmem:[#allocation22 + $0x20] ss:$8 sps:$4 sm:$0xff]  }
 0x6fa   : > { %v3896_v38 = vadd.f32 %v9182_v31, %v3848_v36  ;;  %4185 = vmatmul.mubr.bf16.gmra.mrb[132].mxu1 %v9228_v22  ;;  %v3910_v21 = vmul.f32 0.25, %v3894_v55  ;;  %v9264_v1 = vld [vmem:[%s8638_s15 + $0x8] sm:$0xff]   ;;  %v7442_v4 = vld [vmem:[#allocation22 + $0x30] ss:$8 sps:$4 sm:$0xff]   ;;  %v9268_v8 = vld [vmem:[%s8638_s15 + $0x10] sm:$0xff]  }
 0x6fb   : > { %v3897_v18 = vadd.f32 %v9185_v32, %v3849_v11  ;;  %4324 = vmatpush1.bf16.msra.mxu1 %v7411_v9  ;;  %v3781_v56 = vpop.f32.mrb[188].mxu0  ;;  %v3911_v52 = vmul.f32 0.25, %v3895_v37  ;;  %v7444_v2 = vld [vmem:[#allocation22 + $0x34] ss:$8 sps:$4 sm:$0xff]   ;;  %v7447_v6 = vld [vmem:[#allocation22 + $0x44] ss:$8 sps:$4 sm:$0xff]  }
 0x6fc   : > { %v3912_v57 = vmul.f32 0.25, %v3896_v38  ;;  %v3782_v50 = vadd.f32 %v3781_v56, %v9064_v61  ;;  %v3783_v14 = vpop.f32.mrb[189].mxu0  ;;  %4325 = vmatprep.subr.bf16.mxu1 %v7416_v10  ;;  %v7445_v9 = vld [vmem:[#allocation22 + $0x40] ss:$8 sps:$4 sm:$0xff]   ;;  %v7450_v55 = vld [vmem:[#allocation22 + $0x54] ss:$8 sps:$4 sm:$0xff]  }
 0x6fd   : > { %v3913_v23 = vmul.f32 0.25, %v3897_v18  ;;  %v3784_v25 = vadd.f32 %v3783_v14, %v9069_v0  ;;  %v3785_v27 = vpop.f32.mrb[190].mxu0  ;;  %v7448_v36 = vld [vmem:[#allocation22 + $0x50] ss:$8 sps:$4 sm:$0xff]   ;;  %v7453_v10 = vld [vmem:[#allocation22 + $0x64] ss:$8 sps:$4 sm:$0xff]  }
 0x6fe   : > { %v3850_v31 = vmax.f32 %v3782_v50, 0.0  ;;  %v3786_v62 = vadd.f32 %v3785_v27, %v9064_v61  ;;  %v3787_v59 = vpop.f32.mrb[191].mxu0  ;;  %v9242_v32 = vpack.c.bf16 %v3912_v57, %v3910_v21  ;;  %v9272_v37 = vld [vmem:[%s8638_s15 + $0x18] sm:$0xff]   ;;  %v7451_v11 = vld [vmem:[#allocation22 + $0x60] ss:$8 sps:$4 sm:$0xff]  }
 0x6ff   : > { %v3851_v42 = vmax.f32 %v3784_v25, 0.0  ;;  %v3788_v5 = vadd.f32 %v3787_v59, %v9069_v0  ;;  %4326 = vmatpush1.bf16.msra.mxu1 %v7414_v45  ;;  %v9245_v28 = vpack.c.bf16 %v3913_v23, %v3911_v52  ;;  %v7456_v38 = vld [vmem:[#allocation22 + $0x74] ss:$8 sps:$4 sm:$0xff]   ;;  %v7454_v18 = vld [vmem:[#allocation22 + $0x70] ss:$8 sps:$4 sm:$0xff]  }
 0x700   : > { %v3898_v54 = vadd.f32 %v9192_v16, %v3850_v31  ;;  %v3852_v47 = vmax.f32 %v3786_v62, 0.0  ;;  %4327 = vmatprep.subr.bf16.mxu1 %v7419_v17  ;;  %v7425_v16 = vld [vmem:[#allocation17 + $0x64] ss:$8 sps:$4 sm:$0xff]   ;;  %v7462_v21 = vld [vmem:[#allocation22 + $0x94] ss:$8 sps:$4 sm:$0xff]  }
 0x701   : > { %v3899_v44 = vadd.f32 %v9195_v19, %v3851_v42  ;;  %v3853_v15 = vmax.f32 %v3788_v5, 0.0  ;;  %4194 = vmatprep.mubr.bf16.mxu1 %v9245_v28  ;;  %v7459_v56 = vld [vmem:[#allocation22 + $0x84] ss:$8 sps:$4 sm:$0xff]   ;;  %v7457_v45 = vld [vmem:[#allocation22 + $0x80] ss:$8 sps:$4 sm:$0xff]  }
 0x702   : > { %v3900_v61 = vadd.f32 %v9198_v53, %v3852_v47  ;;  %4195 = vmatmul.mubr.bf16.gmra.mrb[136].mxu1 %v9242_v32  ;;  %v3914_v34 = vmul.f32 0.25, %v3898_v54  ;;  %v7428_v53 = vld [vmem:[#allocation17 + $0x74] ss:$8 sps:$4 sm:$0xff]   ;;  %v7465_v50 = vld [vmem:[#allocation22 + $0xa4] ss:$8 sps:$4 sm:$0xff]  }
 0x703   : > { %v3901_v0 = vadd.f32 %v9201_v58, %v3853_v15  ;;  %4328 = vmatpush1.bf16.msra.mxu1 %v7417_v7  ;;  %v3915_v63 = vmul.f32 0.25, %v3899_v44  ;;  %v7426_v58 = vld [vmem:[#allocation17 + $0x70] ss:$8 sps:$4 sm:$0xff]   ;;  %v7463_v14 = vld [vmem:[#allocation22 + $0xa0] ss:$8 sps:$4 sm:$0xff]  }
 0x704   : > { %v3916_v35 = vmul.f32 0.25, %v3900_v61  ;;  %4329 = vmatprep.subr.bf16.mxu1 %v7422_v30  ;;  %v7460_v57 = vld [vmem:[#allocation22 + $0x90] ss:$8 sps:$4 sm:$0xff]   ;;  %v7468_v17 = vld [vmem:[#allocation22 + $0xb4] ss:$8 sps:$4 sm:$0xff]  }
 0x705   : > { %v3917_v40 = vmul.f32 0.25, %v3901_v0  ;;  %v7466_v52 = vld [vmem:[#allocation22 + $0xb0] ss:$8 sps:$4 sm:$0xff]   ;;  %v7471_v23 = vld [vmem:[#allocation22 + $0xc4] ss:$8 sps:$4 sm:$0xff]  }
 0x706   : > { %v9253_v12 = vpack.c.bf16 %v3916_v35, %v3914_v34  ;;  %v7469_v25 = vld [vmem:[#allocation22 + $0xc0] ss:$8 sps:$4 sm:$0xff]   ;;  %v7474_v27 = vld [vmem:[#allocation22 + $0xd4] ss:$8 sps:$4 sm:$0xff]   ;;  %v7472_v31 = vld [vmem:[#allocation22 + $0xd0] ss:$8 sps:$4 sm:$0xff]  }
 0x707   : > { %4330 = vmatpush1.bf16.msra.mxu1 %v7420_v33  ;;  %v9255_v19 = vpack.c.bf16 %v3917_v40, %v3915_v63  ;;  %v7477_v62 = vld [vmem:[#allocation22 + $0xe4] ss:$8 sps:$4 sm:$0xff]   ;;  %v7475_v59 = vld [vmem:[#allocation22 + $0xe0] ss:$8 sps:$4 sm:$0xff]   ;;  %v7480_v42 = vld [vmem:[#allocation22 + $0xf4] ss:$8 sps:$4 sm:$0xff]  }
 0x708   : > { %4331 = vmatprep.subr.bf16.mxu1 %v7425_v16  ;;  %v7478_v5 = vld [vmem:[#allocation22 + $0xf0] ss:$8 sps:$4 sm:$0xff]   ;;  %v7481_v7 = vld [vmem:[#allocation25] ss:$8 sps:$4 sm:$0xff]  }
 0x709   : > { %4204 = vmatprep.mubr.bf16.mxu1 %v9255_v19  ;;  %v7483_v54 = vld [vmem:[#allocation25 + $0x4] ss:$8 sps:$4 sm:$0xff]   ;;  %v7486_v47 = vld [vmem:[#allocation25 + $0x14] ss:$8 sps:$4 sm:$0xff]   ;;  %v7484_v30 = vld [vmem:[#allocation25 + $0x10] ss:$8 sps:$4 sm:$0xff]  }
 0x70a   : > { %4205 = vmatmul.mubr.bf16.gmra.mrb[140].mxu1 %v9253_v12  ;;  %4949 = vmatprep.subr.bf16.mxu0 %v7483_v54  ;;  %v7489_v44 = vld [vmem:[#allocation25 + $0x24] ss:$8 sps:$4 sm:$0xff]   ;;  %v7487_v15 = vld [vmem:[#allocation25 + $0x20] ss:$8 sps:$4 sm:$0xff]   ;;  %v7492_v61 = vld [vmem:[#allocation25 + $0x34] ss:$8 sps:$4 sm:$0xff]  }
 0x70b   : > { %4332 = vmatpush1.bf16.msra.mxu1 %v7423_v43  ;;  %4351 = vmatprep.mubr.bf16.mxu1 %v8151_v46  ;;  %v7490_v0 = vld [vmem:[#allocation25 + $0x30] ss:$8 sps:$4 sm:$0xff]   ;;  %v7495_v33 = vld [vmem:[#allocation25 + $0x44] ss:$8 sps:$4 sm:$0xff]   ;;  %v7493_v34 = vld [vmem:[#allocation25 + $0x40] ss:$8 sps:$4 sm:$0xff]  }
 0x70c   : > { %4333 = vmatprep.subr.bf16.mxu1 %v7428_v53  ;;  %4950 = vmatpush1.bf16.msra.mxu0 %v7481_v7  ;;  %v7498_v35 = vld [vmem:[#allocation25 + $0x54] ss:$8 sps:$4 sm:$0xff]   ;;  %v7496_v16 = vld [vmem:[#allocation25 + $0x50] ss:$8 sps:$4 sm:$0xff]   ;;  %v7501_v63 = vld [vmem:[#allocation25 + $0x64] ss:$8 sps:$4 sm:$0xff]  }
 0x70d   : > { %4951 = vmatprep.subr.bf16.mxu0 %v7486_v47  ;;  %v7499_v40 = vld [vmem:[#allocation25 + $0x60] ss:$8 sps:$4 sm:$0xff]   ;;  %v7504_v43 = vld [vmem:[#allocation25 + $0x74] ss:$8 sps:$4 sm:$0xff]   ;;  %v7502_v53 = vld [vmem:[#allocation25 + $0x70] ss:$8 sps:$4 sm:$0xff]  }
 0x70f   : > { %4334 = vmatpush1.bf16.msra.mxu1 %v7426_v58  ;;  %v7507_v58 = vld [vmem:[#allocation25 + $0x84] ss:$8 sps:$4 sm:$0xff]  }
 0x710   : > { %4648 = vmatprep.subr.bf16.mxu1 %v7435_v24  ;;  %4952 = vmatpush1.bf16.msra.mxu0 %v7484_v30  ;;  %v7510_v24 = vld [vmem:[#allocation25 + $0x94] ss:$8 sps:$4 sm:$0xff]  }
 0x711   : > { %4953 = vmatprep.subr.bf16.mxu0 %v7489_v44 }
 0x712   : > { %4352 = vmatmul.mubr.bf16.vlgmr.msra.gmra.mrb[128].mxu1 %v9260_v13 }
 0x713   : > { %4361 = vmatprep.mubr.bf16.mxu1 %v8151_v46  ;;  %4649 = vmatpush1.bf16.msra.mxu1 %v7433_v48  ;;  %v7508_v48 = vld [vmem:[#allocation25 + $0x90] ss:$8 sps:$4 sm:$0xff]  }
 0x714   : > { %4650 = vmatprep.subr.bf16.mxu1 %v7438_v26  ;;  %4954 = vmatpush1.bf16.msra.mxu0 %v7487_v15  ;;  %v7513_v26 = vld [vmem:[#allocation25 + $0xa4] ss:$8 sps:$4 sm:$0xff]  }
 0x715   : > { %4955 = vmatprep.subr.bf16.mxu0 %v7492_v61 }
 0x717   : > { %4651 = vmatpush1.bf16.msra.mxu1 %v7436_v49  ;;  %v7511_v49 = vld [vmem:[#allocation25 + $0xa0] ss:$8 sps:$4 sm:$0xff]  }
 0x718   : > { %4652 = vmatprep.subr.bf16.mxu1 %v7441_v51  ;;  %4956 = vmatpush1.bf16.msra.mxu0 %v7490_v0  ;;  %v7516_v51 = vld [vmem:[#allocation25 + $0xb4] ss:$8 sps:$4 sm:$0xff]  }
 0x719   : > { %4957 = vmatprep.subr.bf16.mxu0 %v7495_v33 }
 0x71a   : > { %4362 = vmatmul.mubr.bf16.gmra.mrb[132].mxu1 %v9264_v1 }
 0x71b   : > { %4371 = vmatprep.mubr.bf16.mxu1 %v8151_v46  ;;  %4653 = vmatpush1.bf16.msra.mxu1 %v7439_v20  ;;  %v7514_v20 = vld [vmem:[#allocation25 + $0xb0] ss:$8 sps:$4 sm:$0xff]  }
 0x71c   : > { %4654 = vmatprep.subr.bf16.mxu1 %v7444_v2  ;;  %4958 = vmatpush1.bf16.msra.mxu0 %v7493_v34  ;;  %v7519_v2 = vld [vmem:[#allocation25 + $0xc4] ss:$8 sps:$4 sm:$0xff]  }
 0x71d   : > { %4959 = vmatprep.subr.bf16.mxu0 %v7498_v35 }
 0x71f   : > { %4655 = vmatpush1.bf16.msra.mxu1 %v7442_v4  ;;  %v7517_v4 = vld [vmem:[#allocation25 + $0xc0] ss:$8 sps:$4 sm:$0xff]  }
 0x720   : > { %4656 = vmatprep.subr.bf16.mxu1 %v7447_v6  ;;  %4960 = vmatpush1.bf16.msra.mxu0 %v7496_v16  ;;  %v7522_v6 = vld [vmem:[#allocation25 + $0xd4] ss:$8 sps:$4 sm:$0xff]  }
 0x721   : > { %4961 = vmatprep.subr.bf16.mxu0 %v7501_v63 }
 0x722   : > { %4372 = vmatmul.mubr.bf16.gmra.mrb[136].mxu1 %v9268_v8 }
 0x723   : > { %4381 = vmatprep.mubr.bf16.mxu1 %v8151_v46  ;;  %4657 = vmatpush1.bf16.msra.mxu1 %v7445_v9  ;;  %v7505_v46 = vld [vmem:[#allocation25 + $0x80] ss:$8 sps:$4 sm:$0xff]   ;;  %v7520_v9 = vld [vmem:[#allocation25 + $0xd0] ss:$8 sps:$4 sm:$0xff]  }
 0x724   : > { %4658 = vmatprep.subr.bf16.mxu1 %v7450_v55  ;;  %4962 = vmatpush1.bf16.msra.mxu0 %v7499_v40  ;;  %v7525_v55 = vld [vmem:[#allocation25 + $0xe4] ss:$8 sps:$4 sm:$0xff]  }
 0x725   : > { %4963 = vmatprep.subr.bf16.mxu0 %v7504_v43 }
 0x727   : > { %4659 = vmatpush1.bf16.msra.mxu1 %v7448_v36  ;;  %v7523_v36 = vld [vmem:[#allocation25 + $0xe0] ss:$8 sps:$4 sm:$0xff]  }
 0x728   : > { %4660 = vmatprep.subr.bf16.mxu1 %v7453_v10  ;;  %4964 = vmatpush1.bf16.msra.mxu0 %v7502_v53  ;;  %v4392_v10 = vld [vmem:[#allocation20] sm:$0x3] }
 0x729   : > { %4965 = vmatprep.subr.bf16.mxu0 %v7507_v58 }
 0x72a   : > { %4382 = vmatmul.mubr.bf16.gmra.mrb[140].mxu1 %v9272_v37 }
 0x72b   : > { %4661 = vmatpush1.bf16.msra.mxu1 %v7451_v11  ;;  %v4397_v11 = vrot.slane %v4392_v10, %v8772_v39 }
 0x72c   : > { %4662 = vmatprep.subr.bf16.mxu1 %v7456_v38  ;;  %4966 = vmatpush1.bf16.msra.mxu0 %v7505_v46  ;;  %v4401_v38 = vrot.slane %v4392_v10, %v8775_v41 }
 0x72d   : > { %4967 = vmatprep.subr.bf16.mxu0 %v7510_v24 }
 0x72f   : > { %4663 = vmatpush1.bf16.msra.mxu1 %v7454_v18 }
 0x730   : > { %4664 = vmatprep.subr.bf16.mxu1 %v7459_v56  ;;  %4968 = vmatpush1.bf16.msra.mxu0 %v7508_v48 }
 0x731   : > { %4969 = vmatprep.subr.bf16.mxu0 %v7513_v26 }
 0x733   : > { %4665 = vmatpush1.bf16.msra.mxu1 %v7457_v45 }
 0x734   : > { %4666 = vmatprep.subr.bf16.mxu1 %v7462_v21  ;;  %4970 = vmatpush1.bf16.msra.mxu0 %v7511_v49 }
 0x735   : > { %4971 = vmatprep.subr.bf16.mxu0 %v7516_v51 }
 0x737   : > { %4667 = vmatpush1.bf16.msra.mxu1 %v7460_v57 }
 0x738   : > { %4668 = vmatprep.subr.bf16.mxu1 %v7465_v50  ;;  %4972 = vmatpush1.bf16.msra.mxu0 %v7514_v20 }
 0x739   : > { %4973 = vmatprep.subr.bf16.mxu0 %v7519_v2 }
 0x73b   : > { %4669 = vmatpush1.bf16.msra.mxu1 %v7463_v14 }
 0x73c   : > { %4670 = vmatprep.subr.bf16.mxu1 %v7468_v17  ;;  %4974 = vmatpush1.bf16.msra.mxu0 %v7517_v4 }
 0x73d   : > { %4975 = vmatprep.subr.bf16.mxu0 %v7522_v6 }
 0x73f   : > { %4671 = vmatpush1.bf16.msra.mxu1 %v7466_v52 }
 0x740   : > { %4672 = vmatprep.subr.bf16.mxu1 %v7471_v23  ;;  %4976 = vmatpush1.bf16.msra.mxu0 %v7520_v9 }
 0x741   : > { %4977 = vmatprep.subr.bf16.mxu0 %v7525_v55 }
 0x743   : > { %4673 = vmatpush1.bf16.msra.mxu1 %v7469_v25 }
 0x744   : > { %4674 = vmatprep.subr.bf16.mxu1 %v7474_v27  ;;  %4978 = vmatpush1.bf16.msra.mxu0 %v7523_v36 }
 0x747   : > { %4675 = vmatpush1.bf16.msra.mxu1 %v7472_v31 }
 0x748   : > { %4676 = vmatprep.subr.bf16.mxu1 %v7477_v62 }
 0x74b   : > { %4677 = vmatpush1.bf16.msra.mxu1 %v7475_v59 }
 0x74c   : > { %4678 = vmatprep.subr.bf16.mxu1 %v7480_v42 }
 0x74f   : > { %4679 = vmatpush1.bf16.msra.mxu1 %v7478_v5 }
 0x7e5   : > { %v4353_v18 = vpop.f32.mrb[128].mxu1 }
 0x7e6   : > { %v4404_v56 = vadd.f32 %v4397_v11, %v4353_v18  ;;  %v4355_v45 = vpop.f32.mrb[129].mxu1 }
 0x7e7   : > { %v4405_v21 = vadd.f32 %v4401_v38, %v4355_v45  ;;  %v4357_v57 = vpop.f32.mrb[130].mxu1 }
 0x7e8   : > { %v4406_v50 = vadd.f32 %v4397_v11, %v4357_v57  ;;  %v4359_v14 = vpop.f32.mrb[131].mxu1  ;;  %v4420_v52 = vmax.f32 %v4404_v56, 0.0 }
 0x7e9   : > { %v4407_v17 = vadd.f32 %v4401_v38, %v4359_v14  ;;  %v4421_v25 = vmax.f32 %v4405_v21, 0.0 }
 0x7ea   : > { %v4422_v23 = vmax.f32 %v4406_v50, 0.0 }
 0x7eb   : > { %v4423_v27 = vmax.f32 %v4407_v17, 0.0 }
 0x7ec   : > { %v4436_v31 = vpack.c.bf16 %v4422_v23, %v4420_v52  ;;  %v7528_v52 = vld [vmem:[#allocation25 + $0xf4] ss:$8 sps:$4 sm:$0xff]  }
 0x7ed   : > { %v4437_v62 = vpack.c.bf16 %v4423_v27, %v4421_v25  ;;  %v4363_v59 = vpop.f32.mrb[132].mxu1  ;;  %4979 = vmatprep.subr.bf16.mxu0 %v7528_v52  ;;  %v7545_v23 = vld [vmem:[%s9563_s14 + $0x40] sm:$0xff]   ;;  %v7547_v27 = vld [vmem:[%s9563_s14 + $0x48] sm:$0xff]  }
 0x7ee   : > { %v4408_v42 = vadd.f32 %v4397_v11, %v4363_v59  ;;  %v4365_v5 = vpop.f32.mrb[133].mxu1  ;;  %v7546_v25 = vld [vmem:[%s9563_s14] sm:$0xff]   ;;  %6659 = vmatprep.subr.bf16.mxu1 %v7545_v23  ;;  %v7550_v59 = vld [vmem:[%s9563_s14 + $0x10] sm:$0xff]  }
 0x7ef   : > { %v4409_v7 = vadd.f32 %v4401_v38, %v4365_v5  ;;  %v4367_v54 = vpop.f32.mrb[134].mxu1  ;;  %4680 = vmatprep.mubr.bf16.mxu1 %v4437_v62  ;;  %v7549_v62 = vld [vmem:[%s9563_s14 + $0x50] sm:$0xff]   ;;  %v7552_v5 = vld [vmem:[%s9563_s14 + $0x18] sm:$0xff]  }
 0x7f0   : > { %v4410_v47 = vadd.f32 %v4397_v11, %v4367_v54  ;;  %v4369_v30 = vpop.f32.mrb[135].mxu1  ;;  %4681 = vmatmul.mubr.bf16.vlgmr.msra.gmra.mrb[144].mxu1 %v4436_v31  ;;  %v4424_v15 = vmax.f32 %v4408_v42, 0.0  ;;  %v7548_v31 = vld [vmem:[%s9563_s14 + $0x8] sm:$0xff]   ;;  %v7551_v42 = vld [vmem:[%s9563_s14 + $0x58] sm:$0xff]   ;;  %v7554_v54 = vld [vmem:[%s9563_s14 + $0x20] sm:$0xff]  }
 0x7f1   : > { %v4411_v44 = vadd.f32 %v4401_v38, %v4369_v30  ;;  %v4425_v0 = vmax.f32 %v4409_v7, 0.0  ;;  %6660 = vmatpush3.bf16.msra.mxu1 %v7546_v25  ;;  %v7553_v7 = vld [vmem:[%s9563_s14 + $0x60] sm:$0xff]   ;;  %v7556_v30 = vld [vmem:[%s9563_s14 + $0x28] sm:$0xff]   ;;  %v7535_v25 = vld [vmem:[%s9562_s6 + $0x58] sm:$0xff]  }
 0x7f2   : > { %v4426_v61 = vmax.f32 %v4410_v47, 0.0  ;;  %6661 = vmatprep.subr.bf16.mxu1 %v7547_v27  ;;  %v7555_v47 = vld [vmem:[%s9563_s14 + $0x68] sm:$0xff]  }
 0x7f3   : > { %v4427_v33 = vmax.f32 %v4411_v44, 0.0  ;;  %v4476_v44 = vld [vmem:[#allocation23] sm:$0x3] }
 0x7f4   : > { %v4438_v34 = vpack.c.bf16 %v4426_v61, %v4424_v15  ;;  %v9291_v15 = vrot.slane %v4476_v44, %v8772_v39  ;;  %v9294_v61 = vrot.slane %v4476_v44, %v8775_v41 }
 0x7f5   : > { %v4439_v35 = vpack.c.bf16 %v4427_v33, %v4425_v0  ;;  %v4373_v16 = vpop.f32.mrb[136].mxu1  ;;  %6662 = vmatpush3.bf16.msra.mxu1 %v7548_v31 }
 0x7f6   : > { %v4412_v63 = vadd.f32 %v4397_v11, %v4373_v16  ;;  %v4375_v40 = vpop.f32.mrb[137].mxu1  ;;  %6663 = vmatprep.subr.bf16.mxu1 %v7549_v62 }
 0x7f7   : > { %v4413_v43 = vadd.f32 %v4401_v38, %v4375_v40  ;;  %v4377_v53 = vpop.f32.mrb[138].mxu1  ;;  %4690 = vmatprep.mubr.bf16.mxu1 %v4439_v35 }
 0x7f8   : > { %v4414_v58 = vadd.f32 %v4397_v11, %v4377_v53  ;;  %v4379_v46 = vpop.f32.mrb[139].mxu1  ;;  %4691 = vmatmul.mubr.bf16.gmra.mrb[148].mxu1 %v4438_v34  ;;  %v4428_v48 = vmax.f32 %v4412_v63, 0.0 }
 0x7f9   : > { %v4415_v24 = vadd.f32 %v4401_v38, %v4379_v46  ;;  %v4429_v49 = vmax.f32 %v4413_v43, 0.0  ;;  %6664 = vmatpush3.bf16.msra.mxu1 %v7550_v59 }
 0x7fa   : > { %v4430_v26 = vmax.f32 %v4414_v58, 0.0  ;;  %6665 = vmatprep.subr.bf16.mxu1 %v7551_v42 }
 0x7fb   : > { %v4431_v51 = vmax.f32 %v4415_v24, 0.0 }
 0x7fc   : > { %v4440_v20 = vpack.c.bf16 %v4430_v26, %v4428_v48 }
 0x7fd   : > { %v4441_v2 = vpack.c.bf16 %v4431_v51, %v4429_v49  ;;  %v4383_v4 = vpop.f32.mrb[140].mxu1  ;;  %6666 = vmatpush3.bf16.msra.mxu1 %v7552_v5  ;;  %v7530_v51 = vld [vmem:[%s9562_s6] sm:$0xff]   ;;  %v7536_v5 = vld [vmem:[%s9562_s6 + $0x18] sm:$0xff]  }
 0x7fe   : > { %v4416_v6 = vadd.f32 %v4397_v11, %v4383_v4  ;;  %v4385_v9 = vpop.f32.mrb[141].mxu1  ;;  %6667 = vmatprep.subr.bf16.mxu1 %v7553_v7  ;;  %v7531_v4 = vld [vmem:[%s9562_s6 + $0x48] sm:$0xff]  }
 0x7ff   : > { %v4417_v55 = vadd.f32 %v4401_v38, %v4385_v9  ;;  %v4387_v36 = vpop.f32.mrb[142].mxu1  ;;  %4700 = vmatprep.mubr.bf16.mxu1 %v4441_v2 }
 0x800   : > { %v4418_v10 = vadd.f32 %v4397_v11, %v4387_v36  ;;  %v4389_v18 = vpop.f32.mrb[143].mxu1  ;;  %4701 = vmatmul.mubr.bf16.gmra.mrb[152].mxu1 %v4440_v20  ;;  %v4432_v45 = vmax.f32 %v4416_v6, 0.0  ;;  %v7526_v11 = vld [vmem:[#allocation25 + $0xf0] ss:$8 sps:$4 sm:$0xff]  }
 0x801   : > { %v4419_v56 = vadd.f32 %v4401_v38, %v4389_v18  ;;  %v4433_v57 = vmax.f32 %v4417_v55, 0.0  ;;  %4980 = vmatpush1.bf16.msra.mxu0 %v7526_v11  ;;  %v7529_v38 = vld [vmem:[%s9562_s6 + $0x40] sm:$0xff]   ;;  %6668 = vmatpush3.bf16.msra.mxu1 %v7554_v54  ;;  %v7532_v18 = vld [vmem:[%s9562_s6 + $0x8] sm:$0xff]   ;;  %v7534_v11 = vld [vmem:[%s9562_s6 + $0x10] sm:$0xff]  }
 0x802   : > { %v4434_v21 = vmax.f32 %v4418_v10, 0.0  ;;  %6699 = vmatprep.subr.bf16.mxu0 %v7529_v38  ;;  %6669 = vmatprep.subr.bf16.mxu1 %v7555_v47  ;;  %v7537_v47 = vld [vmem:[%s9562_s6 + $0x60] sm:$0xff]  }
 0x803   : > { %v4435_v50 = vmax.f32 %v4419_v56, 0.0 }
 0x804   : > { %v4442_v14 = vpack.c.bf16 %v4434_v21, %v4432_v45  ;;  %v7533_v21 = vld [vmem:[%s9562_s6 + $0x50] sm:$0xff]  }
 0x805   : > { %v4443_v17 = vpack.c.bf16 %v4435_v50, %v4433_v57  ;;  %6670 = vmatpush3.bf16.msra.mxu1 %v7556_v30 }
 0x807   : > { %4710 = vmatprep.mubr.bf16.mxu1 %v4443_v17 }
 0x808   : > { %4711 = vmatmul.mubr.bf16.gmra.mrb[156].mxu1 %v4442_v14 }
 0x8c3   : > { %v4682_v0 = vpop.f32.mrb[144].mxu1 }
 0x8c4   : > { %v4683_v33 = vadd.f32 %v4682_v0, %v9291_v15  ;;  %v4684_v34 = vpop.f32.mrb[145].mxu1 }
 0x8c5   : > { %v4685_v35 = vadd.f32 %v4684_v34, %v9294_v61  ;;  %v4686_v16 = vpop.f32.mrb[146].mxu1 }
 0x8c6   : > { %v4687_v63 = vadd.f32 %v4686_v16, %v9291_v15  ;;  %v4688_v40 = vpop.f32.mrb[147].mxu1  ;;  %v4721_v53 = vmax.f32 %v4683_v33, 0.0 }
 0x8c7   : > { %v4689_v43 = vadd.f32 %v4688_v40, %v9294_v61  ;;  %v4722_v46 = vmax.f32 %v4685_v35, 0.0  ;;  %v7538_v35 = vld [vmem:[%s9562_s6 + $0x20] sm:$0xff]   ;;  %v7539_v40 = vld [vmem:[%s9562_s6 + $0x68] sm:$0xff]  }
 0x8c8   : > { %v4723_v58 = vmax.f32 %v4687_v63, 0.0 }
 0x8c9   : > { %v4724_v24 = vmax.f32 %v4689_v43, 0.0 }
 0x8ca   : > { %v4737_v48 = vpack.c.bf16 %v4723_v58, %v4721_v53 }
 0x8cb   : > { %v4738_v26 = vpack.c.bf16 %v4724_v24, %v4722_v46  ;;  %v4692_v49 = vpop.f32.mrb[148].mxu1 }
 0x8cc   : > { %v4693_v20 = vadd.f32 %v4692_v49, %v9291_v15  ;;  %v4694_v2 = vpop.f32.mrb[149].mxu1 }
 0x8cd   : > { %v4695_v6 = vadd.f32 %v4694_v2, %v9294_v61  ;;  %v4696_v9 = vpop.f32.mrb[150].mxu1  ;;  %4981 = vmatprep.mubr.bf16.mxu0 %v4738_v26 }
 0x8ce   : > { %v4697_v55 = vadd.f32 %v4696_v9, %v9291_v15  ;;  %v4698_v36 = vpop.f32.mrb[151].mxu1  ;;  %4982 = vmatmul.mubr.bf16.vlgmr.msra.gmra.mrb[192].mxu0 %v4737_v48  ;;  %v4725_v56 = vmax.f32 %v4693_v20, 0.0  ;;  %v7540_v48 = vld [vmem:[%s9562_s6 + $0x28] sm:$0xff]   ;;  %v7542_v9 = vld [vmem:[%s9562_s6 + $0x30] sm:$0xff]  }
 0x8cf   : > { %v4699_v10 = vadd.f32 %v4698_v36, %v9294_v61  ;;  %6700 = vmatpush3.bf16.msra.mxu0 %v7530_v51  ;;  %v4726_v57 = vmax.f32 %v4695_v6, 0.0  ;;  %v7541_v51 = vld [vmem:[%s9562_s6 + $0x70] sm:$0xff]   ;;  %v7559_v36 = vld [vmem:[%s9563_s14 + $0x78] sm:$0xff]  }
 0x8d0   : > { %v4727_v45 = vmax.f32 %v4697_v55, 0.0  ;;  %6701 = vmatprep.subr.bf16.mxu0 %v7531_v4  ;;  %v7558_v55 = vld [vmem:[%s9563_s14 + $0x30] sm:$0xff]  }
 0x8d1   : > { %v4728_v50 = vmax.f32 %v4699_v10, 0.0  ;;  %v7560_v10 = vld [vmem:[%s9563_s14 + $0x38] sm:$0xff]  }
 0x8d2   : > { %v4739_v14 = vpack.c.bf16 %v4727_v45, %v4725_v56 }
 0x8d3   : > { %v4740_v17 = vpack.c.bf16 %v4728_v50, %v4726_v57  ;;  %v4702_v52 = vpop.f32.mrb[152].mxu1  ;;  %6702 = vmatpush3.bf16.msra.mxu0 %v7532_v18 }
 0x8d4   : > { %v4703_v38 = vadd.f32 %v4702_v52, %v9291_v15  ;;  %v4704_v23 = vpop.f32.mrb[153].mxu1  ;;  %6703 = vmatprep.subr.bf16.mxu0 %v7533_v21 }
 0x8d5   : > { %v4705_v27 = vadd.f32 %v4704_v23, %v9294_v61  ;;  %v4706_v31 = vpop.f32.mrb[154].mxu1  ;;  %4991 = vmatprep.mubr.bf16.mxu0 %v4740_v17 }
 0x8d6   : > { %v4707_v62 = vadd.f32 %v4706_v31, %v9291_v15  ;;  %v4708_v59 = vpop.f32.mrb[155].mxu1  ;;  %4992 = vmatmul.mubr.bf16.gmra.mrb[196].mxu0 %v4739_v14  ;;  %v4729_v7 = vmax.f32 %v4703_v38, 0.0 }
 0x8d7   : > { %v4709_v42 = vadd.f32 %v4708_v59, %v9294_v61  ;;  %6704 = vmatpush3.bf16.msra.mxu0 %v7534_v11  ;;  %v4730_v30 = vmax.f32 %v4705_v27, 0.0 }
 0x8d8   : > { %v4731_v54 = vmax.f32 %v4707_v62, 0.0  ;;  %6705 = vmatprep.subr.bf16.mxu0 %v7535_v25  ;;  %v7562_v25 = vld [vmem:[%s9565_s29 + $0x8] sm:$0xff]  }
 0x8d9   : > { %v4732_v44 = vmax.f32 %v4709_v42, 0.0 }
 0x8da   : > { %v4741_v0 = vpack.c.bf16 %v4731_v54, %v4729_v7  ;;  %v7563_v54 = vld [vmem:[%s9565_s29 + $0x10] sm:$0xff]  }
 0x8db   : > { %v4742_v33 = vpack.c.bf16 %v4732_v44, %v4730_v30  ;;  %v4712_v34 = vpop.f32.mrb[156].mxu1  ;;  %6706 = vmatpush3.bf16.msra.mxu0 %v7536_v5 }
 0x8dc   : > { %v4713_v16 = vadd.f32 %v4712_v34, %v9291_v15  ;;  %v4714_v63 = vpop.f32.mrb[157].mxu1  ;;  %6707 = vmatprep.subr.bf16.mxu0 %v7537_v47 }
 0x8dd   : > { %v4715_v43 = vadd.f32 %v4714_v63, %v9294_v61  ;;  %v4716_v53 = vpop.f32.mrb[158].mxu1  ;;  %5001 = vmatprep.mubr.bf16.mxu0 %v4742_v33 }
 0x8de   : > { %v4717_v58 = vadd.f32 %v4716_v53, %v9291_v15  ;;  %v4718_v46 = vpop.f32.mrb[159].mxu1  ;;  %5002 = vmatmul.mubr.bf16.gmra.mrb[200].mxu0 %v4741_v0  ;;  %v4733_v26 = vmax.f32 %v4713_v16, 0.0  ;;  %v7543_v15 = vld [vmem:[%s9562_s6 + $0x78] sm:$0xff]  }
 0x8df   : > { %v4719_v24 = vadd.f32 %v4718_v46, %v9294_v61  ;;  %6708 = vmatpush3.bf16.msra.mxu0 %v7538_v35  ;;  %v4734_v20 = vmax.f32 %v4715_v43, 0.0  ;;  %v7544_v61 = vld [vmem:[%s9562_s6 + $0x38] sm:$0xff]  }
 0x8e0   : > { %v4735_v49 = vmax.f32 %v4717_v58, 0.0  ;;  %6709 = vmatprep.subr.bf16.mxu0 %v7539_v40  ;;  %v7564_v16 = vld [vmem:[%s9565_s29 + $0x18] sm:$0xff]  }
 0x8e1   : > { %v4736_v2 = vmax.f32 %v4719_v24, 0.0 }
 0x8e2   : > { %v4743_v4 = vpack.c.bf16 %v4735_v49, %v4733_v26 }
 0x8e3   : > { %v4744_v6 = vpack.c.bf16 %v4736_v2, %v4734_v20  ;;  %6710 = vmatpush3.bf16.msra.mxu0 %v7540_v48  ;;  %v7565_v48 = vld [vmem:[%s9565_s29 + $0x20] sm:$0xff]  }
 0x8e4   : > { %6711 = vmatprep.subr.bf16.mxu0 %v7541_v51 }
 0x8e5   : > { %5011 = vmatprep.mubr.bf16.mxu0 %v4744_v6 }
 0x8e6   : > { %5012 = vmatmul.mubr.bf16.gmra.mrb[204].mxu0 %v4743_v4 }
 0x8e7   : > { %6712 = vmatpush3.bf16.msra.mxu0 %v7542_v9  ;;  %5422 = vmatprep.mubr.bf16.mxu0 %v9217_v29  ;;  %v7557_v29 = vld [vmem:[%s9563_s14 + $0x70] sm:$0xff]   ;;  %v7566_v9 = vld [vmem:[%s9565_s29 + $0x28] sm:$0xff]  }
 0x8e8   : > { %6713 = vmatprep.subr.bf16.mxu0 %v7543_v15  ;;  %6671 = vmatprep.subr.bf16.mxu1 %v7557_v29 }
 0x8e9   : > { %6672 = vmatpush3.bf16.msra.mxu1 %v7558_v55 }
 0x8ea   : > { %6673 = vmatprep.subr.bf16.mxu1 %v7559_v36 }
 0x8eb   : > { %6714 = vmatpush3.bf16.msra.mxu0 %v7544_v61 }
 0x8ed   : > { %6674 = vmatpush3.bf16.msra.mxu1 %v7560_v10 }
 0x8ee   : > { %5423 = vmatmul.mubr.bf16.vlgmr.msra.gmra.mrb[208].mxu0 %v9213_v3  ;;  %v7561_v3 = vld [vmem:[%s9564_s22] sm:$0xff]  }
 0x8ef   : > { %5430 = vmatprep.mubr.bf16.mxu0 %v9231_v60  ;;  %6770 = vmatprep.subr.bf16.mxu1 %v7561_v3  ;;  %v4777_v60 = vld [vmem:[#allocation26] sm:$0x3] }
 0x8f6   : > { %5431 = vmatmul.mubr.bf16.gmra.mrb[212].mxu0 %v9228_v22  ;;  %v9341_v22 = vrot.slane %v4777_v60, %v8772_v39 }
 0x8f7   : > { %5438 = vmatprep.mubr.bf16.mxu0 %v9245_v28 }
 0x8fe   : > { %5439 = vmatmul.mubr.bf16.gmra.mrb[216].mxu0 %v9242_v32  ;;  %v9344_v32 = vrot.slane %v4777_v60, %v8775_v41  ;;  %v7567_v60 = vld [vmem:[%s9565_s29 + $0x30] sm:$0xff]  }
 0x8ff   : > { %5446 = vmatprep.mubr.bf16.mxu0 %v9255_v19 }
 0x906   : > { %5447 = vmatmul.mubr.bf16.gmra.mrb[220].mxu0 %v9253_v12 }
 0x9a1   : > { %v4983_v28 = vpop.f32.mrb[192].mxu0 }
 0x9a2   : > { %v4984_v12 = vadd.f32 %v4983_v28, %v9341_v22  ;;  %v4985_v19 = vpop.f32.mrb[193].mxu0 }
 0x9a3   : > { %v4986_v18 = vadd.f32 %v4985_v19, %v9344_v32  ;;  %v4987_v56 = vpop.f32.mrb[194].mxu0 }
 0x9a4   : > { %v4988_v45 = vadd.f32 %v4987_v56, %v9341_v22  ;;  %v4989_v21 = vpop.f32.mrb[195].mxu0  ;;  %v5022_v50 = vmax.f32 %v4984_v12, 0.0 }
 0x9a5   : > { %v4990_v57 = vadd.f32 %v4989_v21, %v9344_v32  ;;  %v5023_v39 = vmax.f32 %v4986_v18, 0.0  ;;  %v7568_v21 = vld [vmem:[%s9565_s29 + $0x38] sm:$0xff]  }
 0x9a6   : > { %v5024_v14 = vmax.f32 %v4988_v45, 0.0 }
 0x9a7   : > { %v5025_v17 = vmax.f32 %v4990_v57, 0.0 }
 0x9a8   : > { %v5038_v52 = vpack.c.bf16 %v5024_v14, %v5022_v50 }
 0x9a9   : > { %v5039_v41 = vpack.c.bf16 %v5025_v17, %v5023_v39  ;;  %v4993_v11 = vpop.f32.mrb[196].mxu0 }
 0x9aa   : > { %v4994_v38 = vadd.f32 %v4993_v11, %v9341_v22  ;;  %v4995_v23 = vpop.f32.mrb[197].mxu0 }
 0x9ab   : > { %v4996_v27 = vadd.f32 %v4995_v23, %v9344_v32  ;;  %v4997_v31 = vpop.f32.mrb[198].mxu0  ;;  %5213 = vmatprep.mubr.bf16.mxu1 %v5039_v41 }
 0x9ac   : > { %v4998_v62 = vadd.f32 %v4997_v31, %v9341_v22  ;;  %v4999_v59 = vpop.f32.mrb[199].mxu0  ;;  %5214 = vmatmul.mubr.bf16.vlgmr.msra.gmra.mrb[160].mxu1 %v5038_v52  ;;  %v5026_v5 = vmax.f32 %v4994_v38, 0.0 }
 0x9ad   : > { %v5000_v42 = vadd.f32 %v4999_v59, %v9344_v32  ;;  %6771 = vmatpush3.bf16.msra.mxu1 %v7561_v3  ;;  %v5027_v47 = vmax.f32 %v4996_v27, 0.0 }
 0x9ae   : > { %v5028_v7 = vmax.f32 %v4998_v62, 0.0  ;;  %6772 = vmatprep.subr.bf16.mxu1 %v7562_v25 }
 0x9af   : > { %v5029_v30 = vmax.f32 %v5000_v42, 0.0 }
 0x9b0   : > { %v5040_v44 = vpack.c.bf16 %v5028_v7, %v5026_v5  ;;  %v7569_v7 = vld [vmem:[%s8278_s17] sm:$0xff]  }
 0x9b1   : > { %v5041_v0 = vpack.c.bf16 %v5029_v30, %v5027_v47  ;;  %6773 = vmatpush3.bf16.msra.mxu1 %v7562_v25  ;;  %v5003_v33 = vpop.f32.mrb[200].mxu0  ;;  %v7572_v47 = vld [vmem:[%s8278_s17 + $0x18] sm:$0xff]   ;;  %v7573_v30 = vld [vmem:[%s9566_s25] sm:$0xff]  }
 0x9b2   : > { %v5004_v34 = vadd.f32 %v5003_v33, %v9341_v22  ;;  %v5005_v35 = vpop.f32.mrb[201].mxu0  ;;  %6774 = vmatprep.subr.bf16.mxu1 %v7563_v54  ;;  %6810 = vmatprep.subr.bf16.mxu0 %v7573_v30  ;;  %v6590_v33 = vld [vmem:[#allocation2] ss:$0 sm:$0xff] }
 0x9b3   : > { %v5006_v63 = vadd.f32 %v5005_v35, %v9344_v32  ;;  %v5007_v40 = vpop.f32.mrb[202].mxu0  ;;  %5221 = vmatprep.mubr.bf16.mxu1 %v5041_v0  ;;  %6811 = vmatpush3.bf16.msra.mxu0 %v7573_v30 }
 0x9b4   : > { %v5008_v43 = vadd.f32 %v5007_v40, %v9341_v22  ;;  %v5009_v53 = vpop.f32.mrb[203].mxu0  ;;  %5222 = vmatmul.mubr.bf16.gmra.mrb[164].mxu1 %v5040_v44  ;;  %v5030_v46 = vmax.f32 %v5004_v34, 0.0  ;;  %v7574_v44 = vld [vmem:[%s9566_s25 + $0x8] sm:$0xff]  }
 0x9b5   : > { %v5010_v58 = vadd.f32 %v5009_v53, %v9344_v32  ;;  %6775 = vmatpush3.bf16.msra.mxu1 %v7563_v54  ;;  %v5031_v26 = vmax.f32 %v5006_v63, 0.0  ;;  %v7570_v54 = vld [vmem:[%s8278_s17 + $0x8] sm:$0xff]   ;;  %6812 = vmatprep.subr.bf16.mxu0 %v7574_v44 }
 0x9b6   : > { %v5032_v24 = vmax.f32 %v5008_v43, 0.0  ;;  %6776 = vmatprep.subr.bf16.mxu1 %v7564_v16 }
 0x9b7   : > { %v5033_v49 = vmax.f32 %v5010_v58, 0.0  ;;  %6813 = vmatpush3.bf16.msra.mxu0 %v7574_v44 }
 0x9b8   : > { %v5042_v51 = vpack.c.bf16 %v5032_v24, %v5030_v46 }
 0x9b9   : > { %v5043_v20 = vpack.c.bf16 %v5033_v49, %v5031_v26  ;;  %6777 = vmatpush3.bf16.msra.mxu1 %v7564_v16  ;;  %v5013_v2 = vpop.f32.mrb[204].mxu0 }
 0x9ba   : > { %v5014_v4 = vadd.f32 %v5013_v2, %v9341_v22  ;;  %v5015_v6 = vpop.f32.mrb[205].mxu0  ;;  %6778 = vmatprep.subr.bf16.mxu1 %v7565_v48 }
 0x9bb   : > { %v5016_v15 = vadd.f32 %v5015_v6, %v9344_v32  ;;  %v5017_v61 = vpop.f32.mrb[206].mxu0  ;;  %5229 = vmatprep.mubr.bf16.mxu1 %v5043_v20 }
 0x9bc   : > { %v5018_v29 = vadd.f32 %v5017_v61, %v9341_v22  ;;  %v5019_v55 = vpop.f32.mrb[207].mxu0  ;;  %5230 = vmatmul.mubr.bf16.gmra.mrb[168].mxu1 %v5042_v51  ;;  %v5034_v10 = vmax.f32 %v5014_v4, 0.0 }
 0x9bd   : > { %v5020_v36 = vadd.f32 %v5019_v55, %v9344_v32  ;;  %6779 = vmatpush3.bf16.msra.mxu1 %v7565_v48  ;;  %v5035_v28 = vmax.f32 %v5016_v15, 0.0 }
 0x9be   : > { %v5036_v3 = vmax.f32 %v5018_v29, 0.0  ;;  %6780 = vmatprep.subr.bf16.mxu1 %v7566_v9 }
 0x9bf   : > { %v5037_v12 = vmax.f32 %v5020_v36, 0.0 }
 0x9c0   : > { %v5044_v19 = vpack.c.bf16 %v5036_v3, %v5034_v10 }
 0x9c1   : > { %v5045_v18 = vpack.c.bf16 %v5037_v12, %v5035_v28  ;;  %6781 = vmatpush3.bf16.msra.mxu1 %v7566_v9  ;;  %v6715_v56 = vpop.f32.mrb[208].mxu0 }
 0x9c2   : > { %v6716_v45 = vpop.f32.mrb[209].mxu0  ;;  %6782 = vmatprep.subr.bf16.mxu1 %v7567_v60 }
 0x9c3   : > { %v9369_v22 = vadd.f32 %v6716_v45, %v6715_v56  ;;  %5237 = vmatprep.mubr.bf16.mxu1 %v5045_v18  ;;  %v6718_v57 = vpop.f32.mrb[210].mxu0  ;;  %v6631_v45 = vld [vmem:[%s9567_s28] ss:$0 sm:$0xff] }
 0x9c4   : > { %5238 = vmatmul.mubr.bf16.gmra.mrb[172].mxu1 %v5044_v19  ;;  %v6719_v32 = vpop.f32.mrb[211].mxu0 }
 0x9c5   : > { %v9371_v50 = vadd.f32 %v6719_v32, %v6718_v57  ;;  %6783 = vmatpush3.bf16.msra.mxu1 %v7567_v60  ;;  %6786 = vmatprep.mubr.bf16.mxu1 %v9260_v13 }
 0x9c6   : > { %6784 = vmatprep.subr.bf16.mxu1 %v7568_v21 }
 0x9c9   : > { %6785 = vmatpush3.bf16.msra.mxu1 %v7568_v21  ;;  %v6721_v14 = vpop.f32.mrb[212].mxu0 }
 0x9ca   : > { %v6722_v39 = vpop.f32.mrb[213].mxu0  ;;  %6794 = vmatprep.subr.bf16.mxu1 %v7569_v7 }
 0x9cb   : > { %v9374_v17 = vadd.f32 %v6722_v39, %v6721_v14  ;;  %v6724_v52 = vpop.f32.mrb[214].mxu0 }
 0x9cc   : > { %v6725_v41 = vpop.f32.mrb[215].mxu0  ;;  %6787 = vmatmul.mubr.bf16.vlgmr.msra.gmra.mrb[176].mxu1 %v9264_v1 }
 0x9cd   : > { %v9377_v11 = vadd.f32 %v6725_v41, %v6724_v52  ;;  %6790 = vmatprep.mubr.bf16.mxu1 %v9268_v8  ;;  %6795 = vmatpush3.bf16.msra.mxu1 %v7569_v7 }
 0x9ce   : > { %6796 = vmatprep.subr.bf16.mxu1 %v7570_v54 }
 0x9d1   : > { %v6727_v38 = vpop.f32.mrb[216].mxu0  ;;  %6797 = vmatpush3.bf16.msra.mxu1 %v7570_v54 }
 0x9d2   : > { %v6728_v23 = vpop.f32.mrb[217].mxu0 }
 0x9d3   : > { %v9380_v25 = vadd.f32 %v6728_v23, %v6727_v38  ;;  %v6730_v13 = vpop.f32.mrb[218].mxu0 }
 0x9d4   : > { %v6731_v27 = vpop.f32.mrb[219].mxu0  ;;  %6791 = vmatmul.mubr.bf16.gmra.mrb[180].mxu1 %v9272_v37  ;;  %v7571_v37 = vld [vmem:[%s8278_s17 + $0x10] sm:$0xff]  }
 0x9d5   : > { %v9383_v31 = vadd.f32 %v6731_v27, %v6730_v13  ;;  %6798 = vmatprep.subr.bf16.mxu1 %v7571_v37 }
 0x9d6   : > { %6799 = vmatpush3.bf16.msra.mxu1 %v7571_v37 }
 0x9d7   : > { %6800 = vmatprep.subr.bf16.mxu1 %v7572_v47 }
 0x9d9   : > { %v6733_v62 = vpop.f32.mrb[220].mxu0 }
 0x9da   : > { %v6734_v1 = vpop.f32.mrb[221].mxu0  ;;  %6801 = vmatpush3.bf16.msra.mxu1 %v7572_v47 }
 0x9db   : > { %v9385_v59 = vadd.f32 %v6734_v1, %v6733_v62  ;;  %v6736_v42 = vpop.f32.mrb[222].mxu0 }
 0x9dc   : > { %v6737_v8 = vpop.f32.mrb[223].mxu0 }
 0x9dd   : > { %v9387_v5 = vadd.f32 %v6737_v8, %v6736_v42 }
 0xa7f   : > { %v6675_v0 = vpop.f32.mrb[160].mxu1 }
 0xa80   : > { %v6676_v34 = vpop.f32.mrb[161].mxu1 }
 0xa81   : > { %v6677_v35 = vadd.f32 %v6676_v34, %v6675_v0  ;;  %v6678_v16 = vpop.f32.mrb[162].mxu1 }
 0xa82   : > { %v6679_v63 = vpop.f32.mrb[163].mxu1 }
 0xa83   : > { %v5216_v40 = vadd.f32 %v6677_v35, %v6590_v33  ;;  %v6680_v43 = vadd.f32 %v6679_v63, %v6678_v16 }
 0xa85   : > { %5940 = vst.msk [vmem:[%s9402_s4] sm:$0xff] %vm5939_vm0, %v5216_v40  ;;  %v5219_v53 = vadd.f32 %v6680_v43, %v6590_v33 }
 0xa87   : > { %5941 = vst.msk [vmem:[%s9402_s4 + $0x8] sm:$0xff] %vm5939_vm0, %v5219_v53  ;;  %v6681_v58 = vpop.f32.mrb[164].mxu1 }
 0xa88   : > { %v6682_v46 = vpop.f32.mrb[165].mxu1 }
 0xa89   : > { %v6683_v24 = vadd.f32 %v6682_v46, %v6681_v58  ;;  %v6684_v48 = vpop.f32.mrb[166].mxu1 }
 0xa8a   : > { %v6685_v26 = vpop.f32.mrb[167].mxu1 }
 0xa8b   : > { %v5224_v49 = vadd.f32 %v6683_v24, %v6590_v33  ;;  %v6686_v51 = vadd.f32 %v6685_v26, %v6684_v48 }
 0xa8d   : > { %5942 = vst.msk [vmem:[%s9402_s4 + $0x10] sm:$0xff] %vm5939_vm0, %v5224_v49  ;;  %v5227_v20 = vadd.f32 %v6686_v51, %v6590_v33 }
 0xa8f   : > { %5943 = vst.msk [vmem:[%s9402_s4 + $0x18] sm:$0xff] %vm5939_vm0, %v5227_v20  ;;  %v6687_v2 = vpop.f32.mrb[168].mxu1 }
 0xa90   : > { %v6688_v4 = vpop.f32.mrb[169].mxu1 }
 0xa91   : > { %v6689_v6 = vadd.f32 %v6688_v4, %v6687_v2  ;;  %v6690_v9 = vpop.f32.mrb[170].mxu1 }
 0xa92   : > { %v6691_v15 = vpop.f32.mrb[171].mxu1 }
 0xa93   : > { %v5232_v61 = vadd.f32 %v6689_v6, %v6590_v33  ;;  %v6692_v29 = vadd.f32 %v6691_v15, %v6690_v9 }
 0xa95   : > { %5944 = vst.msk [vmem:[%s9402_s4 + $0x20] sm:$0xff] %vm5939_vm0, %v5232_v61  ;;  %v5235_v55 = vadd.f32 %v6692_v29, %v6590_v33 }
 0xa97   : > { %5945 = vst.msk [vmem:[%s9402_s4 + $0x28] sm:$0xff] %vm5939_vm0, %v5235_v55  ;;  %v6693_v36 = vpop.f32.mrb[172].mxu1 }
 0xa98   : > { %v6694_v10 = vpop.f32.mrb[173].mxu1 }
 0xa99   : > { %v6695_v3 = vadd.f32 %v6694_v10, %v6693_v36  ;;  %v6696_v60 = vpop.f32.mrb[174].mxu1 }
 0xa9a   : > { %v6697_v28 = vpop.f32.mrb[175].mxu1 }
 0xa9b   : > { %v5240_v12 = vadd.f32 %v6695_v3, %v6590_v33  ;;  %v6698_v19 = vadd.f32 %v6697_v28, %v6696_v60 }
 0xa9d   : > { %5946 = vst.msk [vmem:[%s9402_s4 + $0x30] sm:$0xff] %vm5939_vm0, %v5240_v12  ;;  %v5243_v18 = vadd.f32 %v6698_v19, %v6590_v33 }
 0xa9f   : > { %5947 = vst.msk [vmem:[%s9402_s4 + $0x38] sm:$0xff] %vm5939_vm0, %v5243_v18  ;;  %v6788_v56 = vpop.f32.mrb[176].mxu1 }
 0xaa0   : > { %v5546_v21 = vadd.f32 %v6788_v56, %v9374_v17  ;;  %v5537_v57 = vpop.f32.mrb[177].mxu1 }
 0xaa1   : > { %v5538_v32 = vadd.f32 %v9369_v22, %v5537_v57  ;;  %v6789_v14 = vpop.f32.mrb[178].mxu1  ;;  %v6641_v57 = vld [vmem:[%s9569_s3] ss:$0 sm:$0xff] }
 0xaa2   : > { %v5577_v39 = vadd.f32 %v6631_v45, %v5546_v21  ;;  %v5549_v52 = vadd.f32 %v6789_v14, %v9377_v11  ;;  %v5540_v41 = vpop.f32.mrb[179].mxu1 }
 0xaa3   : > { %v5575_v38 = vadd.f32 %v6631_v45, %v5538_v32  ;;  %v5541_v23 = vadd.f32 %v9371_v50, %v5540_v41 }
 0xaa4   : > { %v5578_v13 = vadd.f32 %v6631_v45, %v5549_v52  ;;  %v5585_v62 = vmax.f32 %v5577_v39, 0.0 }
 0xaa5   : > { %v5576_v27 = vadd.f32 %v6631_v45, %v5541_v23  ;;  %v5583_v42 = vmax.f32 %v5575_v38, 0.0 }
 0xaa6   : > { %v5586_v1 = vmax.f32 %v5578_v13, 0.0 }
 0xaa7   : > { %v5584_v8 = vmax.f32 %v5576_v27, 0.0  ;;  %v6792_v7 = vpop.f32.mrb[180].mxu1 }
 0xaa8   : > { %v5592_v54 = vpack.c.bf16 %v5586_v1, %v5585_v62  ;;  %v5562_v17 = vadd.f32 %v6792_v7, %v9385_v59  ;;  %v5553_v37 = vpop.f32.mrb[181].mxu1 }
 0xaa9   : > { %v5591_v22 = vpack.c.bf16 %v5584_v8, %v5583_v42  ;;  %v5554_v47 = vadd.f32 %v9380_v25, %v5553_v37  ;;  %v6793_v11 = vpop.f32.mrb[182].mxu1 }
 0xaaa   : > { %v5581_v30 = vadd.f32 %v6631_v45, %v5562_v17  ;;  %v5565_v44 = vadd.f32 %v6793_v11, %v9387_v5  ;;  %v5556_v50 = vpop.f32.mrb[183].mxu1  ;;  %v7575_v5 = vld [vmem:[%s8298_s1] sm:$0xff]  }
 0xaab   : > { %v5579_v0 = vadd.f32 %v6631_v45, %v5554_v47  ;;  %v5557_v33 = vadd.f32 %v9383_v31, %v5556_v50  ;;  %6802 = vmatprep.mubr.msk.bf16.mxu1 %vm5634_vm1, %v5591_v22  ;;  %6822 = vmatprep.subr.bf16.mxu1 %v7575_v5  ;;  %v6632_v31 = vld [vmem:[%s9568_s26] ss:$0 sm:$0xff] }
 0xaac   : > { %v5582_v34 = vadd.f32 %v6631_v45, %v5565_v44  ;;  %6803 = vmatmul.mubr.msk.bf16.vlgmr.msra.gmra.mrb[184].mxu1 %vm5634_vm1, %v5592_v54  ;;  %v5589_v35 = vmax.f32 %v5581_v30, 0.0 }
 0xaad   : > { %v5580_v59 = vadd.f32 %v6631_v45, %v5557_v33  ;;  %v5587_v63 = vmax.f32 %v5579_v0, 0.0  ;;  %6823 = vmatpush3.bf16.msra.mxu1 %v7575_v5 }
 0xaae   : > { %v5590_v16 = vmax.f32 %v5582_v34, 0.0 }
 0xaaf   : > { %v5588_v25 = vmax.f32 %v5580_v59, 0.0 }
 0xab0   : > { %v5594_v40 = vpack.c.bf16 %v5590_v16, %v5589_v35  ;;  %v6648_v16 = vld [vmem:[%s9570_s0] ss:$0 sm:$0xff] }
 0xab1   : > { %v5593_v43 = vpack.c.bf16 %v5588_v25, %v5587_v63 }
 0xab3   : > { %6806 = vmatprep.mubr.msk.bf16.mxu1 %vm5634_vm1, %v5593_v43 }
 0xab4   : > { %6807 = vmatmul.mubr.msk.bf16.gmra.mrb[188].mxu1 %vm5634_vm1, %v5594_v40 }
 0xb7f   : > { %v6804_v53 = vpop.f32.mrb[184].mxu1 }
 0xb80   : > { %v5690_v58 = vadd.f32 %v6804_v53, %v6632_v31  ;;  %v5681_v46 = vpop.f32.mrb[185].mxu1 }
 0xb81   : > { %v5682_v24 = vadd.f32 %v6632_v31, %v5681_v46  ;;  %v6805_v48 = vpop.f32.mrb[186].mxu1 }
 0xb82   : > { %v5693_v26 = vadd.f32 %v6805_v48, %v6632_v31  ;;  %v5684_v49 = vpop.f32.mrb[187].mxu1  ;;  %v5714_v20 = vmax.f32 %v5690_v58, 0.0 }
 0xb83   : > { %v5685_v51 = vadd.f32 %v6632_v31, %v5684_v49  ;;  %v5712_v4 = vmax.f32 %v5682_v24, 0.0 }
 0xb84   : > { %v5715_v2 = vmax.f32 %v5693_v26, 0.0 }
 0xb85   : > { %v5713_v6 = vmax.f32 %v5685_v51, 0.0 }
 0xb86   : > { %v5721_v9 = vpack.c.bf16 %v5715_v2, %v5714_v20 }
 0xb87   : > { %v5720_v15 = vpack.c.bf16 %v5713_v6, %v5712_v4  ;;  %v6808_v61 = vpop.f32.mrb[188].mxu1 }
 0xb88   : > { %v5706_v29 = vadd.f32 %v6808_v61, %v6632_v31  ;;  %v5697_v55 = vpop.f32.mrb[189].mxu1 }
 0xb89   : > { %v5698_v36 = vadd.f32 %v6632_v31, %v5697_v55  ;;  %v6809_v10 = vpop.f32.mrb[190].mxu1  ;;  %6814 = vmatprep.mubr.msk.bf16.mxu0 %vm5747_vm2, %v5720_v15 }
 0xb8a   : > { %v5709_v3 = vadd.f32 %v6809_v10, %v6632_v31  ;;  %v5700_v60 = vpop.f32.mrb[191].mxu1  ;;  %6815 = vmatmul.mubr.msk.bf16.vlgmr.msra.gmra.mrb[224].mxu0 %vm5747_vm2, %v5721_v9  ;;  %v5718_v12 = vmax.f32 %v5706_v29, 0.0 }
 0xb8b   : > { %v5701_v28 = vadd.f32 %v6632_v31, %v5700_v60  ;;  %v5716_v18 = vmax.f32 %v5698_v36, 0.0 }
 0xb8c   : > { %v5719_v19 = vmax.f32 %v5709_v3, 0.0 }
 0xb8d   : > { %v5717_v56 = vmax.f32 %v5701_v28, 0.0 }
 0xb8e   : > { %v5723_v45 = vpack.c.bf16 %v5719_v19, %v5718_v12 }
 0xb8f   : > { %v5722_v21 = vpack.c.bf16 %v5717_v56, %v5716_v18 }
 0xb91   : > { %6818 = vmatprep.mubr.msk.bf16.mxu0 %vm5747_vm2, %v5722_v21 }
 0xb92   : > { %6819 = vmatmul.mubr.msk.bf16.gmra.mrb[228].mxu0 %vm5747_vm2, %v5723_v45 }
 0xc5d   : > { %v6816_v32 = vpop.f32.mrb[224].mxu0 }
 0xc5e   : > { %v5803_v14 = vadd.f32 %v6816_v32, %v6641_v57  ;;  %v5794_v39 = vpop.f32.mrb[225].mxu0 }
 0xc5f   : > { %v5795_v52 = vadd.f32 %v6641_v57, %v5794_v39  ;;  %v6817_v41 = vpop.f32.mrb[226].mxu0 }
 0xc60   : > { %v5806_v38 = vadd.f32 %v6817_v41, %v6641_v57  ;;  %v5797_v23 = vpop.f32.mrb[227].mxu0  ;;  %v5827_v27 = vmax.f32 %v5803_v14, 0.0 }
 0xc61   : > { %v5798_v13 = vadd.f32 %v6641_v57, %v5797_v23  ;;  %v5825_v1 = vmax.f32 %v5795_v52, 0.0 }
 0xc62   : > { %v5828_v62 = vmax.f32 %v5806_v38, 0.0 }
 0xc63   : > { %v5826_v42 = vmax.f32 %v5798_v13, 0.0 }
 0xc64   : > { %v5834_v8 = vpack.c.bf16 %v5828_v62, %v5827_v27 }
 0xc65   : > { %v5833_v7 = vpack.c.bf16 %v5826_v42, %v5825_v1  ;;  %v6820_v54 = vpop.f32.mrb[228].mxu0 }
 0xc66   : > { %v5819_v17 = vadd.f32 %v6820_v54, %v6641_v57  ;;  %v5810_v37 = vpop.f32.mrb[229].mxu0 }
 0xc67   : > { %v5811_v22 = vadd.f32 %v6641_v57, %v5810_v37  ;;  %v6821_v47 = vpop.f32.mrb[230].mxu0  ;;  %6824 = vmatprep.mubr.msk.bf16.mxu1 %vm5852_vm3, %v5833_v7 }
 0xc68   : > { %v5822_v11 = vadd.f32 %v6821_v47, %v6641_v57  ;;  %v5813_v30 = vpop.f32.mrb[231].mxu0  ;;  %6825 = vmatmul.mubr.msk.bf16.vlgmr.msra.gmra.mrb[192].mxu1 %vm5852_vm3, %v5834_v8  ;;  %v5831_v50 = vmax.f32 %v5819_v17, 0.0 }
 0xc69   : > { %v5814_v44 = vadd.f32 %v6641_v57, %v5813_v30  ;;  %v5829_v33 = vmax.f32 %v5811_v22, 0.0 }
 0xc6a   : > { %v5832_v0 = vmax.f32 %v5822_v11, 0.0 }
 0xc6b   : > { %v5830_v34 = vmax.f32 %v5814_v44, 0.0 }
 0xc6c   : > { %v5836_v59 = vpack.c.bf16 %v5832_v0, %v5831_v50 }
 0xc6d   : > { %v5835_v35 = vpack.c.bf16 %v5830_v34, %v5829_v33 }
 0xc6f   : > { %6828 = vmatprep.mubr.msk.bf16.mxu1 %vm5852_vm3, %v5835_v35 }
 0xc70   : > { %6829 = vmatmul.mubr.msk.bf16.gmra.mrb[196].mxu1 %vm5852_vm3, %v5836_v59 }
 0xd3b   : > { %v6826_v63 = vpop.f32.mrb[192].mxu1 }
 0xd3c   : > { %v5908_v25 = vadd.f32 %v6826_v63, %v6648_v16  ;;  %v5899_v40 = vpop.f32.mrb[193].mxu1 }
 0xd3d   : > { %v5900_v43 = vadd.f32 %v6648_v16, %v5899_v40  ;;  %v6827_v5 = vpop.f32.mrb[194].mxu1 }
 0xd3e   : > { %5933 = vst.msk [vmem:[%s1220_s13 + $0x10] sm:$0xff] %vm5930_vm4, %v5908_v25  ;;  %v5911_v31 = vadd.f32 %v6827_v5, %v6648_v16  ;;  %v5902_v53 = vpop.f32.mrb[195].mxu1 }
 0xd3f   : > { %5931 = vst.msk [vmem:[%s1220_s13] sm:$0xff] %vm5930_vm4, %v5900_v43  ;;  %v5903_v58 = vadd.f32 %v6648_v16, %v5902_v53 }
 0xd40   : > { %5934 = vst.msk [vmem:[%s1220_s13 + $0x18] sm:$0xff] %vm5930_vm4, %v5911_v31 }
 0xd41   : > { %5932 = vst.msk [vmem:[%s1220_s13 + $0x8] sm:$0xff] %vm5930_vm4, %v5903_v58 }
 0xd43   : > { %v6830_v46 = vpop.f32.mrb[196].mxu1 }
 0xd44   : > { %v5924_v24 = vadd.f32 %v6830_v46, %v6648_v16  ;;  %v5915_v48 = vpop.f32.mrb[197].mxu1 }
 0xd45   : > { %v5916_v26 = vadd.f32 %v6648_v16, %v5915_v48  ;;  %v6831_v49 = vpop.f32.mrb[198].mxu1 }
 0xd46   : > { %5937 = vst.msk [vmem:[%s1220_s13 + $0x30] sm:$0xff] %vm5930_vm4, %v5924_v24  ;;  %v5927_v51 = vadd.f32 %v6831_v49, %v6648_v16  ;;  %v5918_v20 = vpop.f32.mrb[199].mxu1 }
 0xd47   : > { %5935 = vst.msk [vmem:[%s1220_s13 + $0x20] sm:$0xff] %vm5930_vm4, %v5916_v26  ;;  %v5919_v2 = vadd.f32 %v6648_v16, %v5918_v20 }
 0xd48   : > { %5938 = vst.msk [vmem:[%s1220_s13 + $0x38] sm:$0xff] %vm5930_vm4, %v5927_v51 }
 0xd49   : > { %5936 = vst.msk [vmem:[%s1220_s13 + $0x28] sm:$0xff] %vm5930_vm4, %v5919_v2 }
 0xd4a PF: > { %p86_p1 = scmp.ge.s32.totalorder %s8535_s18, 6   ;;  %s9572_s9 = smov %s8090_s21 }
 0xd4b   : > { %s9573_s21 = smov %s8094_s23  ;;  %s9574_s23 = smov %s8547_s16 }
 0xd4c   : > { %s9575_s22 = smov %s8535_s18  ;;  %88 = sbr.rel (!%p86_p1) target bundleno = 71 (0x47), region = 292 }
 0xd53   :  { %5987 = vsyncpa [#allocation4], 1 }
 0xd54   :  { %5989 = vsyncpa [#allocation4 + $0x1], 1 }
 0xd55   :  { %5990 = vsyncpa [#allocation6], 1 }
 0xd56   :  { %5992 = vsyncpa [#allocation6 + $0x1], 1 }
 0xd57   :  { %5993 = vsyncpa [#allocation9], 1 }
 0xd58   :  { %5994 = vsyncpa [#allocation12], 1 }
 0xd59   :  { %5995 = vsyncpa [#allocation15], 1 }
 0xd5a   :  { %5996 = vsyncpa [#allocation18], 1 }
 0xd5b   :  { %5997 = vsyncpa [#allocation21], 1 }
 0xd5c   :  { %5998 = vsyncpa [#allocation24], 1 }
 0xd5d   :  { %5999 = vsyncpa [#allocation27], 1 }

</bundles_post_ra>
